<compile_context>
chip_gen: v6e
topology: v6e:2x2x1
jax: 0.10.0
libtpu: 0.0.40
codegen_flags: <defaults>
</compile_context>

<pallas_src>
import functools

import jax
import jax.numpy as jnp
from jax.experimental import pallas as pl
from jax.experimental.pallas import tpu as pltpu


# ---------------------------------------------------------------------------
# helpers
# ---------------------------------------------------------------------------
def _round_up(x, m):
    return ((x + m - 1) // m) * m


def _pad2(x, rows, cols):
    return jnp.pad(x, ((0, rows - x.shape[0]), (0, cols - x.shape[1])))


def _pad3(x, d0, d1, d2):
    return jnp.pad(x, ((0, d0 - x.shape[0]),
                       (0, d1 - x.shape[1]),
                       (0, d2 - x.shape[2])))


def _sigmoid(x):
    return 1.0 / (1.0 + jnp.exp(-x))


def _softplus(x):
    # numerically stable, uses only exp/log/abs/max (clean Mosaic lowering)
    return jnp.maximum(x, 0.0) + jnp.log(1.0 + jnp.exp(-jnp.abs(x)))


def _dot(a, b):
    return jnp.dot(a, b, preferred_element_type=jnp.float32)


def _gru_cell(x, h, Wir, Wiz, Win, Whr, Whz, Whn, br, bz, bin_, bhn):
    """torch.nn.GRUCell semantics; weights stored transposed [in, out]."""
    r = _sigmoid(_dot(x, Wir) + _dot(h, Whr) + br)
    z = _sigmoid(_dot(x, Wiz) + _dot(h, Whz) + bz)
    n = jnp.tanh(_dot(x, Win) + bin_ + r * (_dot(h, Whn) + bhn))
    return (1.0 - z) * n + z * h


# ---------------------------------------------------------------------------
# kernel
# ---------------------------------------------------------------------------
def _dhtm_kernel(
    # per-timestep inputs (block-indexed by t)
    obs_ref, pose_ref, eps_po_ref, eps_pr_ref,
    # initial state / belief (constant blocks)
    s0_ref, b0_ref,
    # posterior branch params (constant blocks, VMEM-resident across grid)
    pWo, pWs, pWr, pbe,
    pWir, pWiz, pWin, pWhr, pWhz, pWhn, pbr, pbz, pbin, pbhn,
    pWb, pbb, pWm, pbm, pWd, pbd,
    # prior branch params
    qWp, qWs, qWr, qbe,
    qWir, qWiz, qWin, qWhr, qWhz, qWhn, qbr, qbz, qbin, qbhn,
    qWb, qbb, qWm, qbm, qWd, qbd,
    # outputs (block-indexed by t)
    post_belief_o, prior_belief_o,
    prior_state_o, prior_mean_o, prior_std_o,
    post_state_o, post_mean_o, post_std_o,
    # VMEM scratch carries (persist across grid iterations)
    post_s_c, prior_s_c, post_b_c, prior_b_c,
    *, min_std_dev,
):
    t = pl.program_id(0)

    @pl.when(t == 0)
    def _init():
        post_s_c[...] = s0_ref[...]
        prior_s_c[...] = s0_ref[...]
        post_b_c[...] = b0_ref[...]
        prior_b_c[...] = b0_ref[...]

    s_post = post_s_c[...]     # posterior_states[t]
    s_prior = prior_s_c[...]   # prior_states[t]

    # ---------------- posterior branch ----------------
    # relu(fc_embed_state_posterior(cat([obs_t, posterior_state, prior_state])))
    x = (_dot(obs_ref[...], pWo[...]) + _dot(s_post, pWs[...])
         + _dot(s_prior, pWr[...]) + pbe[...])
    x = jnp.maximum(x, 0.0)
    b_post = _gru_cell(x, post_b_c[...],
                       pWir[...], pWiz[...], pWin[...],
                       pWhr[...], pWhz[...], pWhn[...],
                       pbr[...], pbz[...], pbin[...], pbhn[...])
    post_b_c[...] = b_post
    h = jnp.maximum(_dot(b_post, pWb[...]) + pbb[...], 0.0)
    p_mean = _dot(h, pWm[...]) + pbm[...]
    p_std = _softplus(_dot(h, pWd[...]) + pbd[...]) + min_std_dev
    new_s_post = p_mean + p_std * eps_po_ref[...]
    post_s_c[...] = new_s_post

    post_belief_o[...] = b_post
    post_mean_o[...] = p_mean
    post_std_o[...] = p_std
    post_state_o[...] = new_s_post

    # ---------------- prior branch ----------------
    # relu(fc_embed_state_prior(cat([pose_t, posterior_state, prior_state])))
    # NOTE: uses the *previous* step's states (as in the reference code).
    y = (_dot(pose_ref[...], qWp[...]) + _dot(s_post, qWs[...])
         + _dot(s_prior, qWr[...]) + qbe[...])
    y = jnp.maximum(y, 0.0)
    b_prior = _gru_cell(y, prior_b_c[...],
                        qWir[...], qWiz[...], qWin[...],
                        qWhr[...], qWhz[...], qWhn[...],
                        qbr[...], qbz[...], qbin[...], qbhn[...])
    prior_b_c[...] = b_prior
    h2 = jnp.maximum(_dot(b_prior, qWb[...]) + qbb[...], 0.0)
    r_mean = _dot(h2, qWm[...]) + qbm[...]
    r_std = _softplus(_dot(h2, qWd[...]) + qbd[...]) + min_std_dev
    new_s_prior = r_mean + r_std * eps_pr_ref[...]
    prior_s_c[...] = new_s_prior

    prior_belief_o[...] = b_prior
    prior_mean_o[...] = r_mean
    prior_std_o[...] = r_std
    prior_state_o[...] = new_s_prior


# ---------------------------------------------------------------------------
# wrapper
# ---------------------------------------------------------------------------
_BRANCH_KEYS = ("Wir", "Wiz", "Win", "Whr", "Whz", "Whn",
                "br", "bz", "bin", "bhn",
                "Wb", "bb", "Wm", "bm", "Wd", "bd")


def double_hidden_transition_model(prev_state, prev_belief, observations, poses,
                                   eps_posterior, eps_prior, params, *,
                                   pose_tiles=1, min_std_dev=0.1,
                                   rec_type="posterior"):
    """Fused forward of DoubleHiddenTransitionModel (gru / non-imu path).

    prev_state (B,S), prev_belief (B,Bel), observations (T,B,E), poses (T,B,6),
    eps_* (T,B,S).  Returns the torch-style 7-element list:
    [beliefs(rec_type), prior_states, prior_means, prior_std_devs,
     posterior_states, posterior_means, posterior_std_devs].
    """
    f32 = jnp.float32
    B, S = prev_state.shape
    Bel = prev_belief.shape[1]
    T, _, E = observations.shape
    pose_tiled = jnp.tile(poses, (1, 1, pose_tiles))
    P = pose_tiled.shape[2]
    H = params["post"]["Wb"].shape[1]

    # padded sizes: batch -> 8 sublanes, features -> 128 lanes
    Bp = _round_up(B, 8)
    Sp = _round_up(S, 128)
    Belp = _round_up(Bel, 128)
    Hp = _round_up(H, 128)
    Ep = _round_up(E, 128)
    Pp = _round_up(P, 128)

    # ---- pad inputs (zeros) ----
    obs_p = _pad3(observations.astype(f32), T, Bp, Ep)
    pose_p = _pad3(pose_tiled.astype(f32), T, Bp, Pp)
    eps_po_p = _pad3(eps_posterior.astype(f32), T, Bp, Sp)
    eps_pr_p = _pad3(eps_prior.astype(f32), T, Bp, Sp)
    s0_p = _pad2(prev_state.astype(f32), Bp, Sp)
    b0_p = _pad2(prev_belief.astype(f32), Bp, Belp)

    # ---- pad params (zeros), in the exact order consumed by the kernel ----
    def branch_list(p, first_key, first_in_pad):
        tgt = {
            first_key: (first_in_pad, Belp),
            "We_spost": (Sp, Belp), "We_sprior": (Sp, Belp), "be": (1, Belp),
            "Wir": (Belp, Belp), "Wiz": (Belp, Belp), "Win": (Belp, Belp),
            "Whr": (Belp, Belp), "Whz": (Belp, Belp), "Whn": (Belp, Belp),
            "br": (1, Belp), "bz": (1, Belp), "bin": (1, Belp), "bhn": (1, Belp),
            "Wb": (Belp, Hp), "bb": (1, Hp),
            "Wm": (Hp, Sp), "bm": (1, Sp), "Wd": (Hp, Sp), "bd": (1, Sp),
        }
        order = (first_key, "We_spost", "We_sprior", "be") + _BRANCH_KEYS
        return [_pad2(p[k].astype(f32), *tgt[k]) for k in order]

    post_arrays = branch_list(params["post"], "We_obs", Ep)
    prior_arrays = branch_list(params["prior"], "We_pose", Pp)

    inputs = [obs_p, pose_p, eps_po_p, eps_pr_p, s0_p, b0_p] \
        + post_arrays + prior_arrays

    def t_spec(arr):
        _, d1, d2 = arr.shape
        return pl.BlockSpec((None, d1, d2), lambda t: (t, 0, 0))

    def const_spec(arr):
        return pl.BlockSpec(arr.shape, lambda t: (0,) * arr.ndim)

    in_specs = ([t_spec(a) for a in (obs_p, pose_p, eps_po_p, eps_pr_p)]
                + [const_spec(a) for a in
                   ([s0_p, b0_p] + post_arrays + prior_arrays)])

    out_dims = (Belp, Belp, Sp, Sp, Sp, Sp, Sp, Sp)
    out_shape = tuple(jax.ShapeDtypeStruct((T, Bp, d), f32) for d in out_dims)
    out_specs = tuple(pl.BlockSpec((None, Bp, d), lambda t: (t, 0, 0))
                      for d in out_dims)

    scratch_shapes = [
        pltpu.VMEM((Bp, Sp), f32),     # posterior state carry
        pltpu.VMEM((Bp, Sp), f32),     # prior state carry
        pltpu.VMEM((Bp, Belp), f32),   # posterior belief carry
        pltpu.VMEM((Bp, Belp), f32),   # prior belief carry
    ]

    kernel = functools.partial(_dhtm_kernel, min_std_dev=float(min_std_dev))

    outs = pl.pallas_call(
        kernel,
        grid=(T,),
        in_specs=in_specs,
        out_specs=out_specs,
        out_shape=out_shape,
        scratch_shapes=scratch_shapes,
        compiler_params=pltpu.CompilerParams(
            # The time axis carries the GRU recurrence -> must stay sequential.
            dimension_semantics=("arbitrary",),
        ),
    )(*inputs)

    (post_belief, prior_belief, prior_state, prior_mean, prior_std,
     post_state, post_mean, post_std) = outs

    beliefs = post_belief if rec_type == "posterior" else prior_belief
    return [
        beliefs[:, :B, :Bel],
        prior_state[:, :B, :S], prior_mean[:, :B, :S], prior_std[:, :B, :S],
        post_state[:, :B, :S], post_mean[:, :B, :S], post_std[:, :B, :S],
    ]


# ---------------------------------------------------------------------------
# synthetic params + pure-JAX reference
# ---------------------------------------------------------------------------
def init_params(key, state_size, belief_size, hidden_size, embedding_size,
                pose_tiles=1, dtype=jnp.float32):
    """Synthetic params (torch Linear/GRUCell shapes, stored transposed [in,out])."""
    def uni(k, shape, fan_in):
        bound = 1.0 / jnp.sqrt(fan_in)
        return jax.random.uniform(k, shape, dtype, -bound, bound)

    def branch(k, first_key, first_in):
        fan = first_in + 2 * state_size
        it = iter(jax.random.split(k, 24))
        p = {
            first_key: uni(next(it), (first_in, belief_size), fan),
            "We_spost": uni(next(it), (state_size, belief_size), fan),
            "We_sprior": uni(next(it), (state_size, belief_size), fan),
            "be": uni(next(it), (1, belief_size), fan),
        }
        for name in ("Wir", "Wiz", "Win", "Whr", "Whz", "Whn"):
            p[name] = uni(next(it), (belief_size, belief_size), belief_size)
        for name in ("br", "bz", "bin", "bhn"):
            p[name] = uni(next(it), (1, belief_size), belief_size)
        p["Wb"] = uni(next(it), (belief_size, hidden_size), belief_size)
        p["bb"] = uni(next(it), (1, hidden_size), belief_size)
        p["Wm"] = uni(next(it), (hidden_size, state_size), hidden_size)
        p["bm"] = uni(next(it), (1, state_size), hidden_size)
        p["Wd"] = uni(next(it), (hidden_size, state_size), hidden_size)
        p["bd"] = uni(next(it), (1, state_size), hidden_size)
        return p

    kp, kq = jax.random.split(key)
    return {"post": branch(kp, "We_obs", embedding_size),
            "prior": branch(kq, "We_pose", 6 * pose_tiles)}


def _reference(prev_state, prev_belief, observations, poses, eps_po, eps_pr,
               params, *, pose_tiles=1, min_std_dev=0.1, rec_type="posterior"):
    def softplus(x):
        return jnp.maximum(x, 0.0) + jnp.log(1.0 + jnp.exp(-jnp.abs(x)))

    def sigmoid(x):
        return 1.0 / (1.0 + jnp.exp(-x))

    def gru(p, x, h):
        r = sigmoid(x @ p["Wir"] + h @ p["Whr"] + p["br"])
        z = sigmoid(x @ p["Wiz"] + h @ p["Whz"] + p["bz"])
        n = jnp.tanh(x @ p["Win"] + p["bin"] + r * (h @ p["Whn"] + p["bhn"]))
        return (1.0 - z) * n + z * h

    pose_tiled = jnp.tile(poses, (1, 1, pose_tiles))
    T = observations.shape[0]
    pp, qq = params["post"], params["prior"]

    s_po = s_pr = prev_state
    b_po = b_pr = prev_belief
    acc = {k: [] for k in ("pb", "rb", "rs", "rm", "rd", "ps", "pm", "pd")}
    for t in range(T):
        x = jnp.maximum(observations[t] @ pp["We_obs"] + s_po @ pp["We_spost"]
                        + s_pr @ pp["We_sprior"] + pp["be"], 0.0)
        b_po_new = gru(pp, x, b_po)
        h = jnp.maximum(b_po_new @ pp["Wb"] + pp["bb"], 0.0)
        pm = h @ pp["Wm"] + pp["bm"]
        pd = softplus(h @ pp["Wd"] + pp["bd"]) + min_std_dev
        ps = pm + pd * eps_po[t]

        y = jnp.maximum(pose_tiled[t] @ qq["We_pose"] + s_po @ qq["We_spost"]
                        + s_pr @ qq["We_sprior"] + qq["be"], 0.0)
        b_pr_new = gru(qq, y, b_pr)
        h2 = jnp.maximum(b_pr_new @ qq["Wb"] + qq["bb"], 0.0)
        rm = h2 @ qq["Wm"] + qq["bm"]
        rd = softplus(h2 @ qq["Wd"] + qq["bd"]) + min_std_dev
        rs = rm + rd * eps_pr[t]

        for k, v in (("pb", b_po_new), ("rb", b_pr_new), ("rs", rs), ("rm", rm),
                     ("rd", rd), ("ps", ps), ("pm", pm), ("pd", pd)):
            acc[k].append(v)
        s_po, s_pr, b_po, b_pr = ps, rs, b_po_new, b_pr_new

    stack = lambda k: jnp.stack(acc[k], axis=0)
    beliefs = stack("pb") if rec_type == "posterior" else stack("rb")
    return [beliefs, stack("rs"), stack("rm"), stack("rd"),
            stack("ps"), stack("pm"), stack("pd")]


# ---------------------------------------------------------------------------
# demo / self-test
# ---------------------------------------------------------------------------
if __name__ == "__main__":
    # Small config: args.belief_rnn='gru', args.imu_only=False,
    # use_pose_model=False, args.pose_tiles=1, args.clip_length=5.
    batch = 2
    state_size = 30
    belief_size = 64
    hidden_size = 64
    embedding_size = 48
    pose_tiles = 1
    clip_length = 5          # the torch loop runs T-1 = clip_length steps
    min_std_dev = 0.1

    key = jax.random.PRNGKey(0)
    k1, k2, k3, k4, k5, k6, kp = jax.random.split(key, 7)
    prev_state = jax.random.normal(k1, (batch, state_size), jnp.float32)
    prev_belief = jax.random.normal(k2, (batch, belief_size), jnp.float32)
    observations = jax.random.normal(
        k3, (clip_length, batch, embedding_size), jnp.float32)
    poses = 0.1 * jax.random.normal(k4, (clip_length, batch, 6), jnp.float32)
    eps_posterior = jax.random.normal(
        k5, (clip_length, batch, state_size), jnp.float32)
    eps_prior = jax.random.normal(
        k6, (clip_length, batch, state_size), jnp.float32)
    params = init_params(kp, state_size, belief_size, hidden_size,
                         embedding_size, pose_tiles=pose_tiles)

    outs = double_hidden_transition_model(
        prev_state, prev_belief, observations, poses, eps_posterior, eps_prior,
        params, pose_tiles=pose_tiles, min_std_dev=min_std_dev,
        rec_type="posterior")
    outs = jax.block_until_ready(outs)

    refs = _reference(prev_state, prev_belief, observations, poses,
                      eps_posterior, eps_prior, params,
                      pose_tiles=pose_tiles, min_std_dev=min_std_dev,
                      rec_type="posterior")

    expected_shapes = [(clip_length, batch, belief_size)] + \
                      [(clip_length, batch, state_size)] * 6
    for o, r, shp in zip(outs, refs, expected_shapes):
        assert o.shape == shp, (o.shape, shp)
        err = float(jnp.max(jnp.abs(o - r)))
        assert jnp.allclose(o, r, atol=2e-2, rtol=2e-2), err

    print("KERNEL_OK")
</pallas_src>

<mosaic_0001>
module attributes {stable_mosaic.version = 11 : i64} {
  func.func @_dhtm_kernel(%arg0: i32, %arg1: memref<1x8x128xf32, #tpu.memory_space<vmem>>, %arg2: memref<1x8x128xf32, #tpu.memory_space<vmem>>, %arg3: memref<1x8x128xf32, #tpu.memory_space<vmem>>, %arg4: memref<1x8x128xf32, #tpu.memory_space<vmem>>, %arg5: memref<8x128xf32, #tpu.memory_space<vmem>>, %arg6: memref<8x128xf32, #tpu.memory_space<vmem>>, %arg7: memref<128x128xf32, #tpu.memory_space<vmem>>, %arg8: memref<128x128xf32, #tpu.memory_space<vmem>>, %arg9: memref<128x128xf32, #tpu.memory_space<vmem>>, %arg10: memref<1x128xf32, #tpu.memory_space<vmem>>, %arg11: memref<128x128xf32, #tpu.memory_space<vmem>>, %arg12: memref<128x128xf32, #tpu.memory_space<vmem>>, %arg13: memref<128x128xf32, #tpu.memory_space<vmem>>, %arg14: memref<128x128xf32, #tpu.memory_space<vmem>>, %arg15: memref<128x128xf32, #tpu.memory_space<vmem>>, %arg16: memref<128x128xf32, #tpu.memory_space<vmem>>, %arg17: memref<1x128xf32, #tpu.memory_space<vmem>>, %arg18: memref<1x128xf32, #tpu.memory_space<vmem>>, %arg19: memref<1x128xf32, #tpu.memory_space<vmem>>, %arg20: memref<1x128xf32, #tpu.memory_space<vmem>>, %arg21: memref<128x128xf32, #tpu.memory_space<vmem>>, %arg22: memref<1x128xf32, #tpu.memory_space<vmem>>, %arg23: memref<128x128xf32, #tpu.memory_space<vmem>>, %arg24: memref<1x128xf32, #tpu.memory_space<vmem>>, %arg25: memref<128x128xf32, #tpu.memory_space<vmem>>, %arg26: memref<1x128xf32, #tpu.memory_space<vmem>>, %arg27: memref<128x128xf32, #tpu.memory_space<vmem>>, %arg28: memref<128x128xf32, #tpu.memory_space<vmem>>, %arg29: memref<128x128xf32, #tpu.memory_space<vmem>>, %arg30: memref<1x128xf32, #tpu.memory_space<vmem>>, %arg31: memref<128x128xf32, #tpu.memory_space<vmem>>, %arg32: memref<128x128xf32, #tpu.memory_space<vmem>>, %arg33: memref<128x128xf32, #tpu.memory_space<vmem>>, %arg34: memref<128x128xf32, #tpu.memory_space<vmem>>, %arg35: memref<128x128xf32, #tpu.memory_space<vmem>>, %arg36: memref<128x128xf32, #tpu.memory_space<vmem>>, %arg37: memref<1x128xf32, #tpu.memory_space<vmem>>, %arg38: memref<1x128xf32, #tpu.memory_space<vmem>>, %arg39: memref<1x128xf32, #tpu.memory_space<vmem>>, %arg40: memref<1x128xf32, #tpu.memory_space<vmem>>, %arg41: memref<128x128xf32, #tpu.memory_space<vmem>>, %arg42: memref<1x128xf32, #tpu.memory_space<vmem>>, %arg43: memref<128x128xf32, #tpu.memory_space<vmem>>, %arg44: memref<1x128xf32, #tpu.memory_space<vmem>>, %arg45: memref<128x128xf32, #tpu.memory_space<vmem>>, %arg46: memref<1x128xf32, #tpu.memory_space<vmem>>, %arg47: memref<1x8x128xf32, #tpu.memory_space<vmem>>, %arg48: memref<1x8x128xf32, #tpu.memory_space<vmem>>, %arg49: memref<1x8x128xf32, #tpu.memory_space<vmem>>, %arg50: memref<1x8x128xf32, #tpu.memory_space<vmem>>, %arg51: memref<1x8x128xf32, #tpu.memory_space<vmem>>, %arg52: memref<1x8x128xf32, #tpu.memory_space<vmem>>, %arg53: memref<1x8x128xf32, #tpu.memory_space<vmem>>, %arg54: memref<1x8x128xf32, #tpu.memory_space<vmem>>, %arg55: memref<8x128xf32, #tpu.memory_space<vmem>>, %arg56: memref<8x128xf32, #tpu.memory_space<vmem>>, %arg57: memref<8x128xf32, #tpu.memory_space<vmem>>, %arg58: memref<8x128xf32, #tpu.memory_space<vmem>>) attributes {dimension_semantics = [#tpu.dimension_semantics<arbitrary>], iteration_bounds = array<i64: 5>, scalar_prefetch = 0 : i64, scratch_operands = 4 : i64, tpu.core_type = #tpu.core_type<tc>, window_params = [{transform_indices = @transform_0, window_bounds = array<i64: 1, 8, 128>}, {transform_indices = @transform_1, window_bounds = array<i64: 1, 8, 128>}, {transform_indices = @transform_2, window_bounds = array<i64: 1, 8, 128>}, {transform_indices = @transform_3, window_bounds = array<i64: 1, 8, 128>}, {pipeline_mode = #tpu.pipeline_mode<synchronous>, transform_indices = @transform_4, window_bounds = array<i64: 8, 128>}, {pipeline_mode = #tpu.pipeline_mode<synchronous>, transform_indices = @transform_5, window_bounds = array<i64: 8, 128>}, {pipeline_mode = #tpu.pipeline_mode<synchronous>, transform_indices = @transform_6, window_bounds = array<i64: 128, 128>}, {pipeline_mode = #tpu.pipeline_mode<synchronous>, transform_indices = @transform_7, window_bounds = array<i64: 128, 128>}, {pipeline_mode = #tpu.pipeline_mode<synchronous>, transform_indices = @transform_8, window_bounds = array<i64: 128, 128>}, {pipeline_mode = #tpu.pipeline_mode<synchronous>, transform_indices = @transform_9, window_bounds = array<i64: 1, 128>}, {pipeline_mode = #tpu.pipeline_mode<synchronous>, transform_indices = @transform_10, window_bounds = array<i64: 128, 128>}, {pipeline_mode = #tpu.pipeline_mode<synchronous>, transform_indices = @transform_11, window_bounds = array<i64: 128, 128>}, {pipeline_mode = #tpu.pipeline_mode<synchronous>, transform_indices = @transform_12, window_bounds = array<i64: 128, 128>}, {pipeline_mode = #tpu.pipeline_mode<synchronous>, transform_indices = @transform_13, window_bounds = array<i64: 128, 128>}, {pipeline_mode = #tpu.pipeline_mode<synchronous>, transform_indices = @transform_14, window_bounds = array<i64: 128, 128>}, {pipeline_mode = #tpu.pipeline_mode<synchronous>, transform_indices = @transform_15, window_bounds = array<i64: 128, 128>}, {pipeline_mode = #tpu.pipeline_mode<synchronous>, transform_indices = @transform_16, window_bounds = array<i64: 1, 128>}, {pipeline_mode = #tpu.pipeline_mode<synchronous>, transform_indices = @transform_17, window_bounds = array<i64: 1, 128>}, {pipeline_mode = #tpu.pipeline_mode<synchronous>, transform_indices = @transform_18, window_bounds = array<i64: 1, 128>}, {pipeline_mode = #tpu.pipeline_mode<synchronous>, transform_indices = @transform_19, window_bounds = array<i64: 1, 128>}, {pipeline_mode = #tpu.pipeline_mode<synchronous>, transform_indices = @transform_20, window_bounds = array<i64: 128, 128>}, {pipeline_mode = #tpu.pipeline_mode<synchronous>, transform_indices = @transform_21, window_bounds = array<i64: 1, 128>}, {pipeline_mode = #tpu.pipeline_mode<synchronous>, transform_indices = @transform_22, window_bounds = array<i64: 128, 128>}, {pipeline_mode = #tpu.pipeline_mode<synchronous>, transform_indices = @transform_23, window_bounds = array<i64: 1, 128>}, {pipeline_mode = #tpu.pipeline_mode<synchronous>, transform_indices = @transform_24, window_bounds = array<i64: 128, 128>}, {pipeline_mode = #tpu.pipeline_mode<synchronous>, transform_indices = @transform_25, window_bounds = array<i64: 1, 128>}, {pipeline_mode = #tpu.pipeline_mode<synchronous>, transform_indices = @transform_26, window_bounds = array<i64: 128, 128>}, {pipeline_mode = #tpu.pipeline_mode<synchronous>, transform_indices = @transform_27, window_bounds = array<i64: 128, 128>}, {pipeline_mode = #tpu.pipeline_mode<synchronous>, transform_indices = @transform_28, window_bounds = array<i64: 128, 128>}, {pipeline_mode = #tpu.pipeline_mode<synchronous>, transform_indices = @transform_29, window_bounds = array<i64: 1, 128>}, {pipeline_mode = #tpu.pipeline_mode<synchronous>, transform_indices = @transform_30, window_bounds = array<i64: 128, 128>}, {pipeline_mode = #tpu.pipeline_mode<synchronous>, transform_indices = @transform_31, window_bounds = array<i64: 128, 128>}, {pipeline_mode = #tpu.pipeline_mode<synchronous>, transform_indices = @transform_32, window_bounds = array<i64: 128, 128>}, {pipeline_mode = #tpu.pipeline_mode<synchronous>, transform_indices = @transform_33, window_bounds = array<i64: 128, 128>}, {pipeline_mode = #tpu.pipeline_mode<synchronous>, transform_indices = @transform_34, window_bounds = array<i64: 128, 128>}, {pipeline_mode = #tpu.pipeline_mode<synchronous>, transform_indices = @transform_35, window_bounds = array<i64: 128, 128>}, {pipeline_mode = #tpu.pipeline_mode<synchronous>, transform_indices = @transform_36, window_bounds = array<i64: 1, 128>}, {pipeline_mode = #tpu.pipeline_mode<synchronous>, transform_indices = @transform_37, window_bounds = array<i64: 1, 128>}, {pipeline_mode = #tpu.pipeline_mode<synchronous>, transform_indices = @transform_38, window_bounds = array<i64: 1, 128>}, {pipeline_mode = #tpu.pipeline_mode<synchronous>, transform_indices = @transform_39, window_bounds = array<i64: 1, 128>}, {pipeline_mode = #tpu.pipeline_mode<synchronous>, transform_indices = @transform_40, window_bounds = array<i64: 128, 128>}, {pipeline_mode = #tpu.pipeline_mode<synchronous>, transform_indices = @transform_41, window_bounds = array<i64: 1, 128>}, {pipeline_mode = #tpu.pipeline_mode<synchronous>, transform_indices = @transform_42, window_bounds = array<i64: 128, 128>}, {pipeline_mode = #tpu.pipeline_mode<synchronous>, transform_indices = @transform_43, window_bounds = array<i64: 1, 128>}, {pipeline_mode = #tpu.pipeline_mode<synchronous>, transform_indices = @transform_44, window_bounds = array<i64: 128, 128>}, {pipeline_mode = #tpu.pipeline_mode<synchronous>, transform_indices = @transform_45, window_bounds = array<i64: 1, 128>}, {transform_indices = @transform_46, window_bounds = array<i64: 1, 8, 128>}, {transform_indices = @transform_47, window_bounds = array<i64: 1, 8, 128>}, {transform_indices = @transform_48, window_bounds = array<i64: 1, 8, 128>}, {transform_indices = @transform_49, window_bounds = array<i64: 1, 8, 128>}, {transform_indices = @transform_50, window_bounds = array<i64: 1, 8, 128>}, {transform_indices = @transform_51, window_bounds = array<i64: 1, 8, 128>}, {transform_indices = @transform_52, window_bounds = array<i64: 1, 8, 128>}, {transform_indices = @transform_53, window_bounds = array<i64: 1, 8, 128>}]} {
    %c0_i32 = arith.constant 0 : i32
    %0 = arith.cmpi eq, %arg0, %c0_i32 : i32
    %1 = arith.extui %0 : i1 to i32
    %c0_i32_0 = arith.constant 0 : i32
    %2 = arith.cmpi ne, %1, %c0_i32_0 : i32
    scf.if %2 {
      %c0_181 = arith.constant 0 : index
      %c0_182 = arith.constant 0 : index
      %227 = vector.load %arg5[%c0_181, %c0_182] : memref<8x128xf32, #tpu.memory_space<vmem>>, vector<8x128xf32>
      %c0_183 = arith.constant 0 : index
      %c0_184 = arith.constant 0 : index
      %228 = vector.load %arg55[%c0_183, %c0_184] : memref<8x128xf32, #tpu.memory_space<vmem>>, vector<8x128xf32>
      tpu.vector_store %arg55[%c0_183, %c0_184], %227 {strides = array<i32>} : memref<8x128xf32, #tpu.memory_space<vmem>>, vector<8x128xf32>,
      %c0_185 = arith.constant 0 : index
      %c0_186 = arith.constant 0 : index
      %229 = vector.load %arg5[%c0_185, %c0_186] : memref<8x128xf32, #tpu.memory_space<vmem>>, vector<8x128xf32>
      %c0_187 = arith.constant 0 : index
      %c0_188 = arith.constant 0 : index
      %230 = vector.load %arg56[%c0_187, %c0_188] : memref<8x128xf32, #tpu.memory_space<vmem>>, vector<8x128xf32>
      tpu.vector_store %arg56[%c0_187, %c0_188], %229 {strides = array<i32>} : memref<8x128xf32, #tpu.memory_space<vmem>>, vector<8x128xf32>,
      %c0_189 = arith.constant 0 : index
      %c0_190 = arith.constant 0 : index
      %231 = vector.load %arg6[%c0_189, %c0_190] : memref<8x128xf32, #tpu.memory_space<vmem>>, vector<8x128xf32>
      %c0_191 = arith.constant 0 : index
      %c0_192 = arith.constant 0 : index
      %232 = vector.load %arg57[%c0_191, %c0_192] : memref<8x128xf32, #tpu.memory_space<vmem>>, vector<8x128xf32>
      tpu.vector_store %arg57[%c0_191, %c0_192], %231 {strides = array<i32>} : memref<8x128xf32, #tpu.memory_space<vmem>>, vector<8x128xf32>,
      %c0_193 = arith.constant 0 : index
      %c0_194 = arith.constant 0 : index
      %233 = vector.load %arg6[%c0_193, %c0_194] : memref<8x128xf32, #tpu.memory_space<vmem>>, vector<8x128xf32>
      %c0_195 = arith.constant 0 : index
      %c0_196 = arith.constant 0 : index
      %234 = vector.load %arg58[%c0_195, %c0_196] : memref<8x128xf32, #tpu.memory_space<vmem>>, vector<8x128xf32>
      tpu.vector_store %arg58[%c0_195, %c0_196], %233 {strides = array<i32>} : memref<8x128xf32, #tpu.memory_space<vmem>>, vector<8x128xf32>,
    } else {
    }
    %c0 = arith.constant 0 : index
    %c0_1 = arith.constant 0 : index
    %3 = vector.load %arg55[%c0, %c0_1] : memref<8x128xf32, #tpu.memory_space<vmem>>, vector<8x128xf32>
    %c0_2 = arith.constant 0 : index
    %c0_3 = arith.constant 0 : index
    %4 = vector.load %arg56[%c0_2, %c0_3] : memref<8x128xf32, #tpu.memory_space<vmem>>, vector<8x128xf32>
    %c0_4 = arith.constant 0 : index
    %c0_5 = arith.constant 0 : index
    %c0_6 = arith.constant 0 : index
    %5 = vector.load %arg1[%c0_4, %c0_5, %c0_6] : memref<1x8x128xf32, #tpu.memory_space<vmem>>, vector<1x8x128xf32>
    %6 = vector.shape_cast %5 : vector<1x8x128xf32> to vector<8x128xf32>
    %c0_7 = arith.constant 0 : index
    %c0_8 = arith.constant 0 : index
    %7 = vector.load %arg7[%c0_7, %c0_8] : memref<128x128xf32, #tpu.memory_space<vmem>>, vector<128x128xf32>
    %cst = arith.constant dense<0.000000e+00> : vector<8x128xf32>
    %8 = tpu.matmul %6, %7, %cst {dimension_numbers = #tpu.dot_dimension_numbers<[1], [0], [0], [1], [0, 0, 1, 1], [], []>} : vector<8x128xf32>, vector<128x128xf32>, vector<8x128xf32> -> vector<8x128xf32>
    %c0_9 = arith.constant 0 : index
    %c0_10 = arith.constant 0 : index
    %9 = vector.load %arg8[%c0_9, %c0_10] : memref<128x128xf32, #tpu.memory_space<vmem>>, vector<128x128xf32>
    %cst_11 = arith.constant dense<0.000000e+00> : vector<8x128xf32>
    %10 = tpu.matmul %3, %9, %cst_11 {dimension_numbers = #tpu.dot_dimension_numbers<[1], [0], [0], [1], [0, 0, 1, 1], [], []>} : vector<8x128xf32>, vector<128x128xf32>, vector<8x128xf32> -> vector<8x128xf32>
    %11 = arith.addf %8, %10 : vector<8x128xf32>
    %c0_12 = arith.constant 0 : index
    %c0_13 = arith.constant 0 : index
    %12 = vector.load %arg9[%c0_12, %c0_13] : memref<128x128xf32, #tpu.memory_space<vmem>>, vector<128x128xf32>
    %cst_14 = arith.constant dense<0.000000e+00> : vector<8x128xf32>
    %13 = tpu.matmul %4, %12, %cst_14 {dimension_numbers = #tpu.dot_dimension_numbers<[1], [0], [0], [1], [0, 0, 1, 1], [], []>} : vector<8x128xf32>, vector<128x128xf32>, vector<8x128xf32> -> vector<8x128xf32>
    %14 = arith.addf %11, %13 : vector<8x128xf32>
    %c0_15 = arith.constant 0 : index
    %c0_16 = arith.constant 0 : index
    %15 = vector.load %arg10[%c0_15, %c0_16] : memref<1x128xf32, #tpu.memory_space<vmem>>, vector<1x128xf32>
    %16 = vector.broadcast %15 : vector<1x128xf32> to vector<8x128xf32>
    %17 = arith.addf %14, %16 : vector<8x128xf32>
    %cst_17 = arith.constant 0.000000e+00 : f32
    %18 = vector.broadcast %cst_17 : f32 to vector<8x128xf32>
    %19 = arith.maximumf %17, %18 : vector<8x128xf32>
    %c0_18 = arith.constant 0 : index
    %c0_19 = arith.constant 0 : index
    %20 = vector.load %arg57[%c0_18, %c0_19] : memref<8x128xf32, #tpu.memory_space<vmem>>, vector<8x128xf32>
    %c0_20 = arith.constant 0 : index
    %c0_21 = arith.constant 0 : index
    %21 = vector.load %arg11[%c0_20, %c0_21] : memref<128x128xf32, #tpu.memory_space<vmem>>, vector<128x128xf32>
    %c0_22 = arith.constant 0 : index
    %c0_23 = arith.constant 0 : index
    %22 = vector.load %arg12[%c0_22, %c0_23] : memref<128x128xf32, #tpu.memory_space<vmem>>, vector<128x128xf32>
    %c0_24 = arith.constant 0 : index
    %c0_25 = arith.constant 0 : index
    %23 = vector.load %arg13[%c0_24, %c0_25] : memref<128x128xf32, #tpu.memory_space<vmem>>, vector<128x128xf32>
    %c0_26 = arith.constant 0 : index
    %c0_27 = arith.constant 0 : index
    %24 = vector.load %arg14[%c0_26, %c0_27] : memref<128x128xf32, #tpu.memory_space<vmem>>, vector<128x128xf32>
    %c0_28 = arith.constant 0 : index
    %c0_29 = arith.constant 0 : index
    %25 = vector.load %arg15[%c0_28, %c0_29] : memref<128x128xf32, #tpu.memory_space<vmem>>, vector<128x128xf32>
    %c0_30 = arith.constant 0 : index
    %c0_31 = arith.constant 0 : index
    %26 = vector.load %arg16[%c0_30, %c0_31] : memref<128x128xf32, #tpu.memory_space<vmem>>, vector<128x128xf32>
    %c0_32 = arith.constant 0 : index
    %c0_33 = arith.constant 0 : index
    %27 = vector.load %arg17[%c0_32, %c0_33] : memref<1x128xf32, #tpu.memory_space<vmem>>, vector<1x128xf32>
    %c0_34 = arith.constant 0 : index
    %c0_35 = arith.constant 0 : index
    %28 = vector.load %arg18[%c0_34, %c0_35] : memref<1x128xf32, #tpu.memory_space<vmem>>, vector<1x128xf32>
    %c0_36 = arith.constant 0 : index
    %c0_37 = arith.constant 0 : index
    %29 = vector.load %arg19[%c0_36, %c0_37] : memref<1x128xf32, #tpu.memory_space<vmem>>, vector<1x128xf32>
    %c0_38 = arith.constant 0 : index
    %c0_39 = arith.constant 0 : index
    %30 = vector.load %arg20[%c0_38, %c0_39] : memref<1x128xf32, #tpu.memory_space<vmem>>, vector<1x128xf32>
    %cst_40 = arith.constant dense<0.000000e+00> : vector<8x128xf32>
    %31 = tpu.matmul %19, %21, %cst_40 {dimension_numbers = #tpu.dot_dimension_numbers<[1], [0], [0], [1], [0, 0, 1, 1], [], []>} : vector<8x128xf32>, vector<128x128xf32>, vector<8x128xf32> -> vector<8x128xf32>
    %cst_41 = arith.constant dense<0.000000e+00> : vector<8x128xf32>
    %32 = tpu.matmul %20, %24, %cst_41 {dimension_numbers = #tpu.dot_dimension_numbers<[1], [0], [0], [1], [0, 0, 1, 1], [], []>} : vector<8x128xf32>, vector<128x128xf32>, vector<8x128xf32> -> vector<8x128xf32>
    %33 = arith.addf %31, %32 : vector<8x128xf32>
    %34 = vector.broadcast %27 : vector<1x128xf32> to vector<8x128xf32>
    %35 = arith.addf %33, %34 : vector<8x128xf32>
    %cst_42 = arith.constant 0.000000e+00 : f32
    %36 = vector.broadcast %cst_42 : f32 to vector<8x128xf32>
    %37 = arith.subf %36, %35 : vector<8x128xf32>
    %38 = math.exp %37 : vector<8x128xf32>
    %cst_43 = arith.constant 1.000000e+00 : f32
    %39 = vector.broadcast %cst_43 : f32 to vector<8x128xf32>
    %40 = arith.addf %39, %38 : vector<8x128xf32>
    %cst_44 = arith.constant 1.000000e+00 : f32
    %41 = vector.broadcast %cst_44 : f32 to vector<8x128xf32>
    %42 = arith.divf %41, %40 : vector<8x128xf32>
    %cst_45 = arith.constant dense<0.000000e+00> : vector<8x128xf32>
    %43 = tpu.matmul %19, %22, %cst_45 {dimension_numbers = #tpu.dot_dimension_numbers<[1], [0], [0], [1], [0, 0, 1, 1], [], []>} : vector<8x128xf32>, vector<128x128xf32>, vector<8x128xf32> -> vector<8x128xf32>
    %cst_46 = arith.constant dense<0.000000e+00> : vector<8x128xf32>
    %44 = tpu.matmul %20, %25, %cst_46 {dimension_numbers = #tpu.dot_dimension_numbers<[1], [0], [0], [1], [0, 0, 1, 1], [], []>} : vector<8x128xf32>, vector<128x128xf32>, vector<8x128xf32> -> vector<8x128xf32>
    %45 = arith.addf %43, %44 : vector<8x128xf32>
    %46 = vector.broadcast %28 : vector<1x128xf32> to vector<8x128xf32>
    %47 = arith.addf %45, %46 : vector<8x128xf32>
    %cst_47 = arith.constant 0.000000e+00 : f32
    %48 = vector.broadcast %cst_47 : f32 to vector<8x128xf32>
    %49 = arith.subf %48, %47 : vector<8x128xf32>
    %50 = math.exp %49 : vector<8x128xf32>
    %cst_48 = arith.constant 1.000000e+00 : f32
    %51 = vector.broadcast %cst_48 : f32 to vector<8x128xf32>
    %52 = arith.addf %51, %50 : vector<8x128xf32>
    %cst_49 = arith.constant 1.000000e+00 : f32
    %53 = vector.broadcast %cst_49 : f32 to vector<8x128xf32>
    %54 = arith.divf %53, %52 : vector<8x128xf32>
    %cst_50 = arith.constant dense<0.000000e+00> : vector<8x128xf32>
    %55 = tpu.matmul %19, %23, %cst_50 {dimension_numbers = #tpu.dot_dimension_numbers<[1], [0], [0], [1], [0, 0, 1, 1], [], []>} : vector<8x128xf32>, vector<128x128xf32>, vector<8x128xf32> -> vector<8x128xf32>
    %56 = vector.broadcast %29 : vector<1x128xf32> to vector<8x128xf32>
    %57 = arith.addf %55, %56 : vector<8x128xf32>
    %cst_51 = arith.constant dense<0.000000e+00> : vector<8x128xf32>
    %58 = tpu.matmul %20, %26, %cst_51 {dimension_numbers = #tpu.dot_dimension_numbers<[1], [0], [0], [1], [0, 0, 1, 1], [], []>} : vector<8x128xf32>, vector<128x128xf32>, vector<8x128xf32> -> vector<8x128xf32>
    %59 = vector.broadcast %30 : vector<1x128xf32> to vector<8x128xf32>
    %60 = arith.addf %58, %59 : vector<8x128xf32>
    %61 = arith.mulf %42, %60 : vector<8x128xf32>
    %62 = arith.addf %57, %61 : vector<8x128xf32>
    %63 = math.tanh %62 : vector<8x128xf32>
    %cst_52 = arith.constant 1.000000e+00 : f32
    %64 = vector.broadcast %cst_52 : f32 to vector<8x128xf32>
    %65 = arith.subf %64, %54 : vector<8x128xf32>
    %66 = arith.mulf %65, %63 : vector<8x128xf32>
    %67 = arith.mulf %54, %20 : vector<8x128xf32>
    %68 = arith.addf %66, %67 : vector<8x128xf32>
    %c0_53 = arith.constant 0 : index
    %c0_54 = arith.constant 0 : index
    %69 = vector.load %arg57[%c0_53, %c0_54] : memref<8x128xf32, #tpu.memory_space<vmem>>, vector<8x128xf32>
    tpu.vector_store %arg57[%c0_53, %c0_54], %68 {strides = array<i32>} : memref<8x128xf32, #tpu.memory_space<vmem>>, vector<8x128xf32>,
    %c0_55 = arith.constant 0 : index
    %c0_56 = arith.constant 0 : index
    %70 = vector.load %arg21[%c0_55, %c0_56] : memref<128x128xf32, #tpu.memory_space<vmem>>, vector<128x128xf32>
    %cst_57 = arith.constant dense<0.000000e+00> : vector<8x128xf32>
    %71 = tpu.matmul %68, %70, %cst_57 {dimension_numbers = #tpu.dot_dimension_numbers<[1], [0], [0], [1], [0, 0, 1, 1], [], []>} : vector<8x128xf32>, vector<128x128xf32>, vector<8x128xf32> -> vector<8x128xf32>
    %c0_58 = arith.constant 0 : index
    %c0_59 = arith.constant 0 : index
    %72 = vector.load %arg22[%c0_58, %c0_59] : memref<1x128xf32, #tpu.memory_space<vmem>>, vector<1x128xf32>
    %73 = vector.broadcast %72 : vector<1x128xf32> to vector<8x128xf32>
    %74 = arith.addf %71, %73 : vector<8x128xf32>
    %cst_60 = arith.constant 0.000000e+00 : f32
    %75 = vector.broadcast %cst_60 : f32 to vector<8x128xf32>
    %76 = arith.maximumf %74, %75 : vector<8x128xf32>
    %c0_61 = arith.constant 0 : index
    %c0_62 = arith.constant 0 : index
    %77 = vector.load %arg23[%c0_61, %c0_62] : memref<128x128xf32, #tpu.memory_space<vmem>>, vector<128x128xf32>
    %cst_63 = arith.constant dense<0.000000e+00> : vector<8x128xf32>
    %78 = tpu.matmul %76, %77, %cst_63 {dimension_numbers = #tpu.dot_dimension_numbers<[1], [0], [0], [1], [0, 0, 1, 1], [], []>} : vector<8x128xf32>, vector<128x128xf32>, vector<8x128xf32> -> vector<8x128xf32>
    %c0_64 = arith.constant 0 : index
    %c0_65 = arith.constant 0 : index
    %79 = vector.load %arg24[%c0_64, %c0_65] : memref<1x128xf32, #tpu.memory_space<vmem>>, vector<1x128xf32>
    %80 = vector.broadcast %79 : vector<1x128xf32> to vector<8x128xf32>
    %81 = arith.addf %78, %80 : vector<8x128xf32>
    %c0_66 = arith.constant 0 : index
    %c0_67 = arith.constant 0 : index
    %82 = vector.load %arg25[%c0_66, %c0_67] : memref<128x128xf32, #tpu.memory_space<vmem>>, vector<128x128xf32>
    %cst_68 = arith.constant dense<0.000000e+00> : vector<8x128xf32>
    %83 = tpu.matmul %76, %82, %cst_68 {dimension_numbers = #tpu.dot_dimension_numbers<[1], [0], [0], [1], [0, 0, 1, 1], [], []>} : vector<8x128xf32>, vector<128x128xf32>, vector<8x128xf32> -> vector<8x128xf32>
    %c0_69 = arith.constant 0 : index
    %c0_70 = arith.constant 0 : index
    %84 = vector.load %arg26[%c0_69, %c0_70] : memref<1x128xf32, #tpu.memory_space<vmem>>, vector<1x128xf32>
    %85 = vector.broadcast %84 : vector<1x128xf32> to vector<8x128xf32>
    %86 = arith.addf %83, %85 : vector<8x128xf32>
    %cst_71 = arith.constant 0.000000e+00 : f32
    %87 = vector.broadcast %cst_71 : f32 to vector<8x128xf32>
    %88 = arith.maximumf %86, %87 : vector<8x128xf32>
    %89 = math.absf %86 : vector<8x128xf32>
    %cst_72 = arith.constant 0.000000e+00 : f32
    %90 = vector.broadcast %cst_72 : f32 to vector<8x128xf32>
    %91 = arith.subf %90, %89 : vector<8x128xf32>
    %92 = math.exp %91 : vector<8x128xf32>
    %cst_73 = arith.constant 1.000000e+00 : f32
    %93 = vector.broadcast %cst_73 : f32 to vector<8x128xf32>
    %94 = arith.addf %93, %92 : vector<8x128xf32>
    %95 = math.log %94 : vector<8x128xf32>
    %96 = arith.addf %88, %95 : vector<8x128xf32>
    %cst_74 = arith.constant 1.000000e-01 : f32
    %97 = vector.broadcast %cst_74 : f32 to vector<8x128xf32>
    %98 = arith.addf %96, %97 : vector<8x128xf32>
    %c0_75 = arith.constant 0 : index
    %c0_76 = arith.constant 0 : index
    %c0_77 = arith.constant 0 : index
    %99 = vector.load %arg3[%c0_75, %c0_76, %c0_77] : memref<1x8x128xf32, #tpu.memory_space<vmem>>, vector<1x8x128xf32>
    %100 = vector.shape_cast %99 : vector<1x8x128xf32> to vector<8x128xf32>
    %101 = arith.mulf %98, %100 : vector<8x128xf32>
    %102 = arith.addf %81, %101 : vector<8x128xf32>
    %c0_78 = arith.constant 0 : index
    %c0_79 = arith.constant 0 : index
    %103 = vector.load %arg55[%c0_78, %c0_79] : memref<8x128xf32, #tpu.memory_space<vmem>>, vector<8x128xf32>
    tpu.vector_store %arg55[%c0_78, %c0_79], %102 {strides = array<i32>} : memref<8x128xf32, #tpu.memory_space<vmem>>, vector<8x128xf32>,
    %c0_80 = arith.constant 0 : index
    %c0_81 = arith.constant 0 : index
    %c0_82 = arith.constant 0 : index
    %104 = vector.load %arg47[%c0_80, %c0_81, %c0_82] : memref<1x8x128xf32, #tpu.memory_space<vmem>>, vector<1x8x128xf32>
    %105 = vector.shape_cast %104 : vector<1x8x128xf32> to vector<8x128xf32>
    %106 = vector.shape_cast %68 : vector<8x128xf32> to vector<1x8x128xf32>
    tpu.vector_store %arg47[%c0_80, %c0_81, %c0_82], %106 {strides = array<i32>} : memref<1x8x128xf32, #tpu.memory_space<vmem>>, vector<1x8x128xf32>,
    %c0_83 = arith.constant 0 : index
    %c0_84 = arith.constant 0 : index
    %c0_85 = arith.constant 0 : index
    %107 = vector.load %arg53[%c0_83, %c0_84, %c0_85] : memref<1x8x128xf32, #tpu.memory_space<vmem>>, vector<1x8x128xf32>
    %108 = vector.shape_cast %107 : vector<1x8x128xf32> to vector<8x128xf32>
    %109 = vector.shape_cast %81 : vector<8x128xf32> to vector<1x8x128xf32>
    tpu.vector_store %arg53[%c0_83, %c0_84, %c0_85], %109 {strides = array<i32>} : memref<1x8x128xf32, #tpu.memory_space<vmem>>, vector<1x8x128xf32>,
    %c0_86 = arith.constant 0 : index
    %c0_87 = arith.constant 0 : index
    %c0_88 = arith.constant 0 : index
    %110 = vector.load %arg54[%c0_86, %c0_87, %c0_88] : memref<1x8x128xf32, #tpu.memory_space<vmem>>, vector<1x8x128xf32>
    %111 = vector.shape_cast %110 : vector<1x8x128xf32> to vector<8x128xf32>
    %112 = vector.shape_cast %98 : vector<8x128xf32> to vector<1x8x128xf32>
    tpu.vector_store %arg54[%c0_86, %c0_87, %c0_88], %112 {strides = array<i32>} : memref<1x8x128xf32, #tpu.memory_space<vmem>>, vector<1x8x128xf32>,
    %c0_89 = arith.constant 0 : index
    %c0_90 = arith.constant 0 : index
    %c0_91 = arith.constant 0 : index
    %113 = vector.load %arg52[%c0_89, %c0_90, %c0_91] : memref<1x8x128xf32, #tpu.memory_space<vmem>>, vector<1x8x128xf32>
    %114 = vector.shape_cast %113 : vector<1x8x128xf32> to vector<8x128xf32>
    %115 = vector.shape_cast %102 : vector<8x128xf32> to vector<1x8x128xf32>
    tpu.vector_store %arg52[%c0_89, %c0_90, %c0_91], %115 {strides = array<i32>} : memref<1x8x128xf32, #tpu.memory_space<vmem>>, vector<1x8x128xf32>,
    %c0_92 = arith.constant 0 : index
    %c0_93 = arith.constant 0 : index
    %c0_94 = arith.constant 0 : index
    %116 = vector.load %arg2[%c0_92, %c0_93, %c0_94] : memref<1x8x128xf32, #tpu.memory_space<vmem>>, vector<1x8x128xf32>
    %117 = vector.shape_cast %116 : vector<1x8x128xf32> to vector<8x128xf32>
    %c0_95 = arith.constant 0 : index
    %c0_96 = arith.constant 0 : index
    %118 = vector.load %arg27[%c0_95, %c0_96] : memref<128x128xf32, #tpu.memory_space<vmem>>, vector<128x128xf32>
    %cst_97 = arith.constant dense<0.000000e+00> : vector<8x128xf32>
    %119 = tpu.matmul %117, %118, %cst_97 {dimension_numbers = #tpu.dot_dimension_numbers<[1], [0], [0], [1], [0, 0, 1, 1], [], []>} : vector<8x128xf32>, vector<128x128xf32>, vector<8x128xf32> -> vector<8x128xf32>
    %c0_98 = arith.constant 0 : index
    %c0_99 = arith.constant 0 : index
    %120 = vector.load %arg28[%c0_98, %c0_99] : memref<128x128xf32, #tpu.memory_space<vmem>>, vector<128x128xf32>
    %cst_100 = arith.constant dense<0.000000e+00> : vector<8x128xf32>
    %121 = tpu.matmul %3, %120, %cst_100 {dimension_numbers = #tpu.dot_dimension_numbers<[1], [0], [0], [1], [0, 0, 1, 1], [], []>} : vector<8x128xf32>, vector<128x128xf32>, vector<8x128xf32> -> vector<8x128xf32>
    %122 = arith.addf %119, %121 : vector<8x128xf32>
    %c0_101 = arith.constant 0 : index
    %c0_102 = arith.constant 0 : index
    %123 = vector.load %arg29[%c0_101, %c0_102] : memref<128x128xf32, #tpu.memory_space<vmem>>, vector<128x128xf32>
    %cst_103 = arith.constant dense<0.000000e+00> : vector<8x128xf32>
    %124 = tpu.matmul %4, %123, %cst_103 {dimension_numbers = #tpu.dot_dimension_numbers<[1], [0], [0], [1], [0, 0, 1, 1], [], []>} : vector<8x128xf32>, vector<128x128xf32>, vector<8x128xf32> -> vector<8x128xf32>
    %125 = arith.addf %122, %124 : vector<8x128xf32>
    %c0_104 = arith.constant 0 : index
    %c0_105 = arith.constant 0 : index
    %126 = vector.load %arg30[%c0_104, %c0_105] : memref<1x128xf32, #tpu.memory_space<vmem>>, vector<1x128xf32>
    %127 = vector.broadcast %126 : vector<1x128xf32> to vector<8x128xf32>
    %128 = arith.addf %125, %127 : vector<8x128xf32>
    %cst_106 = arith.constant 0.000000e+00 : f32
    %129 = vector.broadcast %cst_106 : f32 to vector<8x128xf32>
    %130 = arith.maximumf %128, %129 : vector<8x128xf32>
    %c0_107 = arith.constant 0 : index
    %c0_108 = arith.constant 0 : index
    %131 = vector.load %arg58[%c0_107, %c0_108] : memref<8x128xf32, #tpu.memory_space<vmem>>, vector<8x128xf32>
    %c0_109 = arith.constant 0 : index
    %c0_110 = arith.constant 0 : index
    %132 = vector.load %arg31[%c0_109, %c0_110] : memref<128x128xf32, #tpu.memory_space<vmem>>, vector<128x128xf32>
    %c0_111 = arith.constant 0 : index
    %c0_112 = arith.constant 0 : index
    %133 = vector.load %arg32[%c0_111, %c0_112] : memref<128x128xf32, #tpu.memory_space<vmem>>, vector<128x128xf32>
    %c0_113 = arith.constant 0 : index
    %c0_114 = arith.constant 0 : index
    %134 = vector.load %arg33[%c0_113, %c0_114] : memref<128x128xf32, #tpu.memory_space<vmem>>, vector<128x128xf32>
    %c0_115 = arith.constant 0 : index
    %c0_116 = arith.constant 0 : index
    %135 = vector.load %arg34[%c0_115, %c0_116] : memref<128x128xf32, #tpu.memory_space<vmem>>, vector<128x128xf32>
    %c0_117 = arith.constant 0 : index
    %c0_118 = arith.constant 0 : index
    %136 = vector.load %arg35[%c0_117, %c0_118] : memref<128x128xf32, #tpu.memory_space<vmem>>, vector<128x128xf32>
    %c0_119 = arith.constant 0 : index
    %c0_120 = arith.constant 0 : index
    %137 = vector.load %arg36[%c0_119, %c0_120] : memref<128x128xf32, #tpu.memory_space<vmem>>, vector<128x128xf32>
    %c0_121 = arith.constant 0 : index
    %c0_122 = arith.constant 0 : index
    %138 = vector.load %arg37[%c0_121, %c0_122] : memref<1x128xf32, #tpu.memory_space<vmem>>, vector<1x128xf32>
    %c0_123 = arith.constant 0 : index
    %c0_124 = arith.constant 0 : index
    %139 = vector.load %arg38[%c0_123, %c0_124] : memref<1x128xf32, #tpu.memory_space<vmem>>, vector<1x128xf32>
    %c0_125 = arith.constant 0 : index
    %c0_126 = arith.constant 0 : index
    %140 = vector.load %arg39[%c0_125, %c0_126] : memref<1x128xf32, #tpu.memory_space<vmem>>, vector<1x128xf32>
    %c0_127 = arith.constant 0 : index
    %c0_128 = arith.constant 0 : index
    %141 = vector.load %arg40[%c0_127, %c0_128] : memref<1x128xf32, #tpu.memory_space<vmem>>, vector<1x128xf32>
    %cst_129 = arith.constant dense<0.000000e+00> : vector<8x128xf32>
    %142 = tpu.matmul %130, %132, %cst_129 {dimension_numbers = #tpu.dot_dimension_numbers<[1], [0], [0], [1], [0, 0, 1, 1], [], []>} : vector<8x128xf32>, vector<128x128xf32>, vector<8x128xf32> -> vector<8x128xf32>
    %cst_130 = arith.constant dense<0.000000e+00> : vector<8x128xf32>
    %143 = tpu.matmul %131, %135, %cst_130 {dimension_numbers = #tpu.dot_dimension_numbers<[1], [0], [0], [1], [0, 0, 1, 1], [], []>} : vector<8x128xf32>, vector<128x128xf32>, vector<8x128xf32> -> vector<8x128xf32>
    %144 = arith.addf %142, %143 : vector<8x128xf32>
    %145 = vector.broadcast %138 : vector<1x128xf32> to vector<8x128xf32>
    %146 = arith.addf %144, %145 : vector<8x128xf32>
    %cst_131 = arith.constant 0.000000e+00 : f32
    %147 = vector.broadcast %cst_131 : f32 to vector<8x128xf32>
    %148 = arith.subf %147, %146 : vector<8x128xf32>
    %149 = math.exp %148 : vector<8x128xf32>
    %cst_132 = arith.constant 1.000000e+00 : f32
    %150 = vector.broadcast %cst_132 : f32 to vector<8x128xf32>
    %151 = arith.addf %150, %149 : vector<8x128xf32>
    %cst_133 = arith.constant 1.000000e+00 : f32
    %152 = vector.broadcast %cst_133 : f32 to vector<8x128xf32>
    %153 = arith.divf %152, %151 : vector<8x128xf32>
    %cst_134 = arith.constant dense<0.000000e+00> : vector<8x128xf32>
    %154 = tpu.matmul %130, %133, %cst_134 {dimension_numbers = #tpu.dot_dimension_numbers<[1], [0], [0], [1], [0, 0, 1, 1], [], []>} : vector<8x128xf32>, vector<128x128xf32>, vector<8x128xf32> -> vector<8x128xf32>
    %cst_135 = arith.constant dense<0.000000e+00> : vector<8x128xf32>
    %155 = tpu.matmul %131, %136, %cst_135 {dimension_numbers = #tpu.dot_dimension_numbers<[1], [0], [0], [1], [0, 0, 1, 1], [], []>} : vector<8x128xf32>, vector<128x128xf32>, vector<8x128xf32> -> vector<8x128xf32>
    %156 = arith.addf %154, %155 : vector<8x128xf32>
    %157 = vector.broadcast %139 : vector<1x128xf32> to vector<8x128xf32>
    %158 = arith.addf %156, %157 : vector<8x128xf32>
    %cst_136 = arith.constant 0.000000e+00 : f32
    %159 = vector.broadcast %cst_136 : f32 to vector<8x128xf32>
    %160 = arith.subf %159, %158 : vector<8x128xf32>
    %161 = math.exp %160 : vector<8x128xf32>
    %cst_137 = arith.constant 1.000000e+00 : f32
    %162 = vector.broadcast %cst_137 : f32 to vector<8x128xf32>
    %163 = arith.addf %162, %161 : vector<8x128xf32>
    %cst_138 = arith.constant 1.000000e+00 : f32
    %164 = vector.broadcast %cst_138 : f32 to vector<8x128xf32>
    %165 = arith.divf %164, %163 : vector<8x128xf32>
    %cst_139 = arith.constant dense<0.000000e+00> : vector<8x128xf32>
    %166 = tpu.matmul %130, %134, %cst_139 {dimension_numbers = #tpu.dot_dimension_numbers<[1], [0], [0], [1], [0, 0, 1, 1], [], []>} : vector<8x128xf32>, vector<128x128xf32>, vector<8x128xf32> -> vector<8x128xf32>
    %167 = vector.broadcast %140 : vector<1x128xf32> to vector<8x128xf32>
    %168 = arith.addf %166, %167 : vector<8x128xf32>
    %cst_140 = arith.constant dense<0.000000e+00> : vector<8x128xf32>
    %169 = tpu.matmul %131, %137, %cst_140 {dimension_numbers = #tpu.dot_dimension_numbers<[1], [0], [0], [1], [0, 0, 1, 1], [], []>} : vector<8x128xf32>, vector<128x128xf32>, vector<8x128xf32> -> vector<8x128xf32>
    %170 = vector.broadcast %141 : vector<1x128xf32> to vector<8x128xf32>
    %171 = arith.addf %169, %170 : vector<8x128xf32>
    %172 = arith.mulf %153, %171 : vector<8x128xf32>
    %173 = arith.addf %168, %172 : vector<8x128xf32>
    %174 = math.tanh %173 : vector<8x128xf32>
    %cst_141 = arith.constant 1.000000e+00 : f32
    %175 = vector.broadcast %cst_141 : f32 to vector<8x128xf32>
    %176 = arith.subf %175, %165 : vector<8x128xf32>
    %177 = arith.mulf %176, %174 : vector<8x128xf32>
    %178 = arith.mulf %165, %131 : vector<8x128xf32>
    %179 = arith.addf %177, %178 : vector<8x128xf32>
    %c0_142 = arith.constant 0 : index
    %c0_143 = arith.constant 0 : index
    %180 = vector.load %arg58[%c0_142, %c0_143] : memref<8x128xf32, #tpu.memory_space<vmem>>, vector<8x128xf32>
    tpu.vector_store %arg58[%c0_142, %c0_143], %179 {strides = array<i32>} : memref<8x128xf32, #tpu.memory_space<vmem>>, vector<8x128xf32>,
    %c0_144 = arith.constant 0 : index
    %c0_145 = arith.constant 0 : index
    %181 = vector.load %arg41[%c0_144, %c0_145] : memref<128x128xf32, #tpu.memory_space<vmem>>, vector<128x128xf32>
    %cst_146 = arith.constant dense<0.000000e+00> : vector<8x128xf32>
    %182 = tpu.matmul %179, %181, %cst_146 {dimension_numbers = #tpu.dot_dimension_numbers<[1], [0], [0], [1], [0, 0, 1, 1], [], []>} : vector<8x128xf32>, vector<128x128xf32>, vector<8x128xf32> -> vector<8x128xf32>
    %c0_147 = arith.constant 0 : index
    %c0_148 = arith.constant 0 : index
    %183 = vector.load %arg42[%c0_147, %c0_148] : memref<1x128xf32, #tpu.memory_space<vmem>>, vector<1x128xf32>
    %184 = vector.broadcast %183 : vector<1x128xf32> to vector<8x128xf32>
    %185 = arith.addf %182, %184 : vector<8x128xf32>
    %cst_149 = arith.constant 0.000000e+00 : f32
    %186 = vector.broadcast %cst_149 : f32 to vector<8x128xf32>
    %187 = arith.maximumf %185, %186 : vector<8x128xf32>
    %c0_150 = arith.constant 0 : index
    %c0_151 = arith.constant 0 : index
    %188 = vector.load %arg43[%c0_150, %c0_151] : memref<128x128xf32, #tpu.memory_space<vmem>>, vector<128x128xf32>
    %cst_152 = arith.constant dense<0.000000e+00> : vector<8x128xf32>
    %189 = tpu.matmul %187, %188, %cst_152 {dimension_numbers = #tpu.dot_dimension_numbers<[1], [0], [0], [1], [0, 0, 1, 1], [], []>} : vector<8x128xf32>, vector<128x128xf32>, vector<8x128xf32> -> vector<8x128xf32>
    %c0_153 = arith.constant 0 : index
    %c0_154 = arith.constant 0 : index
    %190 = vector.load %arg44[%c0_153, %c0_154] : memref<1x128xf32, #tpu.memory_space<vmem>>, vector<1x128xf32>
    %191 = vector.broadcast %190 : vector<1x128xf32> to vector<8x128xf32>
    %192 = arith.addf %189, %191 : vector<8x128xf32>
    %c0_155 = arith.constant 0 : index
    %c0_156 = arith.constant 0 : index
    %193 = vector.load %arg45[%c0_155, %c0_156] : memref<128x128xf32, #tpu.memory_space<vmem>>, vector<128x128xf32>
    %cst_157 = arith.constant dense<0.000000e+00> : vector<8x128xf32>
    %194 = tpu.matmul %187, %193, %cst_157 {dimension_numbers = #tpu.dot_dimension_numbers<[1], [0], [0], [1], [0, 0, 1, 1], [], []>} : vector<8x128xf32>, vector<128x128xf32>, vector<8x128xf32> -> vector<8x128xf32>
    %c0_158 = arith.constant 0 : index
    %c0_159 = arith.constant 0 : index
    %195 = vector.load %arg46[%c0_158, %c0_159] : memref<1x128xf32, #tpu.memory_space<vmem>>, vector<1x128xf32>
    %196 = vector.broadcast %195 : vector<1x128xf32> to vector<8x128xf32>
    %197 = arith.addf %194, %196 : vector<8x128xf32>
    %cst_160 = arith.constant 0.000000e+00 : f32
    %198 = vector.broadcast %cst_160 : f32 to vector<8x128xf32>
    %199 = arith.maximumf %197, %198 : vector<8x128xf32>
    %200 = math.absf %197 : vector<8x128xf32>
    %cst_161 = arith.constant 0.000000e+00 : f32
    %201 = vector.broadcast %cst_161 : f32 to vector<8x128xf32>
    %202 = arith.subf %201, %200 : vector<8x128xf32>
    %203 = math.exp %202 : vector<8x128xf32>
    %cst_162 = arith.constant 1.000000e+00 : f32
    %204 = vector.broadcast %cst_162 : f32 to vector<8x128xf32>
    %205 = arith.addf %204, %203 : vector<8x128xf32>
    %206 = math.log %205 : vector<8x128xf32>
    %207 = arith.addf %199, %206 : vector<8x128xf32>
    %cst_163 = arith.constant 1.000000e-01 : f32
    %208 = vector.broadcast %cst_163 : f32 to vector<8x128xf32>
    %209 = arith.addf %207, %208 : vector<8x128xf32>
    %c0_164 = arith.constant 0 : index
    %c0_165 = arith.constant 0 : index
    %c0_166 = arith.constant 0 : index
    %210 = vector.load %arg4[%c0_164, %c0_165, %c0_166] : memref<1x8x128xf32, #tpu.memory_space<vmem>>, vector<1x8x128xf32>
    %211 = vector.shape_cast %210 : vector<1x8x128xf32> to vector<8x128xf32>
    %212 = arith.mulf %209, %211 : vector<8x128xf32>
    %213 = arith.addf %192, %212 : vector<8x128xf32>
    %c0_167 = arith.constant 0 : index
    %c0_168 = arith.constant 0 : index
    %214 = vector.load %arg56[%c0_167, %c0_168] : memref<8x128xf32, #tpu.memory_space<vmem>>, vector<8x128xf32>
    tpu.vector_store %arg56[%c0_167, %c0_168], %213 {strides = array<i32>} : memref<8x128xf32, #tpu.memory_space<vmem>>, vector<8x128xf32>,
    %c0_169 = arith.constant 0 : index
    %c0_170 = arith.constant 0 : index
    %c0_171 = arith.constant 0 : index
    %215 = vector.load %arg48[%c0_169, %c0_170, %c0_171] : memref<1x8x128xf32, #tpu.memory_space<vmem>>, vector<1x8x128xf32>
    %216 = vector.shape_cast %215 : vector<1x8x128xf32> to vector<8x128xf32>
    %217 = vector.shape_cast %179 : vector<8x128xf32> to vector<1x8x128xf32>
    tpu.vector_store %arg48[%c0_169, %c0_170, %c0_171], %217 {strides = array<i32>} : memref<1x8x128xf32, #tpu.memory_space<vmem>>, vector<1x8x128xf32>,
    %c0_172 = arith.constant 0 : index
    %c0_173 = arith.constant 0 : index
    %c0_174 = arith.constant 0 : index
    %218 = vector.load %arg50[%c0_172, %c0_173, %c0_174] : memref<1x8x128xf32, #tpu.memory_space<vmem>>, vector<1x8x128xf32>
    %219 = vector.shape_cast %218 : vector<1x8x128xf32> to vector<8x128xf32>
    %220 = vector.shape_cast %192 : vector<8x128xf32> to vector<1x8x128xf32>
    tpu.vector_store %arg50[%c0_172, %c0_173, %c0_174], %220 {strides = array<i32>} : memref<1x8x128xf32, #tpu.memory_space<vmem>>, vector<1x8x128xf32>,
    %c0_175 = arith.constant 0 : index
    %c0_176 = arith.constant 0 : index
    %c0_177 = arith.constant 0 : index
    %221 = vector.load %arg51[%c0_175, %c0_176, %c0_177] : memref<1x8x128xf32, #tpu.memory_space<vmem>>, vector<1x8x128xf32>
    %222 = vector.shape_cast %221 : vector<1x8x128xf32> to vector<8x128xf32>
    %223 = vector.shape_cast %209 : vector<8x128xf32> to vector<1x8x128xf32>
    tpu.vector_store %arg51[%c0_175, %c0_176, %c0_177], %223 {strides = array<i32>} : memref<1x8x128xf32, #tpu.memory_space<vmem>>, vector<1x8x128xf32>,
    %c0_178 = arith.constant 0 : index
    %c0_179 = arith.constant 0 : index
    %c0_180 = arith.constant 0 : index
    %224 = vector.load %arg49[%c0_178, %c0_179, %c0_180] : memref<1x8x128xf32, #tpu.memory_space<vmem>>, vector<1x8x128xf32>
    %225 = vector.shape_cast %224 : vector<1x8x128xf32> to vector<8x128xf32>
    %226 = vector.shape_cast %213 : vector<8x128xf32> to vector<1x8x128xf32>
    tpu.vector_store %arg49[%c0_178, %c0_179, %c0_180], %226 {strides = array<i32>} : memref<1x8x128xf32, #tpu.memory_space<vmem>>, vector<1x8x128xf32>,
    return
  }
  func.func @transform_0(%arg0: i32) -> (i32, i32, i32) {
    %c0_i32 = arith.constant 0 : i32
    %c0_i32_0 = arith.constant 0 : i32
    %c0_i32_1 = arith.constant 0 : i32
    return %arg0, %c0_i32, %c0_i32_0 : i32, i32, i32
  }
  func.func @transform_1(%arg0: i32) -> (i32, i32, i32) {
    %c0_i32 = arith.constant 0 : i32
    %c0_i32_0 = arith.constant 0 : i32
    %c0_i32_1 = arith.constant 0 : i32
    return %arg0, %c0_i32, %c0_i32_0 : i32, i32, i32
  }
  func.func @transform_2(%arg0: i32) -> (i32, i32, i32) {
    %c0_i32 = arith.constant 0 : i32
    %c0_i32_0 = arith.constant 0 : i32
    %c0_i32_1 = arith.constant 0 : i32
    return %arg0, %c0_i32, %c0_i32_0 : i32, i32, i32
  }
  func.func @transform_3(%arg0: i32) -> (i32, i32, i32) {
    %c0_i32 = arith.constant 0 : i32
    %c0_i32_0 = arith.constant 0 : i32
    %c0_i32_1 = arith.constant 0 : i32
    return %arg0, %c0_i32, %c0_i32_0 : i32, i32, i32
  }
  func.func @transform_4(%arg0: i32) -> (i32, i32) {
    %c0_i32 = arith.constant 0 : i32
    %c0_i32_0 = arith.constant 0 : i32
    %c0_i32_1 = arith.constant 0 : i32
    return %c0_i32, %c0_i32_0 : i32, i32
  }
  func.func @transform_5(%arg0: i32) -> (i32, i32) {
    %c0_i32 = arith.constant 0 : i32
    %c0_i32_0 = arith.constant 0 : i32
    %c0_i32_1 = arith.constant 0 : i32
    return %c0_i32, %c0_i32_0 : i32, i32
  }
  func.func @transform_6(%arg0: i32) -> (i32, i32) {
    %c0_i32 = arith.constant 0 : i32
    %c0_i32_0 = arith.constant 0 : i32
    %c0_i32_1 = arith.constant 0 : i32
    return %c0_i32, %c0_i32_0 : i32, i32
  }
  func.func @transform_7(%arg0: i32) -> (i32, i32) {
    %c0_i32 = arith.constant 0 : i32
    %c0_i32_0 = arith.constant 0 : i32
    %c0_i32_1 = arith.constant 0 : i32
    return %c0_i32, %c0_i32_0 : i32, i32
  }
  func.func @transform_8(%arg0: i32) -> (i32, i32) {
    %c0_i32 = arith.constant 0 : i32
    %c0_i32_0 = arith.constant 0 : i32
    %c0_i32_1 = arith.constant 0 : i32
    return %c0_i32, %c0_i32_0 : i32, i32
  }
  func.func @transform_9(%arg0: i32) -> (i32, i32) {
    %c0_i32 = arith.constant 0 : i32
    %c0_i32_0 = arith.constant 0 : i32
    %c0_i32_1 = arith.constant 0 : i32
    return %c0_i32, %c0_i32_0 : i32, i32
  }
  func.func @transform_10(%arg0: i32) -> (i32, i32) {
    %c0_i32 = arith.constant 0 : i32
    %c0_i32_0 = arith.constant 0 : i32
    %c0_i32_1 = arith.constant 0 : i32
    return %c0_i32, %c0_i32_0 : i32, i32
  }
  func.func @transform_11(%arg0: i32) -> (i32, i32) {
    %c0_i32 = arith.constant 0 : i32
    %c0_i32_0 = arith.constant 0 : i32
    %c0_i32_1 = arith.constant 0 : i32
    return %c0_i32, %c0_i32_0 : i32, i32
  }
  func.func @transform_12(%arg0: i32) -> (i32, i32) {
    %c0_i32 = arith.constant 0 : i32
    %c0_i32_0 = arith.constant 0 : i32
    %c0_i32_1 = arith.constant 0 : i32
    return %c0_i32, %c0_i32_0 : i32, i32
  }
  func.func @transform_13(%arg0: i32) -> (i32, i32) {
    %c0_i32 = arith.constant 0 : i32
    %c0_i32_0 = arith.constant 0 : i32
    %c0_i32_1 = arith.constant 0 : i32
    return %c0_i32, %c0_i32_0 : i32, i32
  }
  func.func @transform_14(%arg0: i32) -> (i32, i32) {
    %c0_i32 = arith.constant 0 : i32
    %c0_i32_0 = arith.constant 0 : i32
    %c0_i32_1 = arith.constant 0 : i32
    return %c0_i32, %c0_i32_0 : i32, i32
  }
  func.func @transform_15(%arg0: i32) -> (i32, i32) {
    %c0_i32 = arith.constant 0 : i32
    %c0_i32_0 = arith.constant 0 : i32
    %c0_i32_1 = arith.constant 0 : i32
    return %c0_i32, %c0_i32_0 : i32, i32
  }
  func.func @transform_16(%arg0: i32) -> (i32, i32) {
    %c0_i32 = arith.constant 0 : i32
    %c0_i32_0 = arith.constant 0 : i32
    %c0_i32_1 = arith.constant 0 : i32
    return %c0_i32, %c0_i32_0 : i32, i32
  }
  func.func @transform_17(%arg0: i32) -> (i32, i32) {
    %c0_i32 = arith.constant 0 : i32
    %c0_i32_0 = arith.constant 0 : i32
    %c0_i32_1 = arith.constant 0 : i32
    return %c0_i32, %c0_i32_0 : i32, i32
  }
  func.func @transform_18(%arg0: i32) -> (i32, i32) {
    %c0_i32 = arith.constant 0 : i32
    %c0_i32_0 = arith.constant 0 : i32
    %c0_i32_1 = arith.constant 0 : i32
    return %c0_i32, %c0_i32_0 : i32, i32
  }
  func.func @transform_19(%arg0: i32) -> (i32, i32) {
    %c0_i32 = arith.constant 0 : i32
    %c0_i32_0 = arith.constant 0 : i32
    %c0_i32_1 = arith.constant 0 : i32
    return %c0_i32, %c0_i32_0 : i32, i32
  }
  func.func @transform_20(%arg0: i32) -> (i32, i32) {
    %c0_i32 = arith.constant 0 : i32
    %c0_i32_0 = arith.constant 0 : i32
    %c0_i32_1 = arith.constant 0 : i32
    return %c0_i32, %c0_i32_0 : i32, i32
  }
  func.func @transform_21(%arg0: i32) -> (i32, i32) {
    %c0_i32 = arith.constant 0 : i32
    %c0_i32_0 = arith.constant 0 : i32
    %c0_i32_1 = arith.constant 0 : i32
    return %c0_i32, %c0_i32_0 : i32, i32
  }
  func.func @transform_22(%arg0: i32) -> (i32, i32) {
    %c0_i32 = arith.constant 0 : i32
    %c0_i32_0 = arith.constant 0 : i32
    %c0_i32_1 = arith.constant 0 : i32
    return %c0_i32, %c0_i32_0 : i32, i32
  }
  func.func @transform_23(%arg0: i32) -> (i32, i32) {
    %c0_i32 = arith.constant 0 : i32
    %c0_i32_0 = arith.constant 0 : i32
    %c0_i32_1 = arith.constant 0 : i32
    return %c0_i32, %c0_i32_0 : i32, i32
  }
  func.func @transform_24(%arg0: i32) -> (i32, i32) {
    %c0_i32 = arith.constant 0 : i32
    %c0_i32_0 = arith.constant 0 : i32
    %c0_i32_1 = arith.constant 0 : i32
    return %c0_i32, %c0_i32_0 : i32, i32
  }
  func.func @transform_25(%arg0: i32) -> (i32, i32) {
    %c0_i32 = arith.constant 0 : i32
    %c0_i32_0 = arith.constant 0 : i32
    %c0_i32_1 = arith.constant 0 : i32
    return %c0_i32, %c0_i32_0 : i32, i32
  }
  func.func @transform_26(%arg0: i32) -> (i32, i32) {
    %c0_i32 = arith.constant 0 : i32
    %c0_i32_0 = arith.constant 0 : i32
    %c0_i32_1 = arith.constant 0 : i32
    return %c0_i32, %c0_i32_0 : i32, i32
  }
  func.func @transform_27(%arg0: i32) -> (i32, i32) {
    %c0_i32 = arith.constant 0 : i32
    %c0_i32_0 = arith.constant 0 : i32
    %c0_i32_1 = arith.constant 0 : i32
    return %c0_i32, %c0_i32_0 : i32, i32
  }
  func.func @transform_28(%arg0: i32) -> (i32, i32) {
    %c0_i32 = arith.constant 0 : i32
    %c0_i32_0 = arith.constant 0 : i32
    %c0_i32_1 = arith.constant 0 : i32
    return %c0_i32, %c0_i32_0 : i32, i32
  }
  func.func @transform_29(%arg0: i32) -> (i32, i32) {
    %c0_i32 = arith.constant 0 : i32
    %c0_i32_0 = arith.constant 0 : i32
    %c0_i32_1 = arith.constant 0 : i32
    return %c0_i32, %c0_i32_0 : i32, i32
  }
  func.func @transform_30(%arg0: i32) -> (i32, i32) {
    %c0_i32 = arith.constant 0 : i32
    %c0_i32_0 = arith.constant 0 : i32
    %c0_i32_1 = arith.constant 0 : i32
    return %c0_i32, %c0_i32_0 : i32, i32
  }
  func.func @transform_31(%arg0: i32) -> (i32, i32) {
    %c0_i32 = arith.constant 0 : i32
    %c0_i32_0 = arith.constant 0 : i32
    %c0_i32_1 = arith.constant 0 : i32
    return %c0_i32, %c0_i32_0 : i32, i32
  }
  func.func @transform_32(%arg0: i32) -> (i32, i32) {
    %c0_i32 = arith.constant 0 : i32
    %c0_i32_0 = arith.constant 0 : i32
    %c0_i32_1 = arith.constant 0 : i32
    return %c0_i32, %c0_i32_0 : i32, i32
  }
  func.func @transform_33(%arg0: i32) -> (i32, i32) {
    %c0_i32 = arith.constant 0 : i32
    %c0_i32_0 = arith.constant 0 : i32
    %c0_i32_1 = arith.constant 0 : i32
    return %c0_i32, %c0_i32_0 : i32, i32
  }
  func.func @transform_34(%arg0: i32) -> (i32, i32) {
    %c0_i32 = arith.constant 0 : i32
    %c0_i32_0 = arith.constant 0 : i32
    %c0_i32_1 = arith.constant 0 : i32
    return %c0_i32, %c0_i32_0 : i32, i32
  }
  func.func @transform_35(%arg0: i32) -> (i32, i32) {
    %c0_i32 = arith.constant 0 : i32
    %c0_i32_0 = arith.constant 0 : i32
    %c0_i32_1 = arith.constant 0 : i32
    return %c0_i32, %c0_i32_0 : i32, i32
  }
  func.func @transform_36(%arg0: i32) -> (i32, i32) {
    %c0_i32 = arith.constant 0 : i32
    %c0_i32_0 = arith.constant 0 : i32
    %c0_i32_1 = arith.constant 0 : i32
    return %c0_i32, %c0_i32_0 : i32, i32
  }
  func.func @transform_37(%arg0: i32) -> (i32, i32) {
    %c0_i32 = arith.constant 0 : i32
    %c0_i32_0 = arith.constant 0 : i32
    %c0_i32_1 = arith.constant 0 : i32
    return %c0_i32, %c0_i32_0 : i32, i32
  }
  func.func @transform_38(%arg0: i32) -> (i32, i32) {
    %c0_i32 = arith.constant 0 : i32
    %c0_i32_0 = arith.constant 0 : i32
    %c0_i32_1 = arith.constant 0 : i32
    return %c0_i32, %c0_i32_0 : i32, i32
  }
  func.func @transform_39(%arg0: i32) -> (i32, i32) {
    %c0_i32 = arith.constant 0 : i32
    %c0_i32_0 = arith.constant 0 : i32
    %c0_i32_1 = arith.constant 0 : i32
    return %c0_i32, %c0_i32_0 : i32, i32
  }
  func.func @transform_40(%arg0: i32) -> (i32, i32) {
    %c0_i32 = arith.constant 0 : i32
    %c0_i32_0 = arith.constant 0 : i32
    %c0_i32_1 = arith.constant 0 : i32
    return %c0_i32, %c0_i32_0 : i32, i32
  }
  func.func @transform_41(%arg0: i32) -> (i32, i32) {
    %c0_i32 = arith.constant 0 : i32
    %c0_i32_0 = arith.constant 0 : i32
    %c0_i32_1 = arith.constant 0 : i32
    return %c0_i32, %c0_i32_0 : i32, i32
  }
  func.func @transform_42(%arg0: i32) -> (i32, i32) {
    %c0_i32 = arith.constant 0 : i32
    %c0_i32_0 = arith.constant 0 : i32
    %c0_i32_1 = arith.constant 0 : i32
    return %c0_i32, %c0_i32_0 : i32, i32
  }
  func.func @transform_43(%arg0: i32) -> (i32, i32) {
    %c0_i32 = arith.constant 0 : i32
    %c0_i32_0 = arith.constant 0 : i32
    %c0_i32_1 = arith.constant 0 : i32
    return %c0_i32, %c0_i32_0 : i32, i32
  }
  func.func @transform_44(%arg0: i32) -> (i32, i32) {
    %c0_i32 = arith.constant 0 : i32
    %c0_i32_0 = arith.constant 0 : i32
    %c0_i32_1 = arith.constant 0 : i32
    return %c0_i32, %c0_i32_0 : i32, i32
  }
  func.func @transform_45(%arg0: i32) -> (i32, i32) {
    %c0_i32 = arith.constant 0 : i32
    %c0_i32_0 = arith.constant 0 : i32
    %c0_i32_1 = arith.constant 0 : i32
    return %c0_i32, %c0_i32_0 : i32, i32
  }
  func.func @transform_46(%arg0: i32) -> (i32, i32, i32) {
    %c0_i32 = arith.constant 0 : i32
    %c0_i32_0 = arith.constant 0 : i32
    %c0_i32_1 = arith.constant 0 : i32
    return %arg0, %c0_i32, %c0_i32_0 : i32, i32, i32
  }
  func.func @transform_47(%arg0: i32) -> (i32, i32, i32) {
    %c0_i32 = arith.constant 0 : i32
    %c0_i32_0 = arith.constant 0 : i32
    %c0_i32_1 = arith.constant 0 : i32
    return %arg0, %c0_i32, %c0_i32_0 : i32, i32, i32
  }
  func.func @transform_48(%arg0: i32) -> (i32, i32, i32) {
    %c0_i32 = arith.constant 0 : i32
    %c0_i32_0 = arith.constant 0 : i32
    %c0_i32_1 = arith.constant 0 : i32
    return %arg0, %c0_i32, %c0_i32_0 : i32, i32, i32
  }
  func.func @transform_49(%arg0: i32) -> (i32, i32, i32) {
    %c0_i32 = arith.constant 0 : i32
    %c0_i32_0 = arith.constant 0 : i32
    %c0_i32_1 = arith.constant 0 : i32
    return %arg0, %c0_i32, %c0_i32_0 : i32, i32, i32
  }
  func.func @transform_50(%arg0: i32) -> (i32, i32, i32) {
    %c0_i32 = arith.constant 0 : i32
    %c0_i32_0 = arith.constant 0 : i32
    %c0_i32_1 = arith.constant 0 : i32
    return %arg0, %c0_i32, %c0_i32_0 : i32, i32, i32
  }
  func.func @transform_51(%arg0: i32) -> (i32, i32, i32) {
    %c0_i32 = arith.constant 0 : i32
    %c0_i32_0 = arith.constant 0 : i32
    %c0_i32_1 = arith.constant 0 : i32
    return %arg0, %c0_i32, %c0_i32_0 : i32, i32, i32
  }
  func.func @transform_52(%arg0: i32) -> (i32, i32, i32) {
    %c0_i32 = arith.constant 0 : i32
    %c0_i32_0 = arith.constant 0 : i32
    %c0_i32_1 = arith.constant 0 : i32
    return %arg0, %c0_i32, %c0_i32_0 : i32, i32, i32
  }
  func.func @transform_53(%arg0: i32) -> (i32, i32, i32) {
    %c0_i32 = arith.constant 0 : i32
    %c0_i32_0 = arith.constant 0 : i32
    %c0_i32_1 = arith.constant 0 : i32
    return %arg0, %c0_i32, %c0_i32_0 : i32, i32, i32
  }
}

</mosaic_0001>

<bundles_post_ra>
// kernel: tpu_custom_call.1
= control target key start
LH: loop header
LB: loop body
LE: loop exit
PB: predicated region body
PF: predicated region fallthrough
CT: control target
= control target key end

     0   :  { %s8060_s6 = smov 1   ;;  %s8061_s10 = smov 2   ;;  %s9588_s0 = inlined_call_operand.smem [shape: u32[54], index: -1, kind: input, shape index: {}] }
   0x1   :  { %s8162_s5 = sld [smem:[%s9588_s0]]   ;;  %s8062_s14 = smov 3  }
   0x2   :  { %s8167_s9 = sld [smem:[%s9588_s0 + %s8060_s6]]   ;;  %s8063_s18 = smov 4  }
   0x3   :  { %s8172_s13 = sld [smem:[%s9588_s0 + %s8061_s10]]   ;;  %s8064_s22 = smov 5  }
   0x4   :  { %s8177_s17 = sld [smem:[%s9588_s0 + %s8062_s14]]   ;;  %s8065_s26 = smov 6  }
   0x5   :  { %s8182_s21 = sld [smem:[%s9588_s0 + %s8063_s18]]   ;;  %s8066_s30 = smov 7  }
   0x6   :  { %s8187_s25 = sld [smem:[%s9588_s0 + %s8064_s22]]   ;;  %s8067_s4 = smov 8  }
   0x7   :  { %9625 = sst [smem:[#allocation84_spill]] %s8162_s5  ;;  %s8068_s10 = smov 9  }
   0x8   :  { %9626 = sst [smem:[#allocation85_spill]] %s8167_s9  ;;  %s8069_s15 = smov 10  }
   0x9   :  { %9627 = sst [smem:[#allocation86_spill]] %s8172_s13  ;;  %s8070_s20 = smov 11  }
   0xa   :  { %9628 = sst [smem:[#allocation87_spill]] %s8177_s17  ;;  %s8072_s1 = smov 13  }
   0xb   :  { %9629 = sst [smem:[#allocation88_spill]] %s8182_s21  ;;  %s8073_s7 = smov 14  }
   0xc   :  { %9630 = sst [smem:[#allocation89_spill]] %s8187_s25  ;;  %s8075_s22 = smov 16  }
   0xd   :  { %s8192_s29 = sld [smem:[%s9588_s0 + %s8065_s26]]   ;;  %s8071_s26 = smov 12  }
   0xe   :  { %s8197_s3 = sld [smem:[%s9588_s0 + %s8066_s30]]   ;;  %s8076_s28 = smov 17  }
   0xf   :  { %s8202_s8 = sld [smem:[%s9588_s0 + %s8067_s4]]  }
  0x10   :  { %s8207_s14 = sld [smem:[%s9588_s0 + %s8068_s10]]  }
  0x11   :  { %s8212_s19 = sld [smem:[%s9588_s0 + %s8069_s15]]   ;;  %s8074_s15 = smov 15  }
  0x12   :  { %s8217_s24 = sld [smem:[%s9588_s0 + %s8070_s20]]  }
  0x13   :  { %9631 = sst [smem:[#allocation90_spill]] %s8192_s29 }
  0x14   :  { %9632 = sst [smem:[#allocation91_spill]] %s8197_s3 }
  0x15   :  { %9633 = sst [smem:[#allocation92_spill]] %s8202_s8 }
  0x16   :  { %9634 = sst [smem:[#allocation93_spill]] %s8207_s14 }
  0x17   :  { %9635 = sst [smem:[#allocation94_spill]] %s8212_s19 }
  0x18   :  { %9636 = sst [smem:[#allocation95_spill]] %s8217_s24 }
  0x19   :  { %s8222_s30 = sld [smem:[%s9588_s0 + %s8071_s26]]  }
  0x1a   :  { %s8227_s6 = sld [smem:[%s9588_s0 + %s8072_s1]]  }
  0x1b   :  { %s8232_s12 = sld [smem:[%s9588_s0 + %s8073_s7]]   ;;  %s8077_s7 = smov 18  }
  0x1c   :  { %s8237_s20 = sld [smem:[%s9588_s0 + %s8074_s15]]   ;;  %s8078_s15 = smov 19  }
  0x1d   :  { %s8242_s27 = sld [smem:[%s9588_s0 + %s8075_s22]]   ;;  %s8079_s22 = smov 20  }
  0x1e   :  { %s8247_s4 = sld [smem:[%s9588_s0 + %s8076_s28]]   ;;  %s8080_s28 = smov 21  }
  0x1f   :  { %9637 = sst [smem:[#allocation96_spill]] %s8222_s30 }
  0x20   :  { %9638 = sst [smem:[#allocation97_spill]] %s8227_s6 }
  0x21   :  { %9639 = sst [smem:[#allocation98_spill]] %s8232_s12 }
  0x22   :  { %9640 = sst [smem:[#allocation99_spill]] %s8237_s20 }
  0x23   :  { %9641 = sst [smem:[#allocation100_spill]] %s8242_s27 }
  0x24   :  { %9642 = sst [smem:[#allocation101_spill]] %s8247_s4 }
  0x25   :  { %s8252_s14 = sld [smem:[%s9588_s0 + %s8077_s7]]   ;;  %s8081_s7 = smov 22  }
  0x26   :  { %s8257_s25 = sld [smem:[%s9588_s0 + %s8078_s15]]   ;;  %s8082_s15 = smov 23  }
  0x27   :  { %s8262_s27 = sld [smem:[%s9588_s0 + %s8079_s22]]   ;;  %s8083_s22 = smov 24  }
  0x28   :  { %s8267_s4 = sld [smem:[%s9588_s0 + %s8080_s28]]   ;;  %s8084_s28 = smov 25  }
  0x29   :  { %s8282_s17 = sld [smem:[%s9588_s0 + %s8083_s22]]   ;;  %s8087_s22 = smov 28  }
  0x2a   :  { %s8302_s5 = sld [smem:[%s9588_s0 + %s8087_s22]]   ;;  %s8091_s22 = smov 32  }
  0x2b   :  { %9643 = sst [smem:[#allocation102_spill]] %s8252_s14 }
  0x2c   :  { %9644 = sst [smem:[#allocation103_spill]] %s8257_s25 }
  0x2d   :  { %9645 = sst [smem:[#allocation104_spill]] %s8262_s27 }
  0x2e   :  { %9646 = sst [smem:[#allocation105_spill]] %s8267_s4 }
  0x2f   :  { %s8272_s14 = sld [smem:[%s9588_s0 + %s8081_s7]]   ;;  %s8085_s7 = smov 26  }
  0x30   :  { %s8277_s25 = sld [smem:[%s9588_s0 + %s8082_s15]]   ;;  %s8086_s15 = smov 27  }
  0x31   :  { %9649 = sst [smem:[#allocation108_spill]] %s8282_s17 }
  0x32   :  { %s8287_s4 = sld [smem:[%s9588_s0 + %s8084_s28]]   ;;  %s8088_s28 = smov 29  }
  0x33   :  { %s8292_s13 = sld [smem:[%s9588_s0 + %s8085_s7]]   ;;  %s8089_s7 = smov 30  }
  0x34   :  { %9653 = sst [smem:[#allocation112_spill]] %s8302_s5 }
  0x35   :  { %9647 = sst [smem:[#allocation106_spill]] %s8272_s14 }
  0x36   :  { %9648 = sst [smem:[#allocation107_spill]] %s8277_s25 }
  0x37   :  { %s8297_s25 = sld [smem:[%s9588_s0 + %s8086_s15]]   ;;  %s8090_s15 = smov 31  }
  0x38   :  { %9650 = sst [smem:[#allocation109_spill]] %s8287_s4 }
  0x39   :  { %9651 = sst [smem:[#allocation110_spill]] %s8292_s13 }
  0x3a   :  { %s8307_s4 = sld [smem:[%s9588_s0 + %s8088_s28]]   ;;  %s8092_s28 = smov 33  }
  0x3b   :  { %s8312_s17 = sld [smem:[%s9588_s0 + %s8089_s7]]   ;;  %s8093_s7 = smov 34  }
  0x3c   :  { %s8322_s27 = sld [smem:[%s9588_s0 + %s8091_s22]]   ;;  %s8095_s22 = smov 36  }
  0x3d   :  { %9652 = sst [smem:[#allocation111_spill]] %s8297_s25 }
  0x3e   :  { %s8317_s25 = sld [smem:[%s9588_s0 + %s8090_s15]]   ;;  %s8094_s15 = smov 35  }
  0x3f   :  { %s8337_s12 = sld [smem:[%s9588_s0 + %s8094_s15]]   ;;  %s8098_s15 = smov 39  }
  0x40   :  { %9654 = sst [smem:[#allocation113_spill]] %s8307_s4 }
  0x41   :  { %9655 = sst [smem:[#allocation114_spill]] %s8312_s17 }
  0x42   :  { %9656 = sst [smem:[#allocation115_spill]] %s8322_s27 }
  0x43   :  { %s8327_s4 = sld [smem:[%s9588_s0 + %s8092_s28]]   ;;  %s8096_s28 = smov 37  }
  0x44   :  { %s8332_s17 = sld [smem:[%s9588_s0 + %s8093_s7]]   ;;  %s8097_s7 = smov 38  }
  0x45   :  { %9659 = sst [smem:[#allocation118_spill]] %s8337_s12 }
  0x46   :  { %s8342_s27 = sld [smem:[%s9588_s0 + %s8095_s22]]   ;;  %s8099_s22 = smov 40  }
  0x47   :  { %s8347_s30 = sld [smem:[%s9588_s0 + %s8096_s28]]   ;;  %s8100_s28 = smov 41  }
  0x48   :  { %s8357_s19 = sld [smem:[%s9588_s0 + %s8098_s15]]   ;;  %s8102_s15 = smov 43  }
  0x49   :  { %9657 = sst [smem:[#allocation116_spill]] %s8327_s4 }
  0x4a   :  { %9658 = sst [smem:[#allocation117_spill]] %s8332_s17 }
  0x4b   :  { %s8352_s17 = sld [smem:[%s9588_s0 + %s8097_s7]]   ;;  %s8101_s7 = smov 42  }
  0x4c   :  { %9660 = sst [smem:[#allocation119_spill]] %s8342_s27 }
  0x4d   :  { %9661 = sst [smem:[#allocation120_spill]] %s8347_s30 }
  0x4e   :  { %9663 = sst [smem:[#allocation122_spill]] %s8357_s19 }
  0x4f   :  { %s8362_s27 = sld [smem:[%s9588_s0 + %s8099_s22]]   ;;  %s8103_s22 = smov 44  }
  0x50   :  { %s8367_s30 = sld [smem:[%s9588_s0 + %s8100_s28]]   ;;  %s8104_s28 = smov 45  }
  0x51   :  { %9662 = sst [smem:[#allocation121_spill]] %s8352_s17 }
  0x52   :  { %s8372_s17 = sld [smem:[%s9588_s0 + %s8101_s7]]   ;;  %s8105_s7 = smov 46  }
  0x53   :  { %s8377_s19 = sld [smem:[%s9588_s0 + %s8102_s15]]   ;;  %s8106_s15 = smov 47  }
  0x54   :  { %s8392_s3 = sld [smem:[%s9588_s0 + %s8105_s7]]   ;;  %s8109_s7 = smov 50  }
  0x55   :  { %9664 = sst [smem:[#allocation123_spill]] %s8362_s27 }
  0x56   :  { %9665 = sst [smem:[#allocation124_spill]] %s8367_s30 }
  0x57   :  { %s8382_s27 = sld [smem:[%s9588_s0 + %s8103_s22]]   ;;  %s8107_s22 = smov 48  }
  0x58   :  { %9666 = sst [smem:[#allocation125_spill]] %s8372_s17 }
  0x59   :  { %9667 = sst [smem:[#allocation126_spill]] %s8377_s19 }
  0x5a   :  { %s8387_s30 = sld [smem:[%s9588_s0 + %s8104_s28]]   ;;  %s8108_s28 = smov 49  }
  0x5b   :  { %9670 = sst [smem:[#allocation129_spill]] %s8392_s3 }
  0x5c   :  { %s8397_s19 = sld [smem:[%s9588_s0 + %s8106_s15]]   ;;  %s8110_s15 = smov 51  }
  0x5d   :  { %9668 = sst [smem:[#allocation127_spill]] %s8382_s27 }
  0x5e   :  { %s8402_s27 = sld [smem:[%s9588_s0 + %s8107_s22]]   ;;  %s8111_s22 = smov 52  }
  0x5f   :  { %s8412_s3 = sld [smem:[%s9588_s0 + %s8109_s7]]  }
  0x60   :  { %9669 = sst [smem:[#allocation128_spill]] %s8387_s30 }
  0x61   :  { %s8407_s30 = sld [smem:[%s9588_s0 + %s8108_s28]]   ;;  %s8112_s28 = smov 53  }
  0x62   :  { %9671 = sst [smem:[#allocation130_spill]] %s8397_s19 }
  0x63   :  { %s8417_s19 = sld [smem:[%s9588_s0 + %s8110_s15]]  }
  0x64   :  { %9672 = sst [smem:[#allocation131_spill]] %s8402_s27 }
  0x65   :  { %9674 = sst [smem:[#allocation133_spill]] %s8412_s3 }
  0x66   :  { %s8422_s27 = sld [smem:[%s9588_s0 + %s8111_s22]]  }
  0x67   :  { %9673 = sst [smem:[#allocation132_spill]] %s8407_s30 }
  0x68   :  { %s8427_s30 = sld [smem:[%s9588_s0 + %s8112_s28]]  }
  0x6e   :  { %9675 = sst [smem:[#allocation134_spill]] %s8427_s30 }
  0x6f   :  { %113 = vsyncpa [#allocation7], 0 }
  0x70   :  { %115 = vsyncpa [#allocation7 + $0x1], 0 }
  0x71   :  { %116 = vsyncpa [#allocation10], 0 }
  0x72   :  { %118 = vsyncpa [#allocation10 + $0x1], 0 }
  0x73   :  { %119 = vsyncpa [#allocation13], 0 }
  0x74   :  { %121 = vsyncpa [#allocation13 + $0x1], 0 }
  0x75   :  { %122 = vsyncpa [#allocation16], 0 }
  0x76   :  { %123 = vsyncpa [#allocation19], 0 }
  0x77   :  { %124 = vsyncpa [#allocation22], 0 }
  0x78   :  { %125 = vsyncpa [#allocation25], 0 }
  0x79   :  { %126 = vsyncpa [#allocation28], 0 }
  0x7a   :  { %127 = vsyncpa [#allocation31], 0 }
  0x7b   :  { %128 = vsyncpa [#allocation34], 0 }
  0x7c   :  { %129 = vsyncpa [#allocation37], 0 }
  0x7d   :  { %130 = vsyncpa [#allocation40], 0 }
  0x7e   :  { %131 = vsyncpa [#allocation43], 0 }
  0x7f   :  { %132 = vsyncpa [#allocation46], 0 }
  0x80   :  { %133 = vsyncpa [#allocation49], 0 }
  0x81   :  { %134 = vsyncpa [#allocation8], 0 }
  0x82   :  { %136 = vsyncpa [#allocation8 + $0x1], 0 }
  0x83   :  { %137 = vsyncpa [#allocation53], 0 }
  0x84   :  { %139 = vsyncpa [#allocation53 + $0x1], 0 }
  0x85   :  { %140 = vsyncpa [#allocation56], 0 }
  0x86   :  { %142 = vsyncpa [#allocation56 + $0x1], 0 }
  0x87   :  { %143 = vsyncpa [#allocation59], 0 }
  0x88   :  { %145 = vsyncpa [#allocation59 + $0x1], 0 }
  0x89   :  { %146 = vsyncpa [#allocation62], 0 }
  0x8a   :  { %148 = vsyncpa [#allocation62 + $0x1], 0  ;;  %s8429_s0 = smov 0   ;;  %s8431_s7 = smov 0  }
  0x8b   :  { %s8433_s10 = smov 0   ;;  %s8435_s11 = smov 0  }
  0x8c LB: > { %s9676_s9 = sld [smem:[#allocation85_spill]]  ;;  %s8113_s15 = smov [#allocation14]   ;;  %s8046_s0 = sphi %s8429_s0, %s9788_s0   ;;  %s8058_s11 = sphi %s8435_s11, %s9791_s11   ;;  %s8054_s10 = sphi %s8433_s10, %s9790_s10   ;;  %s8050_s7 = sphi %s8431_s7, %s9789_s7  }
  0x8d   : > { %s1366_s16 = sshll.u32 %s8113_s15, 4  ;;  %s8450_s18 = sadd.s32 4294967295, %s8058_s11   ;;  %s1367_s16 = int_to_ptr.vmem [resolvable:$true] %s1366_s16 }
  0x8e   : > { %p5184_p0 = scmp.ge.s32.totalorder %s8058_s11, 1  ;;  %p9597_p1 = scmp.eq.s32.totalorder %s8450_s18, 0 }
  0x8f   : > { %p1353_p2 = scmp.lt.s32.totalorder %s8058_s11, 6  ;;  %s8114_s23 = smov [#allocation15]  }
  0x90   : > { %s1379_s26 = sshll.u32 %s8114_s23, 4  ;;  %s8115_s1 = smov [#allocation18]   ;;  %s8462_s26 = int_to_ptr.vmem [resolvable:$true] %s1379_s26 }
  0x91   : > { %p8456_p4 = pnand %p5184_p0, %p1353_p2  ;;  %s1405_s2 = sshll.u32 %s8115_s1, 4  ;;  %s8470_s2 = int_to_ptr.vmem [resolvable:$true] %s1405_s2 }
  0x92   : > { %s6985_s3 = scalar_lea.vmem %s1367_s16, 128  ;;  %p6993_p11 = scmp.lt.s32.totalorder %s1367_s16, %s1367_s16 }
  0x93   : > { %s9677_s22 = scalar_select %p8456_p4, 1, 0 }
  0x94   : > { %p6664_p5 = pneg %p8456_p4  ;;  %p6986_p8 = scmp.ne.s32.totalorder %s1367_s16, %s6985_s3 }
  0x95   : > { %p6994_p12 = scmp.lt.s32.totalorder %s6985_s3, %s6985_s3 }
  0x96   : > { %p8466_p6 = pnand %p6664_p5, %p9597_p1 }
  0x97   : > { %p6995_p13 = por %p6994_p12, %p6993_p11 }
  0x98   : > { %s9678_s28 = scalar_select %p8466_p6, 1, 0 }
  0x99   : > { %p8474_p7 = pneg %p8466_p6 }
  0x9b   : > { %s9679_s15 = scalar_select %p8474_p7, 1, 0 }
  0x9c   : > { %p6988_p9 = pnand %p6986_p8, %p8474_p7 }
  0x9e   : > { %p6989_p10 = pneg %p6988_p9 }
  0xa0   : > { %p6996_p0 = pnand %p6995_p13, %p6989_p10 }
  0xa2   : > { %6999 = shalt.err (!%p6996_p0)
}
  0xa3   : > { %s9680_s21 = sld [smem:[#allocation88_spill]]  ;;  %s7011_s23 = scalar_lea.vmem %s8462_s26, 2048 }
  0xa4   : > { %p7012_p2 = scmp.ne.s32.totalorder %s8462_s26, %s7011_s23  ;;  %p7019_p8 = scmp.lt.s32.totalorder %s8462_s26, %s8462_s26 }
  0xa5   : > { %p7020_p9 = scmp.lt.s32.totalorder %s7011_s23, %s7011_s23 }
  0xa6   : > { %p7014_p5 = pnand %p7012_p2, %p8474_p7 }
  0xa7   : > { %p7021_p1 = por %p7020_p9, %p7019_p8 }
  0xa8   : > { %p7015_p3 = pneg %p7014_p5 }
  0xa9   : > { %6667 = dma.hbm_to_vmem [thread:$0]  (!%p8466_p6), %s9680_s21, 128, %s1367_s16, [#allocation13]  }
  0xaa   : > { %p7022_p11 = pnand %p7021_p1, %p7015_p3 }
  0xac   : > { %7025 = shalt.err (!%p7022_p11)
}
  0xad   : > { %s9600_s3 = smov 128   ;;  %s9681_s29 = sld [smem:[#allocation90_spill]] }
  0xae   : > { %s9602_s16 = smov 8   ;;  %s7037_s1 = scalar_lea.vmem %s8470_s2, 2048 }
  0xaf   : > { %p7038_p10 = scmp.ne.s32.totalorder %s8470_s2, %s7037_s1  ;;  %p7045_p3 = scmp.lt.s32.totalorder %s8470_s2, %s8470_s2 }
  0xb0   : > { %p7046_p13 = scmp.lt.s32.totalorder %s7037_s1, %s7037_s1 }
  0xb1   : > { %p7040_p12 = pnand %p7038_p10, %p8474_p7 }
  0xb2   : > { %p7047_p0 = por %p7046_p13, %p7045_p3 }
  0xb3   : > { %6670 = dma.hbm_to_vmem [thread:$0]  (!%p8466_p6), %s9681_s29, 2048, %s8462_s26, [#allocation16], %s9600_s3, %s9600_s3, %s9602_s16  }
  0xb4   : > { %p7041_p1 = pneg %p7040_p12 }
  0xb6   : > { %p7048_p2 = pnand %p7047_p0, %p7041_p1 }
  0xb8   : > { %7051 = shalt.err (!%p7048_p2)
}
  0xb9   : > { %s9682_s8 = sld [smem:[#allocation92_spill]]  ;;  %s8118_s26 = smov [#allocation21]  }
  0xba   : > { %s1434_s23 = sshll.u32 %s8118_s26, 4  ;;  %s8119_s21 = smov [#allocation24]   ;;  %s1435_s23 = int_to_ptr.vmem [resolvable:$true] %s1434_s23 }
  0xbb   : > { %s1460_s29 = sshll.u32 %s8119_s21, 4  ;;  %s7063_s30 = scalar_lea.vmem %s1435_s23, 2048  ;;  %s1461_s29 = int_to_ptr.vmem [resolvable:$true] %s1460_s29 }
  0xbc   : > { %p7064_p5 = scmp.ne.s32.totalorder %s1435_s23, %s7063_s30  ;;  %p7071_p11 = scmp.lt.s32.totalorder %s1435_s23, %s1435_s23 }
  0xbd   : > { %p7072_p10 = scmp.lt.s32.totalorder %s7063_s30, %s7063_s30 }
  0xbe   : > { %p7066_p8 = pnand %p7064_p5, %p8474_p7 }
  0xbf   : > { %6676 = dma.hbm_to_vmem [thread:$0]  (!%p8466_p6), %s9682_s8, 2048, %s8470_s2, [#allocation19], %s9600_s3, %s9600_s3, %s9602_s16  }
  0xc0   : > { %p7067_p9 = pneg %p7066_p8  ;;  %p7073_p12 = por %p7072_p10, %p7071_p11 }
  0xc2   : > { %p7074_p1 = pnand %p7073_p12, %p7067_p9 }
  0xc4   : > { %7077 = shalt.err (!%p7074_p1)
}
  0xc5   : > { %s9683_s24 = sld [smem:[#allocation95_spill]]  ;;  %s7089_s21 = scalar_lea.vmem %s1461_s29, 2048 }
  0xc6   : > { %p7090_p3 = scmp.ne.s32.totalorder %s1461_s29, %s7089_s21  ;;  %p7097_p2 = scmp.lt.s32.totalorder %s1461_s29, %s1461_s29 }
  0xc7   : > { %p7098_p5 = scmp.lt.s32.totalorder %s7089_s21, %s7089_s21 }
  0xc8   : > { %p7092_p13 = pnand %p7090_p3, %p8474_p7 }
  0xc9   : > { %p7099_p8 = por %p7098_p5, %p7097_p2 }
  0xca   : > { %p7093_p0 = pneg %p7092_p13 }
  0xcb   : > { %6682 = dma.hbm_to_vmem [thread:$0]  (!%p8466_p6), %s9683_s24, 2048, %s1435_s23, [#allocation22], %s9600_s3, %s9600_s3, %s9602_s16  }
  0xcc   : > { %p7100_p11 = pnand %p7099_p8, %p7093_p0 }
  0xce   : > { %7103 = shalt.err (!%p7100_p11)
}
  0xcf   : > { %s9684_s6 = sld [smem:[#allocation97_spill]]  ;;  %s8120_s30 = smov [#allocation27]  }
  0xd0   : > { %s1486_s2 = sshll.u32 %s8120_s30, 4  ;;  %s8121_s1 = smov [#allocation30]   ;;  %s1487_s2 = int_to_ptr.vmem [resolvable:$true] %s1486_s2 }
  0xd1   : > { %s1527_s26 = sshll.u32 %s8121_s1, 4  ;;  %s7115_s23 = scalar_lea.vmem %s1487_s2, 2048  ;;  %s1528_s26 = int_to_ptr.vmem [resolvable:$true] %s1527_s26 }
  0xd2   : > { %p7116_p9 = scmp.ne.s32.totalorder %s1487_s2, %s7115_s23  ;;  %p7123_p1 = scmp.lt.s32.totalorder %s1487_s2, %s1487_s2 }
  0xd3   : > { %p7124_p3 = scmp.lt.s32.totalorder %s7115_s23, %s7115_s23 }
  0xd4   : > { %p7118_p10 = pnand %p7116_p9, %p8474_p7 }
  0xd5   : > { %6688 = dma.hbm_to_vmem [thread:$0]  (!%p8466_p6), %s9684_s6, 2048, %s1461_s29, [#allocation25], %s9600_s3, %s9600_s3, %s9602_s16  }
  0xd6   : > { %p7119_p12 = pneg %p7118_p10  ;;  %p7125_p13 = por %p7124_p3, %p7123_p1 }
  0xd8   : > { %p7126_p0 = pnand %p7125_p13, %p7119_p12 }
  0xda   : > { %7129 = shalt.err (!%p7126_p0)
}
  0xdb   : > { %s9685_s20 = sld [smem:[#allocation99_spill]]  ;;  %s7141_s29 = scalar_lea.vmem %s1528_s26, 2048 }
  0xdc   : > { %p7142_p2 = scmp.ne.s32.totalorder %s1528_s26, %s7141_s29  ;;  %p7149_p11 = scmp.lt.s32.totalorder %s1528_s26, %s1528_s26 }
  0xdd   : > { %p7150_p9 = scmp.lt.s32.totalorder %s7141_s29, %s7141_s29 }
  0xde   : > { %p7144_p5 = pnand %p7142_p2, %p8474_p7 }
  0xdf   : > { %p7151_p10 = por %p7150_p9, %p7149_p11 }
  0xe0   : > { %p7145_p8 = pneg %p7144_p5 }
  0xe1   : > { %6694 = dma.hbm_to_vmem [thread:$0]  (!%p8466_p6), %s9685_s20, 2048, %s1487_s2, [#allocation28], %s9600_s3, %s9600_s3, %s9602_s16  }
  0xe2   : > { %p7152_p1 = pnand %p7151_p10, %p7145_p8 }
  0xe4   : > { %7155 = shalt.err (!%p7152_p1)
}
  0xe5   : > { %s9686_s14 = sld [smem:[#allocation106_spill]]  ;;  %s8122_s21 = smov [#allocation33]  }
  0xe6   : > { %s1559_s30 = sshll.u32 %s8122_s21, 4  ;;  %s8123_s2 = smov [#allocation36]   ;;  %s1560_s30 = int_to_ptr.vmem [resolvable:$true] %s1559_s30 }
  0xe7   : > { %s1585_s1 = sshll.u32 %s8123_s2, 4  ;;  %s7167_s23 = scalar_lea.vmem %s1560_s30, 2048  ;;  %s1586_s1 = int_to_ptr.vmem [resolvable:$true] %s1585_s1 }
  0xe8   : > { %p7168_p12 = scmp.ne.s32.totalorder %s1560_s30, %s7167_s23  ;;  %p7175_p0 = scmp.lt.s32.totalorder %s1560_s30, %s1560_s30 }
  0xe9   : > { %p7176_p2 = scmp.lt.s32.totalorder %s7167_s23, %s7167_s23 }
  0xea   : > { %p7170_p3 = pnand %p7168_p12, %p8474_p7 }
  0xeb   : > { %6700 = dma.hbm_to_vmem [thread:$0]  (!%p8466_p6), %s9686_s14, 2048, %s1528_s26, [#allocation31], %s9600_s3, %s9600_s3, %s9602_s16  }
  0xec   : > { %p7171_p13 = pneg %p7170_p3  ;;  %p7177_p5 = por %p7176_p2, %p7175_p0 }
  0xee   : > { %p7178_p8 = pnand %p7177_p5, %p7171_p13 }
  0xf0   : > { %7181 = shalt.err (!%p7178_p8)
}
  0xf1   : > { %s9687_s13 = sld [smem:[#allocation110_spill]]  ;;  %s7193_s26 = scalar_lea.vmem %s1586_s1, 2048 }
  0xf2   : > { %p7194_p11 = scmp.ne.s32.totalorder %s1586_s1, %s7193_s26  ;;  %p7201_p1 = scmp.lt.s32.totalorder %s1586_s1, %s1586_s1 }
  0xf3   : > { %p7202_p12 = scmp.lt.s32.totalorder %s7193_s26, %s7193_s26 }
  0xf4   : > { %p7196_p9 = pnand %p7194_p11, %p8474_p7 }
  0xf5   : > { %p7203_p3 = por %p7202_p12, %p7201_p1 }
  0xf6   : > { %p7197_p10 = pneg %p7196_p9 }
  0xf7   : > { %6706 = dma.hbm_to_vmem [thread:$0]  (!%p8466_p6), %s9687_s13, 2048, %s1560_s30, [#allocation34], %s9600_s3, %s9600_s3, %s9602_s16  }
  0xf8   : > { %p7204_p0 = pnand %p7203_p3, %p7197_p10 }
  0xfa   : > { %7207 = shalt.err (!%p7204_p0)
}
  0xfb   : > { %s9688_s5 = sld [smem:[#allocation112_spill]]  ;;  %s8124_s29 = smov [#allocation39]  }
  0xfc   : > { %s1614_s21 = sshll.u32 %s8124_s29, 4  ;;  %s8125_s30 = smov [#allocation42]   ;;  %s1615_s21 = int_to_ptr.vmem [resolvable:$true] %s1614_s21 }
  0xfd   : > { %s1640_s2 = sshll.u32 %s8125_s30, 4  ;;  %s7219_s23 = scalar_lea.vmem %s1615_s21, 2048  ;;  %s1641_s2 = int_to_ptr.vmem [resolvable:$true] %s1640_s2 }
  0xfe   : > { %p7220_p13 = scmp.ne.s32.totalorder %s1615_s21, %s7219_s23  ;;  %p7227_p8 = scmp.lt.s32.totalorder %s1615_s21, %s1615_s21 }
  0xff   : > { %p7228_p11 = scmp.lt.s32.totalorder %s7219_s23, %s7219_s23 }
 0x100   : > { %p7222_p2 = pnand %p7220_p13, %p8474_p7 }
 0x101   : > { %6712 = dma.hbm_to_vmem [thread:$0]  (!%p8466_p6), %s9688_s5, 2048, %s1586_s1, [#allocation37], %s9600_s3, %s9600_s3, %s9602_s16  }
 0x102   : > { %p7223_p5 = pneg %p7222_p2  ;;  %p7229_p9 = por %p7228_p11, %p7227_p8 }
 0x104   : > { %p7230_p10 = pnand %p7229_p9, %p7223_p5 }
 0x106   : > { %7233 = shalt.err (!%p7230_p10)
}
 0x107   : > { %6718 = dma.hbm_to_vmem [thread:$0]  (!%p8466_p6), %s8317_s25, 2048, %s1615_s21, [#allocation40], %s9600_s3, %s9600_s3, %s9602_s16  }
 0x108   : > { %s7245_s1 = scalar_lea.vmem %s1641_s2, 2048  ;;  %p7253_p0 = scmp.lt.s32.totalorder %s1641_s2, %s1641_s2 }
 0x109   : > { %p7246_p1 = scmp.ne.s32.totalorder %s1641_s2, %s7245_s1  ;;  %p7254_p13 = scmp.lt.s32.totalorder %s7245_s1, %s7245_s1 }
 0x10b   : > { %p7248_p12 = pnand %p7246_p1, %p8474_p7  ;;  %p7255_p2 = por %p7254_p13, %p7253_p0 }
 0x10d   : > { %p7249_p3 = pneg %p7248_p12 }
 0x10f   : > { %p7256_p8 = pnand %p7255_p2, %p7249_p3 }
 0x111   : > { %7259 = shalt.err (!%p7256_p8)
}
 0x112   : > { %s9689_s4 = sld [smem:[#allocation116_spill]]  ;;  %s8126_s26 = smov [#allocation45]  }
 0x113   : > { %s1666_s29 = sshll.u32 %s8126_s26, 4  ;;  %s8127_s21 = smov [#allocation48]   ;;  %s1667_s29 = int_to_ptr.vmem [resolvable:$true] %s1666_s29 }
 0x114   : > { %s1707_s30 = sshll.u32 %s8127_s21, 4  ;;  %s7271_s23 = scalar_lea.vmem %s1667_s29, 2048  ;;  %s1708_s30 = int_to_ptr.vmem [resolvable:$true] %s1707_s30 }
 0x115   : > { %p7272_p5 = scmp.ne.s32.totalorder %s1667_s29, %s7271_s23  ;;  %p7279_p10 = scmp.lt.s32.totalorder %s1667_s29, %s1667_s29 }
 0x116   : > { %p7280_p1 = scmp.lt.s32.totalorder %s7271_s23, %s7271_s23 }
 0x117   : > { %p7274_p11 = pnand %p7272_p5, %p8474_p7 }
 0x118   : > { %6724 = dma.hbm_to_vmem [thread:$0]  (!%p8466_p6), %s9689_s4, 2048, %s1641_s2, [#allocation43], %s9600_s3, %s9600_s3, %s9602_s16  }
 0x119   : > { %p7275_p9 = pneg %p7274_p11  ;;  %p7281_p12 = por %p7280_p1, %p7279_p10 }
 0x11b   : > { %p7282_p3 = pnand %p7281_p12, %p7275_p9 }
 0x11d   : > { %7285 = shalt.err (!%p7282_p3)
}
 0x11e   : > { %s9690_s12 = sld [smem:[#allocation118_spill]]  ;;  %s7297_s2 = scalar_lea.vmem %s1708_s30, 2048 }
 0x11f   : > { %p7298_p0 = scmp.ne.s32.totalorder %s1708_s30, %s7297_s2  ;;  %p7305_p8 = scmp.lt.s32.totalorder %s1708_s30, %s1708_s30 }
 0x120   : > { %p7306_p5 = scmp.lt.s32.totalorder %s7297_s2, %s7297_s2 }
 0x121   : > { %p7300_p13 = pnand %p7298_p0, %p8474_p7 }
 0x122   : > { %p7307_p11 = por %p7306_p5, %p7305_p8 }
 0x123   : > { %p7301_p2 = pneg %p7300_p13 }
 0x124   : > { %6730 = dma.hbm_to_vmem [thread:$0]  (!%p8466_p6), %s9690_s12, 2048, %s1667_s29, [#allocation46], %s9600_s3, %s9600_s3, %s9602_s16  }
 0x125   : > { %p7308_p10 = pnand %p7307_p11, %p7301_p2 }
 0x127   : > { %7311 = shalt.err (!%p7308_p10)
}
 0x128   : > { %s9691_s17 = sld [smem:[#allocation125_spill]]  ;;  %s9604_s1 = sadd.s32 4294967294, %s8058_s11  }
 0x129   : > { %s8591_s26 = sadd.s32 1, %s8058_s11   ;;  %s161_s29 = sadd.s32 1, %s8054_s10 }
 0x12a   : > { %s158_s21 = ssub.s32 %s8058_s11, %s8591_s26  ;;  %p168_p9 = scmp.ne.s32.totalorder %s8054_s10, %s8050_s7 }
 0x12b   : > { %p159_p1 = scmp.eq.s32.totalorder %s158_s21, 0  ;;  %p169_p12 = scmp.eq.s32.totalorder %s8058_s11, 0 }
 0x12c   : > { %p174_p3 = scmp.ne.s32.totalorder %s8050_s7, %s8046_s0  ;;  %p1158_p0 = scmp.eq.s32.totalorder %s8450_s18, 4 }
 0x12d   : > { %s8603_s23 = scalar_select %p159_p1, %s8054_s10, %s161_s29  }
 0x12e   : > { %6736 = dma.hbm_to_vmem [thread:$0]  (!%p8466_p6), %s9691_s17, 2048, %s1708_s30, [#allocation49], %s9600_s3, %s9600_s3, %s9602_s16  }
 0x12f   : > { %p170_p13 = por %p169_p12, %p168_p9  ;;  %p9692_p2 = scmp.eq.s32.totalorder %s8450_s18, 0 }
 0x130   : > { %p8611_p5 = por %p1158_p0, %p168_p9  ;;  %p1164_p11 = scmp.eq.s32.totalorder %s9604_s1, 4 }
 0x131   : > { %p8607_p8 = por %p9692_p2, %p174_p3  ;;  %p6803_p10 = scmp.lt.s32.totalorder %s8058_s11, 5 }
 0x132   : > { %s9694_s2 = scalar_select %p8611_p5, 1, 0 }
 0x133   : > { %s9693_s30 = scalar_select %p8607_p8, 1, 0 }
 0x134   : > { %s9605_s21 = sand.u32 1, %s8054_s10   ;;  %p8619_p4 = por %p1164_p11, %p174_p3 }
 0x135   : > { %s8625_s29 = sshll.u32 %s9605_s21, 3  ;;  %s8628_s16 = sshll.u32 %s8058_s11, 7 }
 0x136   : > { %s9695_s3 = scalar_select %p8619_p4, 1, 0 }
 0x137   : > { %p8630_p9 = pnand %p6803_p10, %p170_p13  ;;  %s9608_s1 = sand.u32 1, %s8058_s11  }
 0x138   : > { %s8637_s5 = scalar_lea.hbm %s9676_s9, %s8628_s16  ;;  %s1762_s6 = scalar_lea.vmem [#allocation9], %s8625_s29 }
 0x139   : > { %s9696_s4 = scalar_select %p8630_p9, 1, 0 }
 0x13a   : > { %s1769_s8 = sshll.u32 %s1762_s6, 4  ;;  %s8642_s21 = scalar_lea.sflag [#allocation10], %s9608_s1  ;;  %s1770_s8 = int_to_ptr.vmem [resolvable:$true] %s1769_s8 }
 0x13b   : > { %s7312_s12 = scalar_lea.hbm %s8637_s5, 128  ;;  %p8648_p12 = pneg %p8630_p9 }
 0x13c   : > { %p7313_p1 = scmp.ne.s32.totalorder %s8637_s5, %s7312_s12  ;;  %s7317_s14 = scalar_lea.hbm %s9676_s9, 640 }
 0x13d   : > { %s9697_s13 = scalar_select %p8648_p12, 1, 0 }
 0x13e   : > { %p7315_p3 = pnand %p8648_p12, %p7313_p1  ;;  %p7318_p13 = scmp.lt.s32.totalorder %s8637_s5, %s9676_s9 }
 0x13f   : > { %p7319_p2 = scmp.lt.s32.totalorder %s7317_s14, %s7312_s12 }
 0x140   : > { %p7316_p0 = pneg %p7315_p3 }
 0x141   : > { %p7320_p11 = por %p7319_p2, %p7318_p13 }
 0x143   : > { %p7321_p10 = pnand %p7320_p11, %p7316_p0 }
 0x145   : > { %7324 = shalt.err (!%p7321_p10)
}
 0x146   : > { %s7325_s6 = scalar_lea.vmem %s1770_s8, 128  ;;  %s8128_s1 = smov [#allocation9]  }
 0x147   : > { %p7326_p4 = scmp.ne.s32.totalorder %s1770_s8, %s7325_s6  ;;  %s7330_s17 = sshll.u32 %s8128_s1, 4  ;;  %s7331_s17 = int_to_ptr.vmem [resolvable:$false] %s7330_s17 }
 0x148   : > { %s7332_s20 = scalar_lea.vmem %s7331_s17, 256  ;;  %p7333_p6 = scmp.lt.s32.totalorder %s1770_s8, %s7331_s17 }
 0x149   : > { %p7328_p5 = pnand %p7326_p4, %p8648_p12  ;;  %p7334_p7 = scmp.lt.s32.totalorder %s7332_s20, %s7325_s6 }
 0x14b   : > { %p7329_p8 = pneg %p7328_p5  ;;  %p7335_p1 = por %p7334_p7, %p7333_p6 }
 0x14d   : > { %p7336_p3 = pnand %p7335_p1, %p7329_p8 }
 0x14f   : > { %7339 = shalt.err (!%p7336_p3)
}
 0x150   : > { %6746 = dma.hbm_to_vmem [thread:$0]  (!%p8630_p9), %s8637_s5, 128, %s1770_s8, %s8642_s21  }
 0x151   : > { %s8129_s14 = smov [#allocation17]   ;;  %s8130_s9 = smov [#allocation20]  }
 0x152   : > { %s1392_s12 = sshll.u32 %s8129_s14, 4  ;;  %s1421_s24 = sshll.u32 %s8130_s9, 4  ;;  %s1393_s12 = int_to_ptr.vmem [resolvable:$true] %s1392_s12  ;;  %s1422_s24 = int_to_ptr.vmem [resolvable:$true] %s1421_s24 }
 0x153   : > { %s7351_s1 = scalar_lea.vmem %s1393_s12, 2048  ;;  %p9698_p5 = scmp.ne.s32.totalorder %s9679_s15, 0 }
 0x154   : > { %p7352_p4 = scmp.ne.s32.totalorder %s1393_s12, %s7351_s1  ;;  %p7359_p6 = scmp.lt.s32.totalorder %s1393_s12, %s1393_s12 }
 0x155   : > { %p7360_p7 = scmp.lt.s32.totalorder %s7351_s1, %s7351_s1 }
 0x156   : > { %p7354_p0 = pnand %p7352_p4, %p9698_p5 }
 0x157   : > { %p7361_p8 = por %p7360_p7, %p7359_p6 }
 0x158   : > { %p7355_p13 = pneg %p7354_p0 }
 0x15a   : > { %p7362_p2 = pnand %p7361_p8, %p7355_p13 }
 0x15c   : > { %7365 = shalt.err (!%p7362_p2)
}
 0x15d   : > { %p9699_p11 = scmp.ne.s32.totalorder %s9678_s28, 0  ;;  %s9700_s17 = smov 8  }
 0x15e   : > { %s9701_s5 = smov 128   ;;  %s9702_s8 = sld [smem:[#allocation91_spill]] }
 0x15f   : > { %s7377_s9 = scalar_lea.vmem %s1422_s24, 2048  ;;  %p7385_p4 = scmp.lt.s32.totalorder %s1422_s24, %s1422_s24 }
 0x160   : > { %p7378_p10 = scmp.ne.s32.totalorder %s1422_s24, %s7377_s9  ;;  %p7386_p0 = scmp.lt.s32.totalorder %s7377_s9, %s7377_s9 }
 0x162   : > { %p7380_p1 = pnand %p7378_p10, %p9698_p5  ;;  %p7387_p9 = por %p7386_p0, %p7385_p4 }
 0x164   : > { %6673 = dma.hbm_to_vmem [thread:$0]  (!%p9699_p11), %s9702_s8, 2048, %s1393_s12, [#allocation16], %s9701_s5, %s9701_s5, %s9700_s17  }
 0x165   : > { %p7381_p3 = pneg %p7380_p1 }
 0x167   : > { %p7388_p12 = pnand %p7387_p9, %p7381_p3 }
 0x169   : > { %7391 = shalt.err (!%p7388_p12)
}
 0x16a   : > { %s9703_s20 = sld [smem:[#allocation94_spill]]  ;;  %s8131_s6 = smov [#allocation23]  }
 0x16b   : > { %s1447_s14 = sshll.u32 %s8131_s6, 4  ;;  %s8132_s12 = smov [#allocation26]   ;;  %s1448_s14 = int_to_ptr.vmem [resolvable:$true] %s1447_s14 }
 0x16c   : > { %s1473_s1 = sshll.u32 %s8132_s12, 4  ;;  %s7403_s8 = scalar_lea.vmem %s1448_s14, 2048  ;;  %s1474_s1 = int_to_ptr.vmem [resolvable:$true] %s1473_s1 }
 0x16d   : > { %p7404_p13 = scmp.ne.s32.totalorder %s1448_s14, %s7403_s8  ;;  %p7411_p12 = scmp.lt.s32.totalorder %s1448_s14, %s1448_s14 }
 0x16e   : > { %p7412_p7 = scmp.lt.s32.totalorder %s7403_s8, %s7403_s8 }
 0x16f   : > { %p7406_p6 = pnand %p7404_p13, %p9698_p5 }
 0x170   : > { %6679 = dma.hbm_to_vmem [thread:$0]  (!%p9699_p11), %s9703_s20, 2048, %s1422_s24, [#allocation19], %s9701_s5, %s9701_s5, %s9700_s17  }
 0x171   : > { %p7407_p9 = pneg %p7406_p6  ;;  %p7413_p8 = por %p7412_p7, %p7411_p12 }
 0x173   : > { %p7414_p2 = pnand %p7413_p8, %p7407_p9 }
 0x175   : > { %7417 = shalt.err (!%p7414_p2)
}
 0x176   : > { %s9704_s24 = sld [smem:[#allocation96_spill]]  ;;  %s7429_s9 = scalar_lea.vmem %s1474_s1, 2048 }
 0x177   : > { %p7430_p10 = scmp.ne.s32.totalorder %s1474_s1, %s7429_s9  ;;  %p7437_p4 = scmp.lt.s32.totalorder %s1474_s1, %s1474_s1 }
 0x178   : > { %p7438_p0 = scmp.lt.s32.totalorder %s7429_s9, %s7429_s9 }
 0x179   : > { %p7432_p1 = pnand %p7430_p10, %p9698_p5 }
 0x17a   : > { %p7439_p13 = por %p7438_p0, %p7437_p4 }
 0x17b   : > { %p7433_p3 = pneg %p7432_p1 }
 0x17c   : > { %6685 = dma.hbm_to_vmem [thread:$0]  (!%p9699_p11), %s9704_s24, 2048, %s1448_s14, [#allocation22], %s9701_s5, %s9701_s5, %s9700_s17  }
 0x17d   : > { %p7440_p6 = pnand %p7439_p13, %p7433_p3 }
 0x17f   : > { %7443 = shalt.err (!%p7440_p6)
}
 0x180   : > { %s9705_s20 = sld [smem:[#allocation98_spill]]  ;;  %s8133_s6 = smov [#allocation29]  }
 0x181   : > { %s1511_s14 = sshll.u32 %s8133_s6, 4  ;;  %s8134_s12 = smov [#allocation32]   ;;  %s1512_s14 = int_to_ptr.vmem [resolvable:$true] %s1511_s14 }
 0x182   : > { %s1543_s8 = sshll.u32 %s8134_s12, 4  ;;  %s7455_s24 = scalar_lea.vmem %s1512_s14, 2048  ;;  %s1544_s8 = int_to_ptr.vmem [resolvable:$true] %s1543_s8 }
 0x183   : > { %p7456_p9 = scmp.ne.s32.totalorder %s1512_s14, %s7455_s24  ;;  %p7463_p8 = scmp.lt.s32.totalorder %s1512_s14, %s1512_s14 }
 0x184   : > { %p7464_p2 = scmp.lt.s32.totalorder %s7455_s24, %s7455_s24 }
 0x185   : > { %p7458_p12 = pnand %p7456_p9, %p9698_p5 }
 0x186   : > { %6691 = dma.hbm_to_vmem [thread:$0]  (!%p9699_p11), %s9705_s20, 2048, %s1474_s1, [#allocation25], %s9701_s5, %s9701_s5, %s9700_s17  }
 0x187   : > { %p7459_p7 = pneg %p7458_p12  ;;  %p7465_p10 = por %p7464_p2, %p7463_p8 }
 0x189   : > { %p7466_p1 = pnand %p7465_p10, %p7459_p7 }
 0x18b   : > { %7469 = shalt.err (!%p7466_p1)
}
 0x18c   : > { %s9706_s1 = sld [smem:[#allocation104_spill]]  ;;  %s7481_s9 = scalar_lea.vmem %s1544_s8, 2048 }
 0x18d   : > { %p7482_p3 = scmp.ne.s32.totalorder %s1544_s8, %s7481_s9  ;;  %p7489_p13 = scmp.lt.s32.totalorder %s1544_s8, %s1544_s8 }
 0x18e   : > { %p7490_p6 = scmp.lt.s32.totalorder %s7481_s9, %s7481_s9 }
 0x18f   : > { %p7484_p4 = pnand %p7482_p3, %p9698_p5 }
 0x190   : > { %p7491_p9 = por %p7490_p6, %p7489_p13 }
 0x191   : > { %p7485_p0 = pneg %p7484_p4 }
 0x192   : > { %6697 = dma.hbm_to_vmem [thread:$0]  (!%p9699_p11), %s9706_s1, 2048, %s1512_s14, [#allocation28], %s9701_s5, %s9701_s5, %s9700_s17  }
 0x193   : > { %p7492_p12 = pnand %p7491_p9, %p7485_p0 }
 0x195   : > { %7495 = shalt.err (!%p7492_p12)
}
 0x196   : > { %s9707_s20 = sld [smem:[#allocation108_spill]]  ;;  %s8135_s6 = smov [#allocation35]  }
 0x197   : > { %s1572_s14 = sshll.u32 %s8135_s6, 4  ;;  %s8136_s12 = smov [#allocation38]   ;;  %s1573_s14 = int_to_ptr.vmem [resolvable:$true] %s1572_s14 }
 0x198   : > { %s1601_s24 = sshll.u32 %s8136_s12, 4  ;;  %s7507_s1 = scalar_lea.vmem %s1573_s14, 2048  ;;  %s1602_s24 = int_to_ptr.vmem [resolvable:$true] %s1601_s24 }
 0x199   : > { %p7508_p7 = scmp.ne.s32.totalorder %s1573_s14, %s7507_s1  ;;  %p7515_p10 = scmp.lt.s32.totalorder %s1573_s14, %s1573_s14 }
 0x19a   : > { %p7516_p1 = scmp.lt.s32.totalorder %s7507_s1, %s7507_s1 }
 0x19b   : > { %p7510_p8 = pnand %p7508_p7, %p9698_p5 }
 0x19c   : > { %6703 = dma.hbm_to_vmem [thread:$0]  (!%p9699_p11), %s9707_s20, 2048, %s1544_s8, [#allocation31], %s9701_s5, %s9701_s5, %s9700_s17  }
 0x19d   : > { %p7511_p2 = pneg %p7510_p8  ;;  %p7517_p3 = por %p7516_p1, %p7515_p10 }
 0x19f   : > { %p7518_p4 = pnand %p7517_p3, %p7511_p2 }
 0x1a1   : > { %7521 = shalt.err (!%p7518_p4)
}
 0x1a2   : > { %s9708_s8 = sld [smem:[#allocation111_spill]]  ;;  %s7533_s9 = scalar_lea.vmem %s1602_s24, 2048 }
 0x1a3   : > { %p7534_p0 = scmp.ne.s32.totalorder %s1602_s24, %s7533_s9  ;;  %p7541_p9 = scmp.lt.s32.totalorder %s1602_s24, %s1602_s24 }
 0x1a4   : > { %p7542_p12 = scmp.lt.s32.totalorder %s7533_s9, %s7533_s9 }
 0x1a5   : > { %p7536_p13 = pnand %p7534_p0, %p9698_p5 }
 0x1a6   : > { %p7543_p7 = por %p7542_p12, %p7541_p9 }
 0x1a7   : > { %p7537_p6 = pneg %p7536_p13 }
 0x1a8   : > { %6709 = dma.hbm_to_vmem [thread:$0]  (!%p9699_p11), %s9708_s8, 2048, %s1573_s14, [#allocation34], %s9701_s5, %s9701_s5, %s9700_s17  }
 0x1a9   : > { %p7544_p8 = pnand %p7543_p7, %p7537_p6 }
 0x1ab   : > { %7547 = shalt.err (!%p7544_p8)
}
 0x1ac   : > { %s9709_s20 = sld [smem:[#allocation114_spill]]  ;;  %s8137_s6 = smov [#allocation41]  }
 0x1ad   : > { %s1627_s14 = sshll.u32 %s8137_s6, 4  ;;  %s8138_s12 = smov [#allocation44]   ;;  %s1628_s14 = int_to_ptr.vmem [resolvable:$true] %s1627_s14 }
 0x1ae   : > { %s1653_s1 = sshll.u32 %s8138_s12, 4  ;;  %s7559_s8 = scalar_lea.vmem %s1628_s14, 2048  ;;  %s1654_s1 = int_to_ptr.vmem [resolvable:$true] %s1653_s1 }
 0x1af   : > { %p7560_p2 = scmp.ne.s32.totalorder %s1628_s14, %s7559_s8  ;;  %p7567_p3 = scmp.lt.s32.totalorder %s1628_s14, %s1628_s14 }
 0x1b0   : > { %p7568_p4 = scmp.lt.s32.totalorder %s7559_s8, %s7559_s8 }
 0x1b1   : > { %p7562_p10 = pnand %p7560_p2, %p9698_p5 }
 0x1b2   : > { %6715 = dma.hbm_to_vmem [thread:$0]  (!%p9699_p11), %s9709_s20, 2048, %s1602_s24, [#allocation37], %s9701_s5, %s9701_s5, %s9700_s17  }
 0x1b3   : > { %p7563_p1 = pneg %p7562_p10  ;;  %p7569_p0 = por %p7568_p4, %p7567_p3 }
 0x1b5   : > { %p7570_p13 = pnand %p7569_p0, %p7563_p1 }
 0x1b7   : > { %7573 = shalt.err (!%p7570_p13)
}
 0x1b8   : > { %s9710_s24 = sld [smem:[#allocation115_spill]]  ;;  %s7585_s9 = scalar_lea.vmem %s1654_s1, 2048 }
 0x1b9   : > { %p7586_p6 = scmp.ne.s32.totalorder %s1654_s1, %s7585_s9  ;;  %p7593_p7 = scmp.lt.s32.totalorder %s1654_s1, %s1654_s1 }
 0x1ba   : > { %p7594_p8 = scmp.lt.s32.totalorder %s7585_s9, %s7585_s9 }
 0x1bb   : > { %p7588_p9 = pnand %p7586_p6, %p9698_p5 }
 0x1bc   : > { %p7595_p2 = por %p7594_p8, %p7593_p7 }
 0x1bd   : > { %p7589_p12 = pneg %p7588_p9 }
 0x1be   : > { %6721 = dma.hbm_to_vmem [thread:$0]  (!%p9699_p11), %s9710_s24, 2048, %s1628_s14, [#allocation40], %s9701_s5, %s9701_s5, %s9700_s17  }
 0x1bf   : > { %p7596_p10 = pnand %p7595_p2, %p7589_p12 }
 0x1c1   : > { %7599 = shalt.err (!%p7596_p10)
}
 0x1c2   : > { %s9711_s20 = sld [smem:[#allocation117_spill]]  ;;  %s8139_s6 = smov [#allocation47]  }
 0x1c3   : > { %s1691_s14 = sshll.u32 %s8139_s6, 4  ;;  %s8140_s12 = smov [#allocation50]   ;;  %s1692_s14 = int_to_ptr.vmem [resolvable:$true] %s1691_s14 }
 0x1c4   : > { %s1723_s8 = sshll.u32 %s8140_s12, 4  ;;  %s7611_s24 = scalar_lea.vmem %s1692_s14, 2048  ;;  %s1724_s8 = int_to_ptr.vmem [resolvable:$true] %s1723_s8 }
 0x1c5   : > { %p7612_p1 = scmp.ne.s32.totalorder %s1692_s14, %s7611_s24  ;;  %p7619_p0 = scmp.lt.s32.totalorder %s1692_s14, %s1692_s14 }
 0x1c6   : > { %p7620_p13 = scmp.lt.s32.totalorder %s7611_s24, %s7611_s24 }
 0x1c7   : > { %p7614_p3 = pnand %p7612_p1, %p9698_p5 }
 0x1c8   : > { %6727 = dma.hbm_to_vmem [thread:$0]  (!%p9699_p11), %s9711_s20, 2048, %s1654_s1, [#allocation43], %s9701_s5, %s9701_s5, %s9700_s17  }
 0x1c9   : > { %p7615_p4 = pneg %p7614_p3  ;;  %p7621_p6 = por %p7620_p13, %p7619_p0 }
 0x1cb   : > { %p7622_p9 = pnand %p7621_p6, %p7615_p4 }
 0x1cd   : > { %7625 = shalt.err (!%p7622_p9)
}
 0x1ce   : > { %s9712_s1 = sld [smem:[#allocation123_spill]]  ;;  %s7637_s9 = scalar_lea.vmem %s1724_s8, 2048 }
 0x1cf   : > { %p7638_p12 = scmp.ne.s32.totalorder %s1724_s8, %s7637_s9  ;;  %p7645_p2 = scmp.lt.s32.totalorder %s1724_s8, %s1724_s8 }
 0x1d0   : > { %p7646_p10 = scmp.lt.s32.totalorder %s7637_s9, %s7637_s9 }
 0x1d1   : > { %p7640_p7 = pnand %p7638_p12, %p9698_p5 }
 0x1d2   : > { %p7647_p1 = por %p7646_p10, %p7645_p2 }
 0x1d3   : > { %p7641_p8 = pneg %p7640_p7 }
 0x1d4   : > { %6733 = dma.hbm_to_vmem [thread:$0]  (!%p9699_p11), %s9712_s1, 2048, %s1692_s14, [#allocation46], %s9701_s5, %s9701_s5, %s9700_s17  }
 0x1d5   : > { %p7648_p3 = pnand %p7647_p1, %p7641_p8 }
 0x1d7   : > { %7651 = shalt.err (!%p7648_p3)
}
 0x1d8   : > { %s9713_s20 = sld [smem:[#allocation127_spill]]  ;;  %s1744_s14 = scalar_lea.vmem [#allocation6], %s8625_s29 }
 0x1d9   : > { %s9714_s6 = sld [smem:[#allocation84_spill]]  ;;  %s1751_s12 = sshll.u32 %s1744_s14, 4  ;;  %s1752_s12 = int_to_ptr.vmem [resolvable:$true] %s1751_s12 }
 0x1da   : > { %s9715_s28 = sand.u32 1, %s8054_s10   ;;  %p9716_p4 = scmp.ne.s32.totalorder %s9697_s13, 0 }
 0x1db   : > { %s1741_s24 = scalar_lea.sflag [#allocation7], %s9715_s28 }
 0x1de   : > { %6739 = dma.hbm_to_vmem [thread:$0]  (!%p9699_p11), %s9713_s20, 2048, %s1724_s8, [#allocation49], %s9701_s5, %s9701_s5, %s9700_s17  }
 0x1df   : > { %s8761_s15 = scalar_lea.hbm %s9714_s6, %s8628_s16  ;;  %s7657_s9 = scalar_lea.hbm %s9714_s6, 640 }
 0x1e0   : > { %s7652_s1 = scalar_lea.hbm %s8761_s15, 128  ;;  %p7658_p6 = scmp.lt.s32.totalorder %s8761_s15, %s9714_s6 }
 0x1e1   : > { %p7653_p5 = scmp.ne.s32.totalorder %s8761_s15, %s7652_s1  ;;  %p7659_p9 = scmp.lt.s32.totalorder %s7657_s9, %s7652_s1 }
 0x1e3   : > { %p7655_p0 = pnand %p7653_p5, %p9716_p4  ;;  %p7660_p12 = por %p7659_p9, %p7658_p6 }
 0x1e5   : > { %p7656_p13 = pneg %p7655_p0 }
 0x1e7   : > { %p7661_p11 = pnand %p7660_p12, %p7656_p13 }
 0x1e9   : > { %7664 = shalt.err (!%p7661_p11)
}
 0x1ea   : > { %s7665_s17 = scalar_lea.vmem %s1752_s12, 128  ;;  %s8141_s5 = smov [#allocation6]  }
 0x1eb   : > { %p7666_p7 = scmp.ne.s32.totalorder %s1752_s12, %s7665_s17  ;;  %s7670_s8 = sshll.u32 %s8141_s5, 4  ;;  %s7671_s8 = int_to_ptr.vmem [resolvable:$false] %s7670_s8 }
 0x1ec   : > { %s7672_s20 = scalar_lea.vmem %s7671_s8, 256  ;;  %p7673_p10 = scmp.lt.s32.totalorder %s1752_s12, %s7671_s8 }
 0x1ed   : > { %p7668_p8 = pnand %p7666_p7, %p9716_p4  ;;  %p7674_p1 = scmp.lt.s32.totalorder %s7672_s20, %s7665_s17 }
 0x1ef   : > { %p7669_p2 = pneg %p7668_p8  ;;  %p7675_p3 = por %p7674_p1, %p7673_p10 }
 0x1f1   : > { %p7676_p5 = pnand %p7675_p3, %p7669_p2 }
 0x1f3   : > { %7679 = shalt.err (!%p7676_p5)
}
 0x1f4   : > { %p9717_p0 = scmp.ne.s32.totalorder %s9696_s4, 0  ;;  %s9718_s14 = sld [smem:[#allocation86_spill]] }
 0x1f5   : > { %s1780_s1 = scalar_lea.vmem [#allocation11], %s8625_s29 }
 0x1f6   : > { %6743 = dma.hbm_to_vmem [thread:$0]  (!%p9717_p0), %s8761_s15, 128, %s1752_s12, %s1741_s24  }
 0x1f7   : > { %s1787_s9 = sshll.u32 %s1780_s1, 4  ;;  %s1788_s9 = int_to_ptr.vmem [resolvable:$true] %s1787_s9 }
 0x1fa   : > { %s1785_s28 = scalar_lea.hbm %s9718_s14, %s8628_s16  ;;  %s7685_s17 = scalar_lea.hbm %s9718_s14, 640 }
 0x1fb   : > { %s7680_s5 = scalar_lea.hbm %s1785_s28, 128  ;;  %p7686_p12 = scmp.lt.s32.totalorder %s1785_s28, %s9718_s14 }
 0x1fc   : > { %p7681_p13 = scmp.ne.s32.totalorder %s1785_s28, %s7680_s5  ;;  %p7687_p11 = scmp.lt.s32.totalorder %s7685_s17, %s7680_s5 }
 0x1fe   : > { %p7683_p6 = pnand %p7681_p13, %p9716_p4  ;;  %p7688_p7 = por %p7687_p11, %p7686_p12 }
 0x200   : > { %p7684_p9 = pneg %p7683_p6 }
 0x202   : > { %p7689_p8 = pnand %p7688_p7, %p7684_p9 }
 0x204   : > { %7692 = shalt.err (!%p7689_p8)
}
 0x205   : > { %s7693_s8 = scalar_lea.vmem %s1788_s9, 128  ;;  %s8142_s15 = smov [#allocation11]  }
 0x206   : > { %p7694_p2 = scmp.ne.s32.totalorder %s1788_s9, %s7693_s8  ;;  %s7698_s12 = sshll.u32 %s8142_s15, 4  ;;  %s7699_s12 = int_to_ptr.vmem [resolvable:$false] %s7698_s12 }
 0x207   : > { %s7700_s24 = scalar_lea.vmem %s7699_s12, 256  ;;  %p7701_p3 = scmp.lt.s32.totalorder %s1788_s9, %s7699_s12 }
 0x208   : > { %p7696_p10 = pnand %p7694_p2, %p9716_p4  ;;  %p7702_p5 = scmp.lt.s32.totalorder %s7700_s24, %s7693_s8 }
 0x20a   : > { %p7697_p1 = pneg %p7696_p10  ;;  %p7703_p13 = por %p7702_p5, %p7701_p3 }
 0x20c   : > { %p7704_p6 = pnand %p7703_p13, %p7697_p1 }
 0x20e   : > { %7707 = shalt.err (!%p7704_p6)
}
 0x20f   : > { %s9719_s20 = sld [smem:[#allocation87_spill]]  ;;  %s1798_s5 = scalar_lea.vmem [#allocation12], %s8625_s29 }
 0x210   : > { %6749 = dma.hbm_to_vmem [thread:$0]  (!%p9717_p0), %s1785_s28, 128, %s1788_s9, %s8642_s21  }
 0x211   : > { %s1805_s17 = sshll.u32 %s1798_s5, 4  ;;  %s9720_s8 = sand.u32 1, %s8058_s11   ;;  %s1806_s17 = int_to_ptr.vmem [resolvable:$true] %s1805_s17 }
 0x212   : > { %s1795_s15 = scalar_lea.sflag [#allocation13], %s9720_s8 }
 0x215   : > { %s8792_s1 = scalar_lea.hbm %s9719_s20, %s8628_s16  ;;  %s7713_s24 = scalar_lea.hbm %s9719_s20, 640 }
 0x216   : > { %s7708_s12 = scalar_lea.hbm %s8792_s1, 128  ;;  %p7714_p7 = scmp.lt.s32.totalorder %s8792_s1, %s9719_s20 }
 0x217   : > { %p7709_p9 = scmp.ne.s32.totalorder %s8792_s1, %s7708_s12  ;;  %p7715_p8 = scmp.lt.s32.totalorder %s7713_s24, %s7708_s12 }
 0x219   : > { %p7711_p12 = pnand %p7709_p9, %p9716_p4  ;;  %p7716_p2 = por %p7715_p8, %p7714_p7 }
 0x21b   : > { %p7712_p11 = pneg %p7711_p12 }
 0x21d   : > { %p7717_p10 = pnand %p7716_p2, %p7712_p11 }
 0x21f   : > { %7720 = shalt.err (!%p7717_p10)
}
 0x220   : > { %s7721_s16 = scalar_lea.vmem %s1806_s17, 128  ;;  %s8143_s21 = smov [#allocation12]  }
 0x221   : > { %p7722_p1 = scmp.ne.s32.totalorder %s1806_s17, %s7721_s16  ;;  %s7726_s29 = sshll.u32 %s8143_s21, 4  ;;  %s7727_s29 = int_to_ptr.vmem [resolvable:$false] %s7726_s29 }
 0x222   : > { %s7728_s28 = scalar_lea.vmem %s7727_s29, 256  ;;  %p7729_p13 = scmp.lt.s32.totalorder %s1806_s17, %s7727_s29 }
 0x223   : > { %p7724_p3 = pnand %p7722_p1, %p9716_p4  ;;  %p7730_p6 = scmp.lt.s32.totalorder %s7728_s28, %s7721_s16 }
 0x225   : > { %p7725_p5 = pneg %p7724_p3  ;;  %p7731_p9 = por %p7730_p6, %p7729_p13 }
 0x227   : > { %p7732_p12 = pnand %p7731_p9, %p7725_p5 }
 0x229   : > { %7735 = shalt.err (!%p7732_p12)
}
 0x22a   : > { %6752 = dma.hbm_to_vmem [thread:$0]  (!%p9717_p0), %s8792_s1, 128, %s1806_s17, %s1795_s15  }
 0x22b   : > { %p9721_p11 = scmp.ne.s32.totalorder %s9677_s22, 0 }
 0x22c   : > { %s8812_s13 = sand.u32 (!%p9721_p11), 1, %s8050_s7   ;;  %p9722_p4 = scmp.ne.s32.totalorder (!%p9721_p11), %s9693_s30, 0 }
 0x22d   : > { %1814 = sbr.rel (%p9721_p11) target bundleno = 2389 (0x955), region = 204  ;;  %s8815_s9 = sshll.u32 (!%p9721_p11), %s8812_s13, 3 }
 0x22e   : > { %s1817_s5 = scalar_lea.sflag (!%p9721_p11), [#allocation7], %s8812_s13  ;;  %s1820_s8 = scalar_lea.vmem (!%p9721_p11), [#allocation6], %s8815_s9 }
 0x232   : > { %7961 = dma.done.wait (%p9722_p4), %s1817_s5, 128  }
 0x233   : > { %7963 = vsyncadd (%p9722_p4), %s1817_s5, 4294967168  ;;  %s8824_s4 = sand.u32 1, %s8450_s18   ;;  %s1829_s1 = scalar_lea.vmem [#allocation9], %s8815_s9 }
 0x234   : > { %s1826_s22 = scalar_lea.sflag [#allocation10], %s8824_s4 }
 0x235   : > { %7965 = dma.done.wait (%p9722_p4), %s1826_s22, 256  }
 0x236   : > { %7967 = vsyncadd (%p9722_p4), %s1826_s22, 4294967040  ;;  %s1838_s17 = scalar_lea.vmem [#allocation11], %s8815_s9  ;;  %s1844_s15 = scalar_lea.sflag [#allocation13], %s8824_s4 }
 0x237   : > { %7969 = dma.done.wait (%p9722_p4), %s1844_s15, 128  }
 0x238   : > { %7971 = vsyncadd (%p9722_p4), %s1844_s15, 4294967168  ;;  %p9723_p0 = scmp.eq.s32.totalorder %s8450_s18, 0 }
 0x23a   : > { %7973 = dma.done.wait (%p9723_p0), [#allocation13], 128   ;;  %p9724_p7 = pmov %p9723_p0 }
 0x23b   : > { %p9725_p8 = pmov %p9723_p0 }
 0x23c   : > { %7975 = vsyncadd (%p9724_p7), [#allocation13], 4294967168 }
 0x23d   : > { %7977 = dma.done.wait (%p9725_p8), [#allocation16], 4096   ;;  %p9726_p2 = pmov %p9723_p0 }
 0x23e   : > { %p9727_p10 = pmov %p9723_p0 }
 0x23f   : > { %7979 = vsyncadd (%p9726_p2), [#allocation16], 4294963200 }
 0x240   : > { %7981 = dma.done.wait (%p9727_p10), [#allocation19], 4096   ;;  %p9728_p1 = pmov %p9723_p0 }
 0x241   : > { %p9729_p3 = pmov %p9723_p0 }
 0x242   : > { %7983 = vsyncadd (%p9728_p1), [#allocation19], 4294963200 }
 0x243   : > { %7985 = dma.done.wait (%p9729_p3), [#allocation22], 4096   ;;  %p9730_p5 = pmov %p9723_p0 }
 0x244   : > { %p9731_p13 = pmov %p9723_p0 }
 0x245   : > { %7987 = vsyncadd (%p9730_p5), [#allocation22], 4294963200 }
 0x246   : > { %7989 = dma.done.wait (%p9731_p13), [#allocation25], 4096   ;;  %p9732_p6 = pmov %p9723_p0 }
 0x247   : > { %p9733_p9 = pmov %p9723_p0 }
 0x248   : > { %7991 = vsyncadd (%p9732_p6), [#allocation25], 4294963200 }
 0x249   : > { %7993 = dma.done.wait (%p9733_p9), [#allocation28], 4096   ;;  %p9734_p12 = pmov %p9723_p0 }
 0x24a   : > { %p9735_p11 = pmov %p9723_p0 }
 0x24b   : > { %7995 = vsyncadd (%p9734_p12), [#allocation28], 4294963200 }
 0x24c   : > { %7997 = dma.done.wait (%p9735_p11), [#allocation31], 4096   ;;  %p9736_p4 = pmov %p9723_p0 }
 0x24e   : > { %7999 = vsyncadd (%p9736_p4), [#allocation31], 4294963200 }
 0x24f   : > { %8001 = dma.done.wait (%p9723_p0), [#allocation34], 4096   ;;  %p9737_p7 = pmov %p9723_p0 }
 0x250   : > { %p9738_p8 = pmov %p9723_p0 }
 0x251   : > { %8003 = vsyncadd (%p9737_p7), [#allocation34], 4294963200 }
 0x252   : > { %8005 = dma.done.wait (%p9738_p8), [#allocation37], 4096   ;;  %p9739_p2 = pmov %p9723_p0 }
 0x253   : > { %p9740_p10 = pmov %p9723_p0 }
 0x254   : > { %8007 = vsyncadd (%p9739_p2), [#allocation37], 4294963200 }
 0x255   : > { %8009 = dma.done.wait (%p9740_p10), [#allocation40], 4096   ;;  %p9741_p1 = pmov %p9723_p0 }
 0x256   : > { %p9742_p3 = pmov %p9723_p0 }
 0x257   : > { %8011 = vsyncadd (%p9741_p1), [#allocation40], 4294963200 }
 0x258   : > { %8013 = dma.done.wait (%p9742_p3), [#allocation43], 4096   ;;  %p9743_p5 = pmov %p9723_p0 }
 0x259   : > { %p9744_p13 = pmov %p9723_p0 }
 0x25a   : > { %8015 = vsyncadd (%p9743_p5), [#allocation43], 4294963200 }
 0x25b   : > { %8017 = dma.done.wait (%p9744_p13), [#allocation46], 4096   ;;  %p9745_p6 = pmov %p9723_p0 }
 0x25c   : > { %p9746_p9 = pmov %p9723_p0 }
 0x25d   : > { %8019 = vsyncadd (%p9745_p6), [#allocation46], 4294963200 }
 0x25e   : > { %8021 = dma.done.wait (%p9746_p9), [#allocation49], 4096   ;;  %p9747_p12 = pmov %p9723_p0 }
 0x25f   : > { %s2070_s30 = scalar_lea.vmem [#allocation51], %s8815_s9  ;;  %s2077_s24 = scalar_lea.vmem [#allocation52], %s8815_s9 }
 0x260   : > { %8023 = vsyncadd (%p9747_p12), [#allocation49], 4294963200  ;;  %s2105_s28 = scalar_lea.vmem [#allocation58], %s8815_s9  ;;  %s9619_s5 = scalar_lea.vmem [#allocation60], %s8815_s9 }
 0x261   : > { %s9618_s22 = scalar_lea.vmem [#allocation61], %s8815_s9  ;;  %p9748_p11 = scmp.ne.s32.totalorder %s8450_s18, 0 }
 0x262   : > { %s9749_s15 = sld [smem:[#allocation89_spill]] (!%p9748_p11) }
 0x263   : > { %2123 = sbr.rel (%p9748_p11) target bundleno = 619 (0x26b), region = 324 }
 0x268   : > { %v2124_v0 = vld [vmem:[#allocation14] sm:$0xff] }
 0x269   : > { %v2128_v1 = vld [vmem:[%s9749_s15] sm:$0xff]  ;;  %2125 = vst [vmem:[#allocation2] sm:$0xff] %v2124_v0  ;;  %2127 = vst [vmem:[#allocation3] sm:$0xff] %v2124_v0 }
 0x26a   : > { %2129 = vst [vmem:[#allocation4] sm:$0xff] %v2128_v1  ;;  %2131 = vst [vmem:[#allocation5] sm:$0xff] %v2128_v1 }
 0x26b PF: > { %v2166_v2 = vld [vmem:[#allocation17 + $0x78] sm:$0xff]  ;;  %v8144_v4 = vmov 0.0   ;;  %v2165_v5 = vld [vmem:[#allocation17 + $0x70] sm:$0xff]  ;;  %v2164_v7 = vld [vmem:[#allocation17 + $0x68] sm:$0xff]  ;;  %vm8145_vm0 = vmmov 0   ;;  %s9751_s15 = sld [smem:[#allocation100_spill]] }
 0x26c   : > { %v2150_v3 = vld [vmem:[#allocation15 + $0x78] sm:$0xff]  ;;  %5700 = vmatprep.subr.mxu0 %v8144_v4  ;;  %5735 = vmatprep.subr.mxu1 %v8144_v4  ;;  %v2149_v6 = vld [vmem:[#allocation15 + $0x70] sm:$0xff]  ;;  %v2148_v8 = vld [vmem:[#allocation15 + $0x68] sm:$0xff]  ;;  %s9753_s16 = sld [smem:[#allocation103_spill]]  ;;  %p9765_p0 = scmp.ne.s32.totalorder %s9694_s2, 0 }
 0x26d   : > { %5701 = vmatpush3.msra.mxu0 %v2166_v2  ;;  %5736 = vmatpush3.msra.mxu1 %v2150_v3  ;;  %v2163_v9 = vld [vmem:[#allocation17 + $0x60] sm:$0xff]  ;;  %v2162_v11 = vld [vmem:[#allocation17 + $0x58] sm:$0xff]  ;;  %v2161_v13 = vld [vmem:[#allocation17 + $0x50] sm:$0xff]  ;;  %s9754_s12 = sld [smem:[#allocation102_spill]] }
 0x26e   : > { %5702 = vmatprep.subr.mxu0 %v8144_v4  ;;  %5737 = vmatprep.subr.mxu1 %v8144_v4  ;;  %v2147_v10 = vld [vmem:[#allocation15 + $0x60] sm:$0xff]  ;;  %v2146_v12 = vld [vmem:[#allocation15 + $0x58] sm:$0xff]  ;;  %v2145_v14 = vld [vmem:[#allocation15 + $0x50] sm:$0xff] }
 0x26f   : > { %5703 = vmatpush3.msra.mxu0 %v2165_v5  ;;  %5738 = vmatpush3.msra.mxu1 %v2149_v6  ;;  %v2160_v15 = vld [vmem:[#allocation17 + $0x48] sm:$0xff]  ;;  %v2159_v17 = vld [vmem:[#allocation17 + $0x40] sm:$0xff]  ;;  %v2158_v19 = vld [vmem:[#allocation17 + $0x38] sm:$0xff] }
 0x270   : > { %5704 = vmatprep.subr.mxu0 %v8144_v4  ;;  %5739 = vmatprep.subr.mxu1 %v8144_v4  ;;  %v2144_v16 = vld [vmem:[#allocation15 + $0x48] sm:$0xff]  ;;  %v2143_v18 = vld [vmem:[#allocation15 + $0x40] sm:$0xff]  ;;  %v2142_v20 = vld [vmem:[#allocation15 + $0x38] sm:$0xff] }
 0x271   : > { %5705 = vmatpush3.msra.mxu0 %v2164_v7  ;;  %5740 = vmatpush3.msra.mxu1 %v2148_v8  ;;  %v2157_v21 = vld [vmem:[#allocation17 + $0x30] sm:$0xff]  ;;  %v2156_v23 = vld [vmem:[#allocation17 + $0x28] sm:$0xff]  ;;  %v2155_v25 = vld [vmem:[#allocation17 + $0x20] sm:$0xff] }
 0x272   : > { %5706 = vmatprep.subr.mxu0 %v8144_v4  ;;  %5741 = vmatprep.subr.mxu1 %v8144_v4  ;;  %v2141_v22 = vld [vmem:[#allocation15 + $0x30] sm:$0xff]  ;;  %v2140_v24 = vld [vmem:[#allocation15 + $0x28] sm:$0xff]  ;;  %v2139_v26 = vld [vmem:[#allocation15 + $0x20] sm:$0xff] }
 0x273   : > { %5707 = vmatpush3.msra.mxu0 %v2163_v9  ;;  %5742 = vmatpush3.msra.mxu1 %v2147_v10  ;;  %v2154_v27 = vld [vmem:[#allocation17 + $0x18] sm:$0xff]  ;;  %v2153_v29 = vld [vmem:[#allocation17 + $0x10] sm:$0xff]  ;;  %v2152_v31 = vld [vmem:[#allocation17 + $0x8] sm:$0xff] }
 0x274   : > { %5708 = vmatprep.subr.mxu0 %v8144_v4  ;;  %5743 = vmatprep.subr.mxu1 %v8144_v4  ;;  %v2138_v28 = vld [vmem:[#allocation15 + $0x18] sm:$0xff]  ;;  %v2137_v30 = vld [vmem:[#allocation15 + $0x10] sm:$0xff]  ;;  %v2136_v32 = vld [vmem:[#allocation15 + $0x8] sm:$0xff] }
 0x275   : > { %5709 = vmatpush3.msra.mxu0 %v2162_v11  ;;  %5744 = vmatpush3.msra.mxu1 %v2146_v12  ;;  %v2151_v33 = vld [vmem:[#allocation17] sm:$0xff]  ;;  %v2132_v34 = vld [vmem:[#allocation2] sm:$0xff]  ;;  %v2321_v38 = vld [vmem:[#allocation18 + $0x70] sm:$0xff] }
 0x276   : > { %5710 = vmatprep.subr.mxu0 %v8144_v4  ;;  %5745 = vmatprep.subr.mxu1 %v8144_v4  ;;  %v2135_v35 = vld [vmem:[#allocation15] sm:$0xff]  ;;  %v2322_v37 = vld [vmem:[#allocation18 + $0x78] sm:$0xff]  ;;  %v2320_v40 = vld [vmem:[#allocation18 + $0x68] sm:$0xff] }
 0x277   : > { %5711 = vmatpush3.msra.mxu0 %v2161_v13  ;;  %5746 = vmatpush3.msra.mxu1 %v2145_v14  ;;  %v2134_v36 = vld [vmem:[%s1820_s8] sm:$0xff]  ;;  %v2466_v41 = vld [vmem:[#allocation24 + $0x70] sm:$0xff]  ;;  %v2465_v43 = vld [vmem:[#allocation24 + $0x68] sm:$0xff]  ;;  %s9750_s8 = sld [smem:[#allocation93_spill]] }
 0x278   : > { %5712 = vmatprep.subr.mxu0 %v8144_v4  ;;  %5747 = vmatprep.subr.mxu1 %v8144_v4  ;;  %v2467_v39 = vld [vmem:[#allocation24 + $0x78] sm:$0xff]  ;;  %v2319_v42 = vld [vmem:[#allocation18 + $0x60] sm:$0xff]  ;;  %v2317_v46 = vld [vmem:[#allocation18 + $0x50] sm:$0xff] }
 0x279   : > { %5713 = vmatpush3.msra.mxu0 %v2160_v15  ;;  %5748 = vmatpush3.msra.mxu1 %v2144_v16  ;;  %v2318_v44 = vld [vmem:[#allocation18 + $0x58] sm:$0xff]  ;;  %v2464_v45 = vld [vmem:[#allocation24 + $0x60] sm:$0xff]  ;;  %v2316_v48 = vld [vmem:[#allocation18 + $0x48] sm:$0xff] }
 0x27a   : > { %5714 = vmatprep.subr.mxu0 %v8144_v4  ;;  %5749 = vmatprep.subr.mxu1 %v8144_v4  ;;  %v2463_v47 = vld [vmem:[#allocation24 + $0x58] sm:$0xff]  ;;  %v2462_v49 = vld [vmem:[#allocation24 + $0x50] sm:$0xff]  ;;  %v2315_v50 = vld [vmem:[#allocation18 + $0x40] sm:$0xff] }
 0x27b   : > { %5715 = vmatpush3.msra.mxu0 %v2159_v17  ;;  %5750 = vmatpush3.msra.mxu1 %v2143_v18  ;;  %v2461_v51 = vld [vmem:[#allocation24 + $0x48] sm:$0xff]  ;;  %v2314_v52 = vld [vmem:[#allocation18 + $0x38] sm:$0xff]  ;;  %v2460_v53 = vld [vmem:[#allocation24 + $0x40] sm:$0xff] }
 0x27c   : > { %5716 = vmatprep.subr.mxu0 %v8144_v4  ;;  %5751 = vmatprep.subr.mxu1 %v8144_v4  ;;  %v2313_v54 = vld [vmem:[#allocation18 + $0x30] sm:$0xff]  ;;  %v2459_v55 = vld [vmem:[#allocation24 + $0x38] sm:$0xff]  ;;  %v2312_v56 = vld [vmem:[#allocation18 + $0x28] sm:$0xff] }
 0x27d   : > { %5717 = vmatpush3.msra.mxu0 %v2158_v19  ;;  %5752 = vmatpush3.msra.mxu1 %v2142_v20  ;;  %v2458_v57 = vld [vmem:[#allocation24 + $0x30] sm:$0xff]  ;;  %v2311_v58 = vld [vmem:[#allocation18 + $0x20] sm:$0xff]  ;;  %v2457_v59 = vld [vmem:[#allocation24 + $0x28] sm:$0xff] }
 0x27e   : > { %5718 = vmatprep.subr.mxu0 %v8144_v4  ;;  %5753 = vmatprep.subr.mxu1 %v8144_v4  ;;  %v2310_v60 = vld [vmem:[#allocation18 + $0x18] sm:$0xff]  ;;  %v2456_v61 = vld [vmem:[#allocation24 + $0x20] sm:$0xff]  ;;  %v2309_v62 = vld [vmem:[#allocation18 + $0x10] sm:$0xff] }
 0x27f   : > { %5719 = vmatpush3.msra.mxu0 %v2157_v21  ;;  %5754 = vmatpush3.msra.mxu1 %v2141_v22  ;;  %v2455_v63 = vld [vmem:[#allocation24 + $0x18] sm:$0xff]  ;;  %v2308_v0 = vld [vmem:[#allocation18 + $0x8] sm:$0xff]  ;;  %v2454_v1 = vld [vmem:[#allocation24 + $0x10] sm:$0xff] }
 0x280   : > { %5720 = vmatprep.subr.mxu0 %v8144_v4  ;;  %5755 = vmatprep.subr.mxu1 %v8144_v4  ;;  %v2307_v2 = vld [vmem:[#allocation18] sm:$0xff]  ;;  %v2453_v5 = vld [vmem:[#allocation24 + $0x8] sm:$0xff]  ;;  %v2483_v8 = vld [vmem:[#allocation26 + $0x78] sm:$0xff] }
 0x281   : > { %5721 = vmatpush3.msra.mxu0 %v2156_v23  ;;  %5756 = vmatpush3.msra.mxu1 %v2140_v24  ;;  %v2133_v3 = vld [vmem:[#allocation3] sm:$0xff]  ;;  %v8973_v7 = vld [vmem:[#allocation4] sm:$0xff]  ;;  %v2482_v9 = vld [vmem:[#allocation26 + $0x70] sm:$0xff] }
 0x282   : > { %5722 = vmatprep.subr.mxu0 %v8144_v4  ;;  %5757 = vmatprep.subr.mxu1 %v8144_v4  ;;  %v2452_v6 = vld [vmem:[#allocation24] sm:$0xff]  ;;  %v2481_v10 = vld [vmem:[#allocation26 + $0x68] sm:$0xff]  ;;  %v2479_v12 = vld [vmem:[#allocation26 + $0x58] sm:$0xff] }
 0x283   : > { %5723 = vmatpush3.msra.mxu0 %v2155_v25  ;;  %5758 = vmatpush3.msra.mxu1 %v2139_v26  ;;  %v2480_v11 = vld [vmem:[#allocation26 + $0x60] sm:$0xff]  ;;  %v2478_v13 = vld [vmem:[#allocation26 + $0x50] sm:$0xff]  ;;  %v2477_v14 = vld [vmem:[#allocation26 + $0x48] sm:$0xff] }
 0x284   : > { %5724 = vmatprep.subr.mxu0 %v8144_v4  ;;  %5759 = vmatprep.subr.mxu1 %v8144_v4  ;;  %v2476_v15 = vld [vmem:[#allocation26 + $0x40] sm:$0xff]  ;;  %v2475_v16 = vld [vmem:[#allocation26 + $0x38] sm:$0xff]  ;;  %v2474_v17 = vld [vmem:[#allocation26 + $0x30] sm:$0xff] }
 0x285   : > { %5725 = vmatpush3.msra.mxu0 %v2154_v27  ;;  %5760 = vmatpush3.msra.mxu1 %v2138_v28  ;;  %v2473_v18 = vld [vmem:[#allocation26 + $0x28] sm:$0xff]  ;;  %v2472_v19 = vld [vmem:[#allocation26 + $0x20] sm:$0xff]  ;;  %v2471_v20 = vld [vmem:[#allocation26 + $0x18] sm:$0xff] }
 0x286   : > { %5726 = vmatprep.subr.mxu0 %v8144_v4  ;;  %5761 = vmatprep.subr.mxu1 %v8144_v4  ;;  %v2470_v21 = vld [vmem:[#allocation26 + $0x10] sm:$0xff]  ;;  %v2469_v22 = vld [vmem:[#allocation26 + $0x8] sm:$0xff]  ;;  %v2419_v23 = vld [vmem:[#allocation20 + $0x78] sm:$0xff] }
 0x287   : > { %5727 = vmatpush3.msra.mxu0 %v2153_v29  ;;  %5762 = vmatpush3.msra.mxu1 %v2137_v30  ;;  %v2468_v24 = vld [vmem:[#allocation26] sm:$0xff]  ;;  %v2418_v25 = vld [vmem:[#allocation20 + $0x70] sm:$0xff]  ;;  %v2451_v26 = vld [vmem:[#allocation23 + $0x78] sm:$0xff] }
 0x288   : > { %5728 = vmatprep.subr.mxu0 %v8144_v4  ;;  %5763 = vmatprep.subr.mxu1 %v8144_v4  ;;  %v2417_v27 = vld [vmem:[#allocation20 + $0x68] sm:$0xff]  ;;  %v2450_v28 = vld [vmem:[#allocation23 + $0x70] sm:$0xff]  ;;  %v2416_v29 = vld [vmem:[#allocation20 + $0x60] sm:$0xff] }
 0x289   : > { %5729 = vmatpush3.msra.mxu0 %v2152_v31  ;;  %5764 = vmatpush3.msra.mxu1 %v2136_v32  ;;  %v2449_v30 = vld [vmem:[#allocation23 + $0x68] sm:$0xff]  ;;  %v2415_v31 = vld [vmem:[#allocation20 + $0x58] sm:$0xff]  ;;  %v2448_v32 = vld [vmem:[#allocation23 + $0x60] sm:$0xff] }
 0x28a   : > { %5730 = vmatprep.subr.mxu0 %v8144_v4  ;;  %5732 = vmatprep.mubr.msk.f32.mxu0 %vm8145_vm0, %v8144_v4 }
 0x28b   : > { %5731 = vmatpush3.msra.mxu0 %v2151_v33  ;;  %5765 = vmatprep.subr.mxu1 %v8144_v4  ;;  %v2414_v33 = vld [vmem:[#allocation20 + $0x50] sm:$0xff] }
 0x28c   : > { %5733 = vmatmul.mubr.f32.vlgmr.msra.gmra.mxu0 %v2132_v34  ;;  %5766 = vmatpush3.msra.mxu1 %v2135_v35  ;;  %v2447_v34 = vld [vmem:[#allocation23 + $0x58] sm:$0xff]  ;;  %v2413_v35 = vld [vmem:[#allocation20 + $0x48] sm:$0xff] }
 0x28d   : > { %5767 = vmatprep.mubr.msk.f32.mxu1 %vm8145_vm0, %v8144_v4  ;;  %5770 = vmatprep.subr.mxu0 %v8144_v4 }
 0x28e   : > { %5768 = vmatmul.mubr.f32.vlgmr.msra.gmra.mxu1 %v2134_v36  ;;  %5771 = vmatpush3.msra.mxu0 %v2322_v37  ;;  %v2446_v36 = vld [vmem:[#allocation23 + $0x50] sm:$0xff]  ;;  %v2412_v37 = vld [vmem:[#allocation20 + $0x40] sm:$0xff] }
 0x28f   : > { %5772 = vmatprep.subr.mxu0 %v8144_v4  ;;  %5802 = vmatprep.mubr.msk.f32.mxu0 %vm8145_vm0, %v8144_v4 }
 0x290   : > { %5773 = vmatpush3.msra.mxu0 %v2321_v38  ;;  %5805 = vmatprep.subr.mxu1 %v8144_v4  ;;  %v2445_v38 = vld [vmem:[#allocation23 + $0x48] sm:$0xff] }
 0x291   : > { %5774 = vmatprep.subr.mxu0 %v8144_v4  ;;  %5806 = vmatpush3.msra.mxu1 %v2467_v39  ;;  %v2411_v39 = vld [vmem:[#allocation20 + $0x38] sm:$0xff] }
 0x292   : > { %5775 = vmatpush3.msra.mxu0 %v2320_v40  ;;  %5807 = vmatprep.subr.mxu1 %v8144_v4  ;;  %v2444_v40 = vld [vmem:[#allocation23 + $0x40] sm:$0xff] }
 0x293   : > { %5776 = vmatprep.subr.mxu0 %v8144_v4  ;;  %5808 = vmatpush3.msra.mxu1 %v2466_v41  ;;  %v2410_v41 = vld [vmem:[#allocation20 + $0x30] sm:$0xff] }
 0x294   : > { %5777 = vmatpush3.msra.mxu0 %v2319_v42  ;;  %5809 = vmatprep.subr.mxu1 %v8144_v4  ;;  %v2443_v42 = vld [vmem:[#allocation23 + $0x38] sm:$0xff] }
 0x295   : > { %5778 = vmatprep.subr.mxu0 %v8144_v4  ;;  %5810 = vmatpush3.msra.mxu1 %v2465_v43  ;;  %v2409_v43 = vld [vmem:[#allocation20 + $0x28] sm:$0xff] }
 0x296   : > { %5779 = vmatpush3.msra.mxu0 %v2318_v44  ;;  %5811 = vmatprep.subr.mxu1 %v8144_v4  ;;  %v2442_v44 = vld [vmem:[#allocation23 + $0x30] sm:$0xff] }
 0x297   : > { %5780 = vmatprep.subr.mxu0 %v8144_v4  ;;  %5812 = vmatpush3.msra.mxu1 %v2464_v45  ;;  %v2408_v45 = vld [vmem:[#allocation20 + $0x20] sm:$0xff] }
 0x298   : > { %5781 = vmatpush3.msra.mxu0 %v2317_v46  ;;  %5813 = vmatprep.subr.mxu1 %v8144_v4  ;;  %v2441_v46 = vld [vmem:[#allocation23 + $0x28] sm:$0xff] }
 0x299   : > { %5782 = vmatprep.subr.mxu0 %v8144_v4  ;;  %5814 = vmatpush3.msra.mxu1 %v2463_v47  ;;  %v2407_v47 = vld [vmem:[#allocation20 + $0x18] sm:$0xff] }
 0x29a   : > { %5783 = vmatpush3.msra.mxu0 %v2316_v48  ;;  %5815 = vmatprep.subr.mxu1 %v8144_v4  ;;  %v2440_v48 = vld [vmem:[#allocation23 + $0x20] sm:$0xff] }
 0x29b   : > { %5784 = vmatprep.subr.mxu0 %v8144_v4  ;;  %5816 = vmatpush3.msra.mxu1 %v2462_v49  ;;  %v2439_v49 = vld [vmem:[#allocation23 + $0x18] sm:$0xff] }
 0x29c   : > { %5785 = vmatpush3.msra.mxu0 %v2315_v50  ;;  %5817 = vmatprep.subr.mxu1 %v8144_v4  ;;  %v2406_v50 = vld [vmem:[#allocation20 + $0x10] sm:$0xff] }
 0x29d   : > { %5786 = vmatprep.subr.mxu0 %v8144_v4  ;;  %5818 = vmatpush3.msra.mxu1 %v2461_v51  ;;  %v2438_v51 = vld [vmem:[#allocation23 + $0x10] sm:$0xff] }
 0x29e   : > { %5787 = vmatpush3.msra.mxu0 %v2314_v52  ;;  %5819 = vmatprep.subr.mxu1 %v8144_v4  ;;  %v2405_v52 = vld [vmem:[#allocation20 + $0x8] sm:$0xff] }
 0x29f   : > { %5788 = vmatprep.subr.mxu0 %v8144_v4  ;;  %5820 = vmatpush3.msra.mxu1 %v2460_v53  ;;  %v2437_v53 = vld [vmem:[#allocation23 + $0x8] sm:$0xff] }
 0x2a0   : > { %5789 = vmatpush3.msra.mxu0 %v2313_v54  ;;  %5821 = vmatprep.subr.mxu1 %v8144_v4  ;;  %v2404_v54 = vld [vmem:[#allocation20] sm:$0xff] }
 0x2a1   : > { %5790 = vmatprep.subr.mxu0 %v8144_v4  ;;  %5822 = vmatpush3.msra.mxu1 %v2459_v55  ;;  %v2436_v55 = vld [vmem:[#allocation23] sm:$0xff] }
 0x2a2   : > { %5791 = vmatpush3.msra.mxu0 %v2312_v56  ;;  %5823 = vmatprep.subr.mxu1 %v8144_v4 }
 0x2a3   : > { %5792 = vmatprep.subr.mxu0 %v8144_v4  ;;  %5824 = vmatpush3.msra.mxu1 %v2458_v57 }
 0x2a4   : > { %5793 = vmatpush3.msra.mxu0 %v2311_v58  ;;  %5825 = vmatprep.subr.mxu1 %v8144_v4 }
 0x2a5   : > { %5794 = vmatprep.subr.mxu0 %v8144_v4  ;;  %5826 = vmatpush3.msra.mxu1 %v2457_v59 }
 0x2a6   : > { %5795 = vmatpush3.msra.mxu0 %v2310_v60  ;;  %5827 = vmatprep.subr.mxu1 %v8144_v4 }
 0x2a7   : > { %5796 = vmatprep.subr.mxu0 %v8144_v4  ;;  %5828 = vmatpush3.msra.mxu1 %v2456_v61 }
 0x2a8   : > { %5797 = vmatpush3.msra.mxu0 %v2309_v62  ;;  %5829 = vmatprep.subr.mxu1 %v8144_v4  ;;  %v5258_v62 = vld [vmem:[%s9750_s8] ss:$0 sm:$0xff]  ;;  %s9752_s8 = sld [smem:[#allocation101_spill]] }
 0x2a9   : > { %5798 = vmatprep.subr.mxu0 %v8144_v4  ;;  %5830 = vmatpush3.msra.mxu1 %v2455_v63 }
 0x2aa   : > { %5799 = vmatpush3.msra.mxu0 %v2308_v0  ;;  %5831 = vmatprep.subr.mxu1 %v8144_v4 }
 0x2ab   : > { %5800 = vmatprep.subr.mxu0 %v8144_v4  ;;  %5832 = vmatpush3.msra.mxu1 %v2454_v1 }
 0x2ac   : > { %5801 = vmatpush3.msra.mxu0 %v2307_v2  ;;  %5833 = vmatprep.subr.mxu1 %v8144_v4 }
 0x2ad   : > { %5803 = vmatmul.mubr.f32.vlgmr.msra.gmra.mxu0 %v2133_v3  ;;  %5834 = vmatpush3.msra.mxu1 %v2453_v5  ;;  %v2435_v5 = vld [vmem:[#allocation21 + $0x78] sm:$0xff] }
 0x2ae   : > { %5835 = vmatprep.subr.mxu1 %v8144_v4  ;;  %5837 = vmatprep.mubr.msk.f32.mxu1 %vm8145_vm0, %v8144_v4 }
 0x2af   : > { %5836 = vmatpush3.msra.mxu1 %v2452_v6  ;;  %5840 = vmatprep.subr.mxu0 %v8144_v4 }
 0x2b0   : > { %5875 = vmatprep.subr.mxu1 %v8144_v4  ;;  %5838 = vmatmul.mubr.f32.vlgmr.msra.gmra.mxu1 %v8973_v7 }
 0x2b1   : > { %5876 = vmatpush3.msra.mxu1 %v2483_v8  ;;  %5907 = vmatprep.mubr.msk.f32.mxu1 %vm8145_vm0, %v8144_v4  ;;  %v2434_v8 = vld [vmem:[#allocation21 + $0x70] sm:$0xff] }
 0x2b2   : > { %5877 = vmatprep.subr.mxu1 %v8144_v4  ;;  %5872 = vmatprep.mubr.msk.f32.mxu0 %vm8145_vm0, %v8144_v4 }
 0x2b3   : > { %5878 = vmatpush3.msra.mxu1 %v2482_v9  ;;  %5841 = vmatpush3.msra.mxu0 %v2419_v23  ;;  %v2433_v9 = vld [vmem:[#allocation21 + $0x68] sm:$0xff]  ;;  %v2499_v23 = vld [vmem:[#allocation27 + $0x78] sm:$0xff] }
 0x2b4   : > { %5879 = vmatprep.subr.mxu1 %v8144_v4  ;;  %5842 = vmatprep.subr.mxu0 %v8144_v4 }
 0x2b5   : > { %5880 = vmatpush3.msra.mxu1 %v2481_v10  ;;  %5843 = vmatpush3.msra.mxu0 %v2418_v25  ;;  %v2432_v10 = vld [vmem:[#allocation21 + $0x60] sm:$0xff] }
 0x2b6   : > { %5881 = vmatprep.subr.mxu1 %v8144_v4  ;;  %5844 = vmatprep.subr.mxu0 %v8144_v4 }
 0x2b7   : > { %5882 = vmatpush3.msra.mxu1 %v2480_v11  ;;  %5845 = vmatpush3.msra.mxu0 %v2417_v27  ;;  %v2431_v11 = vld [vmem:[#allocation21 + $0x58] sm:$0xff] }
 0x2b8   : > { %5883 = vmatprep.subr.mxu1 %v8144_v4  ;;  %5846 = vmatprep.subr.mxu0 %v8144_v4 }
 0x2b9   : > { %5884 = vmatpush3.msra.mxu1 %v2479_v12  ;;  %5847 = vmatpush3.msra.mxu0 %v2416_v29  ;;  %v2430_v12 = vld [vmem:[#allocation21 + $0x50] sm:$0xff]  ;;  %v2495_v29 = vld [vmem:[#allocation27 + $0x58] sm:$0xff] }
 0x2ba   : > { %5885 = vmatprep.subr.mxu1 %v8144_v4  ;;  %5848 = vmatprep.subr.mxu0 %v8144_v4 }
 0x2bb   : > { %5886 = vmatpush3.msra.mxu1 %v2478_v13  ;;  %5849 = vmatpush3.msra.mxu0 %v2415_v31  ;;  %v2429_v13 = vld [vmem:[#allocation21 + $0x48] sm:$0xff] }
 0x2bc   : > { %5887 = vmatprep.subr.mxu1 %v8144_v4  ;;  %5850 = vmatprep.subr.mxu0 %v8144_v4  ;;  %v2493_v31 = vld [vmem:[#allocation27 + $0x48] sm:$0xff] }
 0x2bd   : > { %5888 = vmatpush3.msra.mxu1 %v2477_v14  ;;  %5851 = vmatpush3.msra.mxu0 %v2414_v33  ;;  %v2428_v14 = vld [vmem:[#allocation21 + $0x40] sm:$0xff]  ;;  %v2491_v33 = vld [vmem:[#allocation27 + $0x38] sm:$0xff] }
 0x2be   : > { %5889 = vmatprep.subr.mxu1 %v8144_v4  ;;  %5852 = vmatprep.subr.mxu0 %v8144_v4 }
 0x2bf   : > { %5890 = vmatpush3.msra.mxu1 %v2476_v15  ;;  %5853 = vmatpush3.msra.mxu0 %v2413_v35  ;;  %v2427_v15 = vld [vmem:[#allocation21 + $0x38] sm:$0xff]  ;;  %v2489_v35 = vld [vmem:[#allocation27 + $0x28] sm:$0xff] }
 0x2c0   : > { %5891 = vmatprep.subr.mxu1 %v8144_v4  ;;  %5854 = vmatprep.subr.mxu0 %v8144_v4 }
 0x2c1   : > { %5892 = vmatpush3.msra.mxu1 %v2475_v16  ;;  %5855 = vmatpush3.msra.mxu0 %v2412_v37  ;;  %v2426_v16 = vld [vmem:[#allocation21 + $0x30] sm:$0xff]  ;;  %v2487_v37 = vld [vmem:[#allocation27 + $0x18] sm:$0xff] }
 0x2c2   : > { %5893 = vmatprep.subr.mxu1 %v8144_v4  ;;  %5856 = vmatprep.subr.mxu0 %v8144_v4 }
 0x2c3   : > { %5894 = vmatpush3.msra.mxu1 %v2474_v17  ;;  %5857 = vmatpush3.msra.mxu0 %v2411_v39  ;;  %v2425_v17 = vld [vmem:[#allocation21 + $0x28] sm:$0xff] }
 0x2c4   : > { %5895 = vmatprep.subr.mxu1 %v8144_v4  ;;  %5858 = vmatprep.subr.mxu0 %v8144_v4  ;;  %v2485_v39 = vld [vmem:[#allocation27 + $0x8] sm:$0xff] }
 0x2c5   : > { %5896 = vmatpush3.msra.mxu1 %v2473_v18  ;;  %5859 = vmatpush3.msra.mxu0 %v2410_v41  ;;  %v2424_v18 = vld [vmem:[#allocation21 + $0x20] sm:$0xff]  ;;  %v2985_v41 = vld [vmem:[#allocation29 + $0x78] sm:$0xff] }
 0x2c6   : > { %5897 = vmatprep.subr.mxu1 %v8144_v4  ;;  %5860 = vmatprep.subr.mxu0 %v8144_v4 }
 0x2c7   : > { %5898 = vmatpush3.msra.mxu1 %v2472_v19  ;;  %5861 = vmatpush3.msra.mxu0 %v2409_v43  ;;  %v2423_v19 = vld [vmem:[#allocation21 + $0x18] sm:$0xff]  ;;  %v2983_v43 = vld [vmem:[#allocation29 + $0x68] sm:$0xff] }
 0x2c8   : > { %5899 = vmatprep.subr.mxu1 %v8144_v4  ;;  %5862 = vmatprep.subr.mxu0 %v8144_v4 }
 0x2c9   : > { %5900 = vmatpush3.msra.mxu1 %v2471_v20  ;;  %5863 = vmatpush3.msra.mxu0 %v2408_v45  ;;  %v2422_v20 = vld [vmem:[#allocation21 + $0x10] sm:$0xff]  ;;  %v2981_v45 = vld [vmem:[#allocation29 + $0x58] sm:$0xff] }
 0x2ca   : > { %5901 = vmatprep.subr.mxu1 %v8144_v4  ;;  %5864 = vmatprep.subr.mxu0 %v8144_v4 }
 0x2cb   : > { %5902 = vmatpush3.msra.mxu1 %v2470_v21  ;;  %5865 = vmatpush3.msra.mxu0 %v2407_v47  ;;  %v2421_v21 = vld [vmem:[#allocation21 + $0x8] sm:$0xff] }
 0x2cc   : > { %5903 = vmatprep.subr.mxu1 %v8144_v4  ;;  %5866 = vmatprep.subr.mxu0 %v8144_v4  ;;  %v2979_v47 = vld [vmem:[#allocation29 + $0x48] sm:$0xff] }
 0x2cd   : > { %5904 = vmatpush3.msra.mxu1 %v2469_v22  ;;  %5867 = vmatpush3.msra.mxu0 %v2406_v50  ;;  %v2420_v22 = vld [vmem:[#allocation21] sm:$0xff]  ;;  %v2976_v50 = vld [vmem:[#allocation29 + $0x30] sm:$0xff] }
 0x2ce   : > { %5905 = vmatprep.subr.mxu1 %v8144_v4  ;;  %5868 = vmatprep.subr.mxu0 %v8144_v4 }
 0x2cf   : > { %5906 = vmatpush3.msra.mxu1 %v2468_v24  ;;  %5869 = vmatpush3.msra.mxu0 %v2405_v52  ;;  %v2498_v24 = vld [vmem:[#allocation27 + $0x70] sm:$0xff]  ;;  %v2974_v52 = vld [vmem:[#allocation29 + $0x20] sm:$0xff] }
 0x2d0   : > { %5945 = vmatprep.subr.mxu1 %v8144_v4  ;;  %5908 = vmatmul.mubr.f32.vlgmr.msra.gmra.mxu1 %v8973_v7 }
 0x2d1   : > { %5946 = vmatpush3.msra.mxu1 %v2451_v26  ;;  %5977 = vmatprep.mubr.msk.f32.mxu1 %vm8145_vm0, %v8144_v4  ;;  %v2497_v26 = vld [vmem:[#allocation27 + $0x68] sm:$0xff] }
 0x2d2   : > { %5947 = vmatprep.subr.mxu1 %v8144_v4  ;;  %5870 = vmatprep.subr.mxu0 %v8144_v4 }
 0x2d3   : > { %5948 = vmatpush3.msra.mxu1 %v2450_v28  ;;  %5871 = vmatpush3.msra.mxu0 %v2404_v54  ;;  %v2496_v28 = vld [vmem:[#allocation27 + $0x60] sm:$0xff]  ;;  %v2972_v54 = vld [vmem:[#allocation29 + $0x10] sm:$0xff] }
 0x2d4   : > { %5949 = vmatprep.subr.mxu1 %v8144_v4  ;;  %5910 = vmatprep.subr.mxu0 %v8144_v4 }
 0x2d5   : > { %5950 = vmatpush3.msra.mxu1 %v2449_v30  ;;  %v2494_v30 = vld [vmem:[#allocation27 + $0x50] sm:$0xff] }
 0x2d6   : > { %5951 = vmatprep.subr.mxu1 %v8144_v4 }
 0x2d7   : > { %5952 = vmatpush3.msra.mxu1 %v2448_v32  ;;  %v2492_v32 = vld [vmem:[#allocation27 + $0x40] sm:$0xff] }
 0x2d8   : > { %5953 = vmatprep.subr.mxu1 %v8144_v4 }
 0x2d9   : > { %5954 = vmatpush3.msra.mxu1 %v2447_v34  ;;  %v2490_v34 = vld [vmem:[#allocation27 + $0x30] sm:$0xff] }
 0x2da   : > { %5955 = vmatprep.subr.mxu1 %v8144_v4 }
 0x2db   : > { %5956 = vmatpush3.msra.mxu1 %v2446_v36  ;;  %v2488_v36 = vld [vmem:[#allocation27 + $0x20] sm:$0xff] }
 0x2dc   : > { %5957 = vmatprep.subr.mxu1 %v8144_v4 }
 0x2dd   : > { %5958 = vmatpush3.msra.mxu1 %v2445_v38  ;;  %v2486_v38 = vld [vmem:[#allocation27 + $0x10] sm:$0xff] }
 0x2de   : > { %5959 = vmatprep.subr.mxu1 %v8144_v4 }
 0x2df   : > { %5960 = vmatpush3.msra.mxu1 %v2444_v40  ;;  %v2484_v40 = vld [vmem:[#allocation27] sm:$0xff] }
 0x2e0   : > { %5961 = vmatprep.subr.mxu1 %v8144_v4 }
 0x2e1   : > { %5962 = vmatpush3.msra.mxu1 %v2443_v42  ;;  %v2984_v42 = vld [vmem:[#allocation29 + $0x70] sm:$0xff] }
 0x2e2   : > { %5963 = vmatprep.subr.mxu1 %v8144_v4 }
 0x2e3   : > { %5964 = vmatpush3.msra.mxu1 %v2442_v44  ;;  %v2982_v44 = vld [vmem:[#allocation29 + $0x60] sm:$0xff] }
 0x2e4   : > { %5965 = vmatprep.subr.mxu1 %v8144_v4 }
 0x2e5   : > { %5966 = vmatpush3.msra.mxu1 %v2441_v46  ;;  %v2980_v46 = vld [vmem:[#allocation29 + $0x50] sm:$0xff] }
 0x2e6   : > { %5967 = vmatprep.subr.mxu1 %v8144_v4 }
 0x2e7   : > { %5968 = vmatpush3.msra.mxu1 %v2440_v48  ;;  %v2978_v48 = vld [vmem:[#allocation29 + $0x40] sm:$0xff] }
 0x2e8   : > { %5969 = vmatprep.subr.mxu1 %v8144_v4 }
 0x2e9   : > { %5970 = vmatpush3.msra.mxu1 %v2439_v49  ;;  %v2977_v49 = vld [vmem:[#allocation29 + $0x38] sm:$0xff] }
 0x2ea   : > { %5971 = vmatprep.subr.mxu1 %v8144_v4 }
 0x2eb   : > { %5972 = vmatpush3.msra.mxu1 %v2438_v51  ;;  %v2975_v51 = vld [vmem:[#allocation29 + $0x28] sm:$0xff] }
 0x2ec   : > { %5973 = vmatprep.subr.mxu1 %v8144_v4 }
 0x2ed   : > { %5974 = vmatpush3.msra.mxu1 %v2437_v53  ;;  %v2973_v53 = vld [vmem:[#allocation29 + $0x18] sm:$0xff] }
 0x2ee   : > { %5975 = vmatprep.subr.mxu1 %v8144_v4 }
 0x2ef   : > { %5976 = vmatpush3.msra.mxu1 %v2436_v55  ;;  %v2971_v55 = vld [vmem:[#allocation29 + $0x8] sm:$0xff] }
 0x2f0   : > { %6015 = vmatprep.subr.mxu1 %v8144_v4 }
 0x34c   : > { %v2233_v56 = vpop.f32.mrf.mxu0 }
 0x34e   : > { %v2303_v57 = vpop.f32.mrf.mxu1  ;;  %v5734_v58 = vpop.f32.mrf.mxu0 }
 0x34f   : > { %v2304_v60 = vadd.f32 %v2303_v57, %v2233_v56  ;;  %v2970_v56 = vld [vmem:[#allocation29] sm:$0xff]  ;;  %v3079_v57 = vld [vmem:[#allocation30 + $0x78] sm:$0xff]  ;;  %v3078_v58 = vld [vmem:[#allocation30 + $0x70] sm:$0xff] }
 0x350   : > { %v5769_v59 = vpop.f32.mrf.mxu1 }
 0x351   : > { %v3077_v59 = vld [vmem:[#allocation30 + $0x68] sm:$0xff] }
 0x36d   : > { %v2389_v61 = vpop.f32.mrf.mxu0 }
 0x36e   : > { %v2393_v63 = vadd.f32 %v2389_v61, %v2304_v60  ;;  %v3076_v60 = vld [vmem:[#allocation30 + $0x60] sm:$0xff]  ;;  %v3075_v61 = vld [vmem:[#allocation30 + $0x58] sm:$0xff] }
 0x36f   : > { %v5804_v0 = vpop.f32.mrf.mxu0 }
 0x370   : > { %v2401_v1 = vadd.f32 %v5258_v62, %v2393_v63  ;;  %v9037_v2 = vpop.f32.mrf.mxu1  ;;  %v3074_v62 = vld [vmem:[#allocation30 + $0x50] sm:$0xff]  ;;  %v3073_v63 = vld [vmem:[#allocation30 + $0x48] sm:$0xff]  ;;  %v3072_v0 = vld [vmem:[#allocation30 + $0x40] sm:$0xff] }
 0x372   : > { %v2402_v3 = vmax.f32 %v2401_v1, 0.0  ;;  %v5839_v6 = vpop.f32.mrf.mxu1  ;;  %v3071_v1 = vld [vmem:[#allocation30 + $0x38] sm:$0xff] }
 0x373   : > { %v3068_v6 = vld [vmem:[#allocation30 + $0x20] sm:$0xff] }
 0x374   : > { %5873 = vmatmul.mubr.f32.vlgmr.msra.gmra.mxu0 %v2402_v3  ;;  %5978 = vmatmul.mubr.f32.vlgmr.msra.gmra.mxu1 %v2402_v3 }
 0x375   : > { %5911 = vmatpush3.msra.mxu0 %v2435_v5  ;;  %5942 = vmatprep.mubr.msk.f32.mxu0 %vm8145_vm0, %v8144_v4  ;;  %v3069_v5 = vld [vmem:[#allocation30 + $0x28] sm:$0xff] }
 0x376   : > { %5912 = vmatprep.subr.mxu0 %v8144_v4  ;;  %6047 = vmatprep.mubr.msk.f32.mxu1 %vm8145_vm0, %v8144_v4 }
 0x377   : > { %5913 = vmatpush3.msra.mxu0 %v2434_v8  ;;  %6016 = vmatpush3.msra.mxu1 %v2985_v41  ;;  %v3067_v8 = vld [vmem:[#allocation30 + $0x18] sm:$0xff] }
 0x378   : > { %5914 = vmatprep.subr.mxu0 %v8144_v4  ;;  %6017 = vmatprep.subr.mxu1 %v8144_v4 }
 0x379   : > { %5915 = vmatpush3.msra.mxu0 %v2433_v9  ;;  %6018 = vmatpush3.msra.mxu1 %v2984_v42  ;;  %v3066_v9 = vld [vmem:[#allocation30 + $0x10] sm:$0xff] }
 0x37a   : > { %5916 = vmatprep.subr.mxu0 %v8144_v4  ;;  %6019 = vmatprep.subr.mxu1 %v8144_v4 }
 0x37b   : > { %5917 = vmatpush3.msra.mxu0 %v2432_v10  ;;  %6020 = vmatpush3.msra.mxu1 %v2983_v43 }
 0x37c   : > { %5918 = vmatprep.subr.mxu0 %v8144_v4  ;;  %6021 = vmatprep.subr.mxu1 %v8144_v4 }
 0x37d   : > { %5919 = vmatpush3.msra.mxu0 %v2431_v11  ;;  %6022 = vmatpush3.msra.mxu1 %v2982_v44  ;;  %v3172_v44 = vld [vmem:[#allocation32 + $0x78] sm:$0xff] }
 0x37e   : > { %5920 = vmatprep.subr.mxu0 %v8144_v4  ;;  %6023 = vmatprep.subr.mxu1 %v8144_v4 }
 0x37f   : > { %5921 = vmatpush3.msra.mxu0 %v2430_v12  ;;  %6024 = vmatpush3.msra.mxu1 %v2981_v45  ;;  %v3171_v45 = vld [vmem:[#allocation32 + $0x70] sm:$0xff] }
 0x380   : > { %5922 = vmatprep.subr.mxu0 %v8144_v4  ;;  %6025 = vmatprep.subr.mxu1 %v8144_v4 }
 0x381   : > { %5923 = vmatpush3.msra.mxu0 %v2429_v13  ;;  %6026 = vmatpush3.msra.mxu1 %v2980_v46  ;;  %v3170_v46 = vld [vmem:[#allocation32 + $0x68] sm:$0xff] }
 0x382   : > { %5924 = vmatprep.subr.mxu0 %v8144_v4  ;;  %6027 = vmatprep.subr.mxu1 %v8144_v4 }
 0x383   : > { %5925 = vmatpush3.msra.mxu0 %v2428_v14  ;;  %6028 = vmatpush3.msra.mxu1 %v2979_v47  ;;  %v3169_v47 = vld [vmem:[#allocation32 + $0x60] sm:$0xff] }
 0x384   : > { %5926 = vmatprep.subr.mxu0 %v8144_v4  ;;  %6029 = vmatprep.subr.mxu1 %v8144_v4 }
 0x385   : > { %5927 = vmatpush3.msra.mxu0 %v2427_v15  ;;  %6030 = vmatpush3.msra.mxu1 %v2978_v48  ;;  %v5259_v15 = vld [vmem:[%s9751_s15] ss:$0 sm:$0xff]  ;;  %v3167_v48 = vld [vmem:[#allocation32 + $0x50] sm:$0xff]  ;;  %s9758_s15 = sld [smem:[#allocation113_spill]] }
 0x386   : > { %5928 = vmatprep.subr.mxu0 %v8144_v4  ;;  %6031 = vmatprep.subr.mxu1 %v8144_v4 }
 0x387   : > { %5929 = vmatpush3.msra.mxu0 %v2426_v16  ;;  %6032 = vmatpush3.msra.mxu1 %v2977_v49  ;;  %v3166_v49 = vld [vmem:[#allocation32 + $0x48] sm:$0xff] }
 0x388   : > { %5930 = vmatprep.subr.mxu0 %v8144_v4  ;;  %6033 = vmatprep.subr.mxu1 %v8144_v4 }
 0x389   : > { %5931 = vmatpush3.msra.mxu0 %v2425_v17  ;;  %6034 = vmatpush3.msra.mxu1 %v2976_v50  ;;  %v3165_v50 = vld [vmem:[#allocation32 + $0x40] sm:$0xff] }
 0x38a   : > { %5932 = vmatprep.subr.mxu0 %v8144_v4  ;;  %6035 = vmatprep.subr.mxu1 %v8144_v4 }
 0x38b   : > { %5933 = vmatpush3.msra.mxu0 %v2424_v18  ;;  %6036 = vmatpush3.msra.mxu1 %v2975_v51  ;;  %v3164_v51 = vld [vmem:[#allocation32 + $0x38] sm:$0xff] }
 0x38c   : > { %5934 = vmatprep.subr.mxu0 %v8144_v4  ;;  %6037 = vmatprep.subr.mxu1 %v8144_v4 }
 0x38d   : > { %5935 = vmatpush3.msra.mxu0 %v2423_v19  ;;  %6038 = vmatpush3.msra.mxu1 %v2974_v52  ;;  %v5260_v19 = vld [vmem:[%s9752_s8] ss:$0 sm:$0xff]  ;;  %v3163_v52 = vld [vmem:[#allocation32 + $0x30] sm:$0xff]  ;;  %s9760_s8 = sld [smem:[#allocation120_spill]] }
 0x38e   : > { %5936 = vmatprep.subr.mxu0 %v8144_v4  ;;  %6039 = vmatprep.subr.mxu1 %v8144_v4 }
 0x38f   : > { %5937 = vmatpush3.msra.mxu0 %v2422_v20  ;;  %6040 = vmatpush3.msra.mxu1 %v2973_v53  ;;  %v3162_v53 = vld [vmem:[#allocation32 + $0x28] sm:$0xff] }
 0x390   : > { %5938 = vmatprep.subr.mxu0 %v8144_v4  ;;  %v9059_v25 = vpop.f32.mrf.mxu1  ;;  %6041 = vmatprep.subr.mxu1 %v8144_v4 }
 0x391   : > { %5939 = vmatpush3.msra.mxu0 %v2421_v21  ;;  %6042 = vmatpush3.msra.mxu1 %v2972_v54  ;;  %v3161_v54 = vld [vmem:[#allocation32 + $0x20] sm:$0xff] }
 0x392   : > { %5940 = vmatprep.subr.mxu0 %v8144_v4  ;;  %v5909_v27 = vpop.f32.mrf.mxu1  ;;  %6043 = vmatprep.subr.mxu1 %v8144_v4 }
 0x393   : > { %5941 = vmatpush3.msra.mxu0 %v2420_v22  ;;  %6044 = vmatpush3.msra.mxu1 %v2971_v55  ;;  %v3160_v55 = vld [vmem:[#allocation32 + $0x18] sm:$0xff] }
 0x394   : > { %5943 = vmatmul.mubr.f32.vlgmr.msra.gmra.mxu0 %v2402_v3  ;;  %5980 = vmatprep.subr.mxu0 %v8144_v4  ;;  %v3070_v3 = vld [vmem:[#allocation30 + $0x30] sm:$0xff] }
 0x395   : > { %5981 = vmatpush3.msra.mxu0 %v2499_v23  ;;  %6012 = vmatprep.mubr.msk.f32.mxu0 %vm8145_vm0, %v8144_v4 }
 0x396   : > { %5982 = vmatprep.subr.mxu0 %v8144_v4  ;;  %6045 = vmatprep.subr.mxu1 %v8144_v4 }
 0x397   : > { %5983 = vmatpush3.msra.mxu0 %v2498_v24  ;;  %6046 = vmatpush3.msra.mxu1 %v2970_v56  ;;  %v3159_v56 = vld [vmem:[#allocation32 + $0x10] sm:$0xff] }
 0x398   : > { %5984 = vmatprep.subr.mxu0 %v8144_v4  ;;  %6085 = vmatprep.subr.mxu1 %v8144_v4 }
 0x399   : > { %5985 = vmatpush3.msra.mxu0 %v2497_v26 }
 0x39a   : > { %5986 = vmatprep.subr.mxu0 %v8144_v4 }
 0x39b   : > { %5987 = vmatpush3.msra.mxu0 %v2496_v28 }
 0x39c   : > { %5988 = vmatprep.subr.mxu0 %v8144_v4 }
 0x39d   : > { %5989 = vmatpush3.msra.mxu0 %v2495_v29  ;;  %v5262_v29 = vld [vmem:[%s9753_s16] ss:$0 sm:$0xff]  ;;  %s9757_s16 = sld [smem:[#allocation109_spill]] }
 0x39e   : > { %5990 = vmatprep.subr.mxu0 %v8144_v4 }
 0x39f   : > { %5991 = vmatpush3.msra.mxu0 %v2494_v30 }
 0x3a0   : > { %5992 = vmatprep.subr.mxu0 %v8144_v4 }
 0x3a1   : > { %5993 = vmatpush3.msra.mxu0 %v2493_v31  ;;  %v5261_v31 = vld [vmem:[%s9754_s12] ss:$0 sm:$0xff]  ;;  %s9755_s12 = sld [smem:[#allocation105_spill]] }
 0x3a2   : > { %5994 = vmatprep.subr.mxu0 %v8144_v4 }
 0x3a3   : > { %5995 = vmatpush3.msra.mxu0 %v2492_v32 }
 0x3a4   : > { %5996 = vmatprep.subr.mxu0 %v8144_v4 }
 0x3a5   : > { %5997 = vmatpush3.msra.mxu0 %v2491_v33 }
 0x3a6   : > { %5998 = vmatprep.subr.mxu0 %v8144_v4 }
 0x3a7   : > { %5999 = vmatpush3.msra.mxu0 %v2490_v34 }
 0x3a8   : > { %6000 = vmatprep.subr.mxu0 %v8144_v4 }
 0x3a9   : > { %6001 = vmatpush3.msra.mxu0 %v2489_v35 }
 0x3aa   : > { %6002 = vmatprep.subr.mxu0 %v8144_v4 }
 0x3ab   : > { %6003 = vmatpush3.msra.mxu0 %v2488_v36 }
 0x3ac   : > { %6004 = vmatprep.subr.mxu0 %v8144_v4 }
 0x3ad   : > { %6005 = vmatpush3.msra.mxu0 %v2487_v37 }
 0x3ae   : > { %6006 = vmatprep.subr.mxu0 %v8144_v4 }
 0x3af   : > { %6007 = vmatpush3.msra.mxu0 %v2486_v38 }
 0x3b0   : > { %6008 = vmatprep.subr.mxu0 %v8144_v4 }
 0x3b1   : > { %6009 = vmatpush3.msra.mxu0 %v2485_v39 }
 0x3b2   : > { %6010 = vmatprep.subr.mxu0 %v8144_v4 }
 0x3b3   : > { %6011 = vmatpush3.msra.mxu0 %v2484_v40 }
 0x3b4   : > { %6013 = vmatmul.mubr.f32.vlgmr.msra.gmra.mxu0 %v8973_v7  ;;  %6050 = vmatprep.subr.mxu0 %v8144_v4 }
 0x3b5   : > { %6082 = vmatprep.mubr.msk.f32.mxu0 %vm8145_vm0, %v8144_v4  ;;  %6051 = vmatpush3.msra.mxu0 %v3079_v57  ;;  %v3065_v57 = vld [vmem:[#allocation30 + $0x8] sm:$0xff] }
 0x3b6   : > { %6052 = vmatprep.subr.mxu0 %v8144_v4 }
 0x3b7   : > { %6053 = vmatpush3.msra.mxu0 %v3078_v58  ;;  %v3158_v58 = vld [vmem:[#allocation32 + $0x8] sm:$0xff] }
 0x3b8   : > { %6054 = vmatprep.subr.mxu0 %v8144_v4 }
 0x3b9   : > { %6055 = vmatpush3.msra.mxu0 %v3077_v59  ;;  %v3064_v59 = vld [vmem:[#allocation30] sm:$0xff] }
 0x3ba   : > { %6056 = vmatprep.subr.mxu0 %v8144_v4 }
 0x3bb   : > { %6057 = vmatpush3.msra.mxu0 %v3076_v60  ;;  %v3157_v60 = vld [vmem:[#allocation32] sm:$0xff] }
 0x3bc   : > { %6058 = vmatprep.subr.mxu0 %v8144_v4 }
 0x3bd   : > { %6059 = vmatpush3.msra.mxu0 %v3075_v61  ;;  %v5263_v61 = vld [vmem:[%s9755_s12] ss:$0 sm:$0xff]  ;;  %s9761_s12 = sld [smem:[#allocation122_spill]] }
 0x3be   : > { %6060 = vmatprep.subr.mxu0 %v8144_v4 }
 0x3bf   : > { %6061 = vmatpush3.msra.mxu0 %v3074_v62 }
 0x3c0   : > { %6062 = vmatprep.subr.mxu0 %v8144_v4 }
 0x3c1   : > { %6063 = vmatpush3.msra.mxu0 %v3073_v63 }
 0x3c2   : > { %6064 = vmatprep.subr.mxu0 %v8144_v4 }
 0x3c3   : > { %6065 = vmatpush3.msra.mxu0 %v3072_v0 }
 0x3c4   : > { %6066 = vmatprep.subr.mxu0 %v8144_v4 }
 0x3c5   : > { %6067 = vmatpush3.msra.mxu0 %v3071_v1 }
 0x3c6   : > { %6068 = vmatprep.subr.mxu0 %v8144_v4 }
 0x3c7   : > { %6069 = vmatpush3.msra.mxu0 %v3070_v3  ;;  %v3300_v3 = vld [vmem:[#allocation35 + $0x78] sm:$0xff] }
 0x3c8   : > { %6070 = vmatprep.subr.mxu0 %v8144_v4 }
 0x3c9   : > { %6071 = vmatpush3.msra.mxu0 %v3069_v5  ;;  %v3284_v5 = vld [vmem:[#allocation33 + $0x78] sm:$0xff] }
 0x3ca   : > { %6072 = vmatprep.subr.mxu0 %v8144_v4 }
 0x3cb   : > { %6073 = vmatpush3.msra.mxu0 %v3068_v6  ;;  %v3299_v6 = vld [vmem:[#allocation35 + $0x70] sm:$0xff] }
 0x3cc   : > { %6074 = vmatprep.subr.mxu0 %v8144_v4 }
 0x3cd   : > { %6075 = vmatpush3.msra.mxu0 %v3067_v8  ;;  %v3283_v8 = vld [vmem:[#allocation33 + $0x70] sm:$0xff] }
 0x3ce   : > { %6076 = vmatprep.subr.mxu0 %v8144_v4 }
 0x3cf   : > { %6077 = vmatpush3.msra.mxu0 %v3066_v9  ;;  %v3298_v9 = vld [vmem:[#allocation35 + $0x68] sm:$0xff] }
 0x3d0   : > { %6078 = vmatprep.subr.mxu0 %v8144_v4 }
 0x3d1   : > { %6079 = vmatpush3.msra.mxu0 %v3065_v57  ;;  %v3592_v57 = vld [vmem:[#allocation42 + $0x30] sm:$0xff] }
 0x3d2   : > { %6080 = vmatprep.subr.mxu0 %v8144_v4 }
 0x3d3   : > { %6081 = vmatpush3.msra.mxu0 %v3064_v59  ;;  %v3591_v59 = vld [vmem:[#allocation42 + $0x28] sm:$0xff] }
 0x3d4   : > { %6120 = vmatprep.subr.mxu0 %v8144_v4 }
 0x434   : > { %v2640_v10 = vpop.f32.mrf.mxu0  ;;  %v2882_v11 = vpop.f32.mrf.mxu1 }
 0x435   : > { %v2641_v14 = vadd.f32 %v2640_v10, %v9037_v2  ;;  %v2883_v36 = vadd.f32 %v5261_v31, %v2882_v11  ;;  %v3282_v10 = vld [vmem:[#allocation33 + $0x68] sm:$0xff]  ;;  %v3297_v11 = vld [vmem:[#allocation35 + $0x60] sm:$0xff]  ;;  %v3287_v31 = vld [vmem:[#allocation35 + $0x10] sm:$0xff] }
 0x436   : > { %v5874_v12 = vpop.f32.mrf.mxu0  ;;  %v5979_v13 = vpop.f32.mrf.mxu1 }
 0x437   : > { %v2650_v16 = vadd.f32 %v5259_v15, %v2641_v14  ;;  %v3281_v12 = vld [vmem:[#allocation33 + $0x60] sm:$0xff]  ;;  %v3296_v13 = vld [vmem:[#allocation35 + $0x58] sm:$0xff]  ;;  %v3295_v15 = vld [vmem:[#allocation35 + $0x50] sm:$0xff] }
 0x438   : > { %v3280_v14 = vld [vmem:[#allocation33 + $0x58] sm:$0xff] }
 0x439   : > { %v2651_v17 = vsub.f32 0.0, %v2650_v16  ;;  %v3279_v16 = vld [vmem:[#allocation33 + $0x50] sm:$0xff] }
 0x43b   : > { %v2652_v18 = vmul.f32 1.442695, %v2651_v17  ;;  %v3294_v17 = vld [vmem:[#allocation35 + $0x48] sm:$0xff] }
 0x43d   : > { %6944 = vpow2.f32 %v2652_v18  ;;  %v3278_v18 = vld [vmem:[#allocation33 + $0x48] sm:$0xff] }
 0x44a   : > { %v6945_v27 = vpop.eup %6944 }
 0x44b   : > { %v2654_v28 = vadd.f32 1.0, %v6945_v27  ;;  %v3274_v27 = vld [vmem:[#allocation33 + $0x28] sm:$0xff] }
 0x454   : > { %v2793_v20 = vpop.f32.mrf.mxu0 }
 0x455   : > { %v2794_v21 = vadd.f32 %v2793_v20, %v9059_v25  ;;  %v3277_v20 = vld [vmem:[#allocation33 + $0x40] sm:$0xff] }
 0x456   : > { %v5944_v22 = vpop.f32.mrf.mxu0 }
 0x457   : > { %v2803_v23 = vadd.f32 %v5260_v19, %v2794_v21  ;;  %v3293_v19 = vld [vmem:[#allocation35 + $0x40] sm:$0xff]  ;;  %v3292_v21 = vld [vmem:[#allocation35 + $0x38] sm:$0xff] }
 0x458   : > { %v3276_v22 = vld [vmem:[#allocation33 + $0x38] sm:$0xff] }
 0x459   : > { %v2804_v24 = vsub.f32 0.0, %v2803_v23  ;;  %v3291_v23 = vld [vmem:[#allocation35 + $0x30] sm:$0xff] }
 0x45b   : > { %v2805_v26 = vmul.f32 1.442695, %v2804_v24  ;;  %v3275_v24 = vld [vmem:[#allocation33 + $0x30] sm:$0xff] }
 0x45d   : > { %6946 = vpow2.f32 %v2805_v26  ;;  %v3290_v26 = vld [vmem:[#allocation35 + $0x28] sm:$0xff] }
 0x45e   : > { %6948 = vrcp.f32 %v2654_v28  ;;  %v3289_v28 = vld [vmem:[#allocation35 + $0x20] sm:$0xff] }
 0x46a   : > { %v6947_v2 = vpop.eup %6946 }
 0x46b   : > { %v2807_v30 = vadd.f32 1.0, %v6947_v2  ;;  %v6949_v34 = vpop.eup %6948  ;;  %v3273_v2 = vld [vmem:[#allocation33 + $0x20] sm:$0xff] }
 0x46d   : > { %6950 = vrcp.f32 %v2807_v30  ;;  %v3272_v30 = vld [vmem:[#allocation33 + $0x18] sm:$0xff] }
 0x474   : > { %v2958_v32 = vpop.f32.mrf.mxu0 }
 0x475   : > { %v2959_v33 = vadd.f32 %v5262_v29, %v2958_v32  ;;  %v3288_v29 = vld [vmem:[#allocation35 + $0x18] sm:$0xff]  ;;  %v3271_v32 = vld [vmem:[#allocation33 + $0x10] sm:$0xff] }
 0x476   : > { %v6014_v35 = vpop.f32.mrf.mxu0 }
 0x477   : > { %v2962_v25 = vmul.f32 %v6949_v34, %v2959_v33  ;;  %v3286_v33 = vld [vmem:[#allocation35 + $0x8] sm:$0xff]  ;;  %v3285_v35 = vld [vmem:[#allocation35] sm:$0xff] }
 0x478   : > { %v3270_v34 = vld [vmem:[#allocation33 + $0x8] sm:$0xff] }
 0x479   : > { %v2963_v37 = vadd.f32 %v2962_v25, %v2883_v36  ;;  %v3269_v36 = vld [vmem:[#allocation33] sm:$0xff]  ;;  %v3268_v25 = vld [vmem:[%s1829_s1] sm:$0xff]  ;;  %s9756_s1 = sld [smem:[#allocation107_spill]] }
 0x47a   : > { %v6951_v38 = vpop.eup %6950 }
 0x47b   : > { %6952 = vtanh.f32 %v2963_v37  ;;  %v2965_v39 = vsub.f32 1.0, %v6951_v38  ;;  %v2967_v42 = vmul.f32 %v6951_v38, %v8973_v7  ;;  %v3168_v7 = vld [vmem:[#allocation32 + $0x58] sm:$0xff] }
 0x47c   : > { %v3456_v37 = vld [vmem:[#allocation36 + $0x78] sm:$0xff] }
 0x47d   : > { %v6972_v38 = vld [vmem:[#allocation2] sm:$0xff] }
 0x488   : > { %v6953_v40 = vpop.eup %6952 }
 0x489   : > { %v2966_v41 = vmul.f32 %v6953_v40, %v2965_v39  ;;  %v3455_v39 = vld [vmem:[#allocation36 + $0x70] sm:$0xff]  ;;  %v3601_v40 = vld [vmem:[#allocation42 + $0x78] sm:$0xff] }
 0x48b   : > { %v2968_v43 = vadd.f32 %v2967_v42, %v2966_v41  ;;  %v3454_v41 = vld [vmem:[#allocation36 + $0x68] sm:$0xff]  ;;  %v3600_v42 = vld [vmem:[#allocation42 + $0x70] sm:$0xff] }
 0x48d   : > { %2969 = vst [vmem:[#allocation4] sm:$0xff] %v2968_v43  ;;  %6048 = vmatmul.mubr.f32.vlgmr.msra.gmra.mxu1 %v2968_v43  ;;  %3264 = vst [vmem:[%s2070_s30] sm:$0xff] %v2968_v43  ;;  %v3453_v43 = vld [vmem:[#allocation36 + $0x60] sm:$0xff] }
 0x48e   : > { %6086 = vmatpush3.msra.mxu1 %v3172_v44  ;;  %6117 = vmatprep.mubr.msk.f32.mxu1 %vm8145_vm0, %v8144_v4  ;;  %v3599_v44 = vld [vmem:[#allocation42 + $0x68] sm:$0xff] }
 0x48f   : > { %6087 = vmatprep.subr.mxu1 %v8144_v4 }
 0x490   : > { %6088 = vmatpush3.msra.mxu1 %v3171_v45  ;;  %v3452_v45 = vld [vmem:[#allocation36 + $0x58] sm:$0xff] }
 0x491   : > { %6089 = vmatprep.subr.mxu1 %v8144_v4 }
 0x492   : > { %6090 = vmatpush3.msra.mxu1 %v3170_v46  ;;  %v3598_v46 = vld [vmem:[#allocation42 + $0x60] sm:$0xff] }
 0x493   : > { %6091 = vmatprep.subr.mxu1 %v8144_v4 }
 0x494   : > { %6092 = vmatpush3.msra.mxu1 %v3169_v47  ;;  %v3451_v47 = vld [vmem:[#allocation36 + $0x50] sm:$0xff] }
 0x495   : > { %6093 = vmatprep.subr.mxu1 %v8144_v4 }
 0x496   : > { %6094 = vmatpush3.msra.mxu1 %v3168_v7  ;;  %v3597_v7 = vld [vmem:[#allocation42 + $0x58] sm:$0xff] }
 0x497   : > { %6095 = vmatprep.subr.mxu1 %v8144_v4 }
 0x498   : > { %6096 = vmatpush3.msra.mxu1 %v3167_v48  ;;  %v3450_v48 = vld [vmem:[#allocation36 + $0x48] sm:$0xff] }
 0x499   : > { %6097 = vmatprep.subr.mxu1 %v8144_v4 }
 0x49a   : > { %6098 = vmatpush3.msra.mxu1 %v3166_v49  ;;  %v3596_v49 = vld [vmem:[#allocation42 + $0x50] sm:$0xff] }
 0x49b   : > { %6099 = vmatprep.subr.mxu1 %v8144_v4 }
 0x49c   : > { %6100 = vmatpush3.msra.mxu1 %v3165_v50  ;;  %v3449_v50 = vld [vmem:[#allocation36 + $0x40] sm:$0xff] }
 0x49d   : > { %6101 = vmatprep.subr.mxu1 %v8144_v4 }
 0x49e   : > { %6102 = vmatpush3.msra.mxu1 %v3164_v51  ;;  %v3595_v51 = vld [vmem:[#allocation42 + $0x48] sm:$0xff] }
 0x49f   : > { %6103 = vmatprep.subr.mxu1 %v8144_v4 }
 0x4a0   : > { %6104 = vmatpush3.msra.mxu1 %v3163_v52  ;;  %v3448_v52 = vld [vmem:[#allocation36 + $0x38] sm:$0xff] }
 0x4a1   : > { %6105 = vmatprep.subr.mxu1 %v8144_v4 }
 0x4a2   : > { %6106 = vmatpush3.msra.mxu1 %v3162_v53  ;;  %v3594_v53 = vld [vmem:[#allocation42 + $0x40] sm:$0xff] }
 0x4a3   : > { %6107 = vmatprep.subr.mxu1 %v8144_v4 }
 0x4a4   : > { %6108 = vmatpush3.msra.mxu1 %v3161_v54  ;;  %v3447_v54 = vld [vmem:[#allocation36 + $0x30] sm:$0xff] }
 0x4a5   : > { %6109 = vmatprep.subr.mxu1 %v8144_v4 }
 0x4a6   : > { %6110 = vmatpush3.msra.mxu1 %v3160_v55  ;;  %v3593_v55 = vld [vmem:[#allocation42 + $0x38] sm:$0xff] }
 0x4a7   : > { %6111 = vmatprep.subr.mxu1 %v8144_v4 }
 0x4a8   : > { %6112 = vmatpush3.msra.mxu1 %v3159_v56  ;;  %v3446_v56 = vld [vmem:[#allocation36 + $0x28] sm:$0xff] }
 0x4a9   : > { %6113 = vmatprep.subr.mxu1 %v8144_v4 }
 0x4aa   : > { %6114 = vmatpush3.msra.mxu1 %v3158_v58  ;;  %v3445_v58 = vld [vmem:[#allocation36 + $0x20] sm:$0xff] }
 0x4ab   : > { %6115 = vmatprep.subr.mxu1 %v8144_v4 }
 0x4ac   : > { %6116 = vmatpush3.msra.mxu1 %v3157_v60  ;;  %v3444_v60 = vld [vmem:[#allocation36 + $0x18] sm:$0xff] }
 0x4ad   : > { %6155 = vmatprep.subr.mxu1 %v8144_v4 }
 0x54d   : > { %v3059_v62 = vpop.f32.mrf.mxu1 }
 0x54e   : > { %v3060_v63 = vadd.f32 %v5263_v61, %v3059_v62  ;;  %v3590_v61 = vld [vmem:[#allocation42 + $0x20] sm:$0xff]  ;;  %v3443_v62 = vld [vmem:[#allocation36 + $0x10] sm:$0xff] }
 0x54f   : > { %v6049_v0 = vpop.f32.mrf.mxu1 }
 0x550   : > { %v3063_v1 = vmax.f32 %v3060_v63, 0.0  ;;  %v3589_v63 = vld [vmem:[#allocation42 + $0x18] sm:$0xff]  ;;  %v3442_v0 = vld [vmem:[#allocation36 + $0x8] sm:$0xff] }
 0x552   : > { %6083 = vmatmul.mubr.f32.vlgmr.msra.gmra.mxu0 %v3063_v1  ;;  %6118 = vmatmul.mubr.f32.vlgmr.msra.gmra.mxu1 %v3063_v1  ;;  %v3441_v1 = vld [vmem:[#allocation36] sm:$0xff] }
 0x553   : > { %6121 = vmatpush3.msra.mxu0 %v3300_v3  ;;  %6156 = vmatpush3.msra.mxu1 %v3284_v5  ;;  %v6973_v3 = vld [vmem:[#allocation3] sm:$0xff]  ;;  %v3588_v5 = vld [vmem:[#allocation42 + $0x10] sm:$0xff] }
 0x554   : > { %6122 = vmatprep.subr.mxu0 %v8144_v4  ;;  %6157 = vmatprep.subr.mxu1 %v8144_v4 }
 0x555   : > { %6123 = vmatpush3.msra.mxu0 %v3299_v6  ;;  %6158 = vmatpush3.msra.mxu1 %v3283_v8  ;;  %v3587_v6 = vld [vmem:[#allocation42 + $0x8] sm:$0xff]  ;;  %v3586_v8 = vld [vmem:[#allocation42] sm:$0xff] }
 0x556   : > { %6124 = vmatprep.subr.mxu0 %v8144_v4  ;;  %6159 = vmatprep.subr.mxu1 %v8144_v4 }
 0x557   : > { %6125 = vmatpush3.msra.mxu0 %v3298_v9  ;;  %6160 = vmatpush3.msra.mxu1 %v3282_v10  ;;  %v9218_v9 = vld [vmem:[#allocation5] sm:$0xff]  ;;  %v3617_v10 = vld [vmem:[#allocation44 + $0x78] sm:$0xff] }
 0x558   : > { %6126 = vmatprep.subr.mxu0 %v8144_v4  ;;  %6161 = vmatprep.subr.mxu1 %v8144_v4 }
 0x559   : > { %6127 = vmatpush3.msra.mxu0 %v3297_v11  ;;  %6162 = vmatpush3.msra.mxu1 %v3281_v12  ;;  %v3616_v11 = vld [vmem:[#allocation44 + $0x70] sm:$0xff]  ;;  %v3615_v12 = vld [vmem:[#allocation44 + $0x68] sm:$0xff] }
 0x55a   : > { %6128 = vmatprep.subr.mxu0 %v8144_v4  ;;  %6163 = vmatprep.subr.mxu1 %v8144_v4 }
 0x55b   : > { %6129 = vmatpush3.msra.mxu0 %v3296_v13  ;;  %6164 = vmatpush3.msra.mxu1 %v3280_v14  ;;  %v3614_v13 = vld [vmem:[#allocation44 + $0x60] sm:$0xff]  ;;  %v3613_v14 = vld [vmem:[#allocation44 + $0x58] sm:$0xff] }
 0x55c   : > { %6130 = vmatprep.subr.mxu0 %v8144_v4  ;;  %6165 = vmatprep.subr.mxu1 %v8144_v4 }
 0x55d   : > { %6131 = vmatpush3.msra.mxu0 %v3295_v15  ;;  %6166 = vmatpush3.msra.mxu1 %v3279_v16  ;;  %v3612_v15 = vld [vmem:[#allocation44 + $0x50] sm:$0xff]  ;;  %v3611_v16 = vld [vmem:[#allocation44 + $0x48] sm:$0xff] }
 0x55e   : > { %6132 = vmatprep.subr.mxu0 %v8144_v4  ;;  %6167 = vmatprep.subr.mxu1 %v8144_v4 }
 0x55f   : > { %6133 = vmatpush3.msra.mxu0 %v3294_v17  ;;  %6168 = vmatpush3.msra.mxu1 %v3278_v18  ;;  %v3610_v17 = vld [vmem:[#allocation44 + $0x40] sm:$0xff]  ;;  %v3609_v18 = vld [vmem:[#allocation44 + $0x38] sm:$0xff] }
 0x560   : > { %6134 = vmatprep.subr.mxu0 %v8144_v4  ;;  %6169 = vmatprep.subr.mxu1 %v8144_v4 }
 0x561   : > { %6135 = vmatpush3.msra.mxu0 %v3293_v19  ;;  %6170 = vmatpush3.msra.mxu1 %v3277_v20  ;;  %v3608_v19 = vld [vmem:[#allocation44 + $0x30] sm:$0xff]  ;;  %v3607_v20 = vld [vmem:[#allocation44 + $0x28] sm:$0xff] }
 0x562   : > { %6136 = vmatprep.subr.mxu0 %v8144_v4  ;;  %6171 = vmatprep.subr.mxu1 %v8144_v4 }
 0x563   : > { %6137 = vmatpush3.msra.mxu0 %v3292_v21  ;;  %6172 = vmatpush3.msra.mxu1 %v3276_v22  ;;  %v3606_v21 = vld [vmem:[#allocation44 + $0x20] sm:$0xff]  ;;  %v3605_v22 = vld [vmem:[#allocation44 + $0x18] sm:$0xff] }
 0x564   : > { %6138 = vmatprep.subr.mxu0 %v8144_v4  ;;  %6173 = vmatprep.subr.mxu1 %v8144_v4 }
 0x565   : > { %6139 = vmatpush3.msra.mxu0 %v3291_v23  ;;  %6174 = vmatpush3.msra.mxu1 %v3275_v24  ;;  %v3604_v23 = vld [vmem:[#allocation44 + $0x10] sm:$0xff]  ;;  %v3603_v24 = vld [vmem:[#allocation44 + $0x8] sm:$0xff] }
 0x566   : > { %6140 = vmatprep.subr.mxu0 %v8144_v4  ;;  %6175 = vmatprep.subr.mxu1 %v8144_v4 }
 0x567   : > { %6141 = vmatpush3.msra.mxu0 %v3290_v26  ;;  %6176 = vmatpush3.msra.mxu1 %v3274_v27  ;;  %v3602_v26 = vld [vmem:[#allocation44] sm:$0xff]  ;;  %v3553_v27 = vld [vmem:[#allocation38 + $0x78] sm:$0xff] }
 0x568   : > { %6142 = vmatprep.subr.mxu0 %v8144_v4  ;;  %6177 = vmatprep.subr.mxu1 %v8144_v4 }
 0x569   : > { %6143 = vmatpush3.msra.mxu0 %v3289_v28  ;;  %6178 = vmatpush3.msra.mxu1 %v3273_v2  ;;  %v3585_v28 = vld [vmem:[#allocation41 + $0x78] sm:$0xff]  ;;  %v3552_v2 = vld [vmem:[#allocation38 + $0x70] sm:$0xff] }
 0x56a   : > { %6144 = vmatprep.subr.mxu0 %v8144_v4  ;;  %6179 = vmatprep.subr.mxu1 %v8144_v4 }
 0x56b   : > { %6145 = vmatpush3.msra.mxu0 %v3288_v29  ;;  %6180 = vmatpush3.msra.mxu1 %v3272_v30  ;;  %v3584_v29 = vld [vmem:[#allocation41 + $0x70] sm:$0xff]  ;;  %v3551_v30 = vld [vmem:[#allocation38 + $0x68] sm:$0xff] }
 0x56c   : > { %6146 = vmatprep.subr.mxu0 %v8144_v4  ;;  %6181 = vmatprep.subr.mxu1 %v8144_v4 }
 0x56d   : > { %6147 = vmatpush3.msra.mxu0 %v3287_v31  ;;  %6182 = vmatpush3.msra.mxu1 %v3271_v32  ;;  %v3583_v31 = vld [vmem:[#allocation41 + $0x68] sm:$0xff]  ;;  %v3550_v32 = vld [vmem:[#allocation38 + $0x60] sm:$0xff] }
 0x56e   : > { %6148 = vmatprep.subr.mxu0 %v8144_v4  ;;  %6183 = vmatprep.subr.mxu1 %v8144_v4 }
 0x56f   : > { %6149 = vmatpush3.msra.mxu0 %v3286_v33  ;;  %6184 = vmatpush3.msra.mxu1 %v3270_v34  ;;  %v3549_v33 = vld [vmem:[#allocation38 + $0x58] sm:$0xff]  ;;  %v3582_v34 = vld [vmem:[#allocation41 + $0x60] sm:$0xff] }
 0x570   : > { %6150 = vmatprep.subr.mxu0 %v8144_v4  ;;  %6152 = vmatprep.mubr.msk.f32.mxu0 %vm8145_vm0, %v8144_v4 }
 0x571   : > { %6151 = vmatpush3.msra.mxu0 %v3285_v35  ;;  %6185 = vmatprep.subr.mxu1 %v8144_v4  ;;  %v3548_v35 = vld [vmem:[#allocation38 + $0x50] sm:$0xff] }
 0x572   : > { %6153 = vmatmul.mubr.f32.vlgmr.msra.gmra.mxu0 %v6972_v38  ;;  %6186 = vmatpush3.msra.mxu1 %v3269_v36  ;;  %v3581_v36 = vld [vmem:[#allocation41 + $0x58] sm:$0xff]  ;;  %v3546_v38 = vld [vmem:[#allocation38 + $0x40] sm:$0xff] }
 0x573   : > { %6187 = vmatprep.mubr.msk.f32.mxu1 %vm8145_vm0, %v8144_v4  ;;  %6190 = vmatprep.subr.mxu0 %v8144_v4 }
 0x574   : > { %6188 = vmatmul.mubr.f32.vlgmr.msra.gmra.mxu1 %v3268_v25  ;;  %6191 = vmatpush3.msra.mxu0 %v3456_v37  ;;  %v3547_v25 = vld [vmem:[#allocation38 + $0x48] sm:$0xff]  ;;  %v3580_v37 = vld [vmem:[#allocation41 + $0x50] sm:$0xff] }
 0x575   : > { %6192 = vmatprep.subr.mxu0 %v8144_v4  ;;  %6222 = vmatprep.mubr.msk.f32.mxu0 %vm8145_vm0, %v8144_v4 }
 0x576   : > { %6193 = vmatpush3.msra.mxu0 %v3455_v39  ;;  %6225 = vmatprep.subr.mxu1 %v8144_v4  ;;  %v3579_v39 = vld [vmem:[#allocation41 + $0x48] sm:$0xff] }
 0x577   : > { %6194 = vmatprep.subr.mxu0 %v8144_v4  ;;  %6226 = vmatpush3.msra.mxu1 %v3601_v40  ;;  %v3545_v40 = vld [vmem:[#allocation38 + $0x38] sm:$0xff] }
 0x578   : > { %6195 = vmatpush3.msra.mxu0 %v3454_v41  ;;  %6227 = vmatprep.subr.mxu1 %v8144_v4  ;;  %v3578_v41 = vld [vmem:[#allocation41 + $0x40] sm:$0xff] }
 0x579   : > { %6196 = vmatprep.subr.mxu0 %v8144_v4  ;;  %6228 = vmatpush3.msra.mxu1 %v3600_v42  ;;  %v3544_v42 = vld [vmem:[#allocation38 + $0x30] sm:$0xff] }
 0x57a   : > { %6197 = vmatpush3.msra.mxu0 %v3453_v43  ;;  %6229 = vmatprep.subr.mxu1 %v8144_v4  ;;  %v3577_v43 = vld [vmem:[#allocation41 + $0x38] sm:$0xff] }
 0x57b   : > { %6198 = vmatprep.subr.mxu0 %v8144_v4  ;;  %6230 = vmatpush3.msra.mxu1 %v3599_v44  ;;  %v3543_v44 = vld [vmem:[#allocation38 + $0x28] sm:$0xff] }
 0x57c   : > { %6199 = vmatpush3.msra.mxu0 %v3452_v45  ;;  %6231 = vmatprep.subr.mxu1 %v8144_v4  ;;  %v3576_v45 = vld [vmem:[#allocation41 + $0x30] sm:$0xff] }
 0x57d   : > { %6200 = vmatprep.subr.mxu0 %v8144_v4  ;;  %6232 = vmatpush3.msra.mxu1 %v3598_v46  ;;  %v3542_v46 = vld [vmem:[#allocation38 + $0x20] sm:$0xff] }
 0x57e   : > { %6201 = vmatpush3.msra.mxu0 %v3451_v47  ;;  %6233 = vmatprep.subr.mxu1 %v8144_v4  ;;  %v3575_v47 = vld [vmem:[#allocation41 + $0x28] sm:$0xff] }
 0x57f   : > { %6202 = vmatprep.subr.mxu0 %v8144_v4  ;;  %6234 = vmatpush3.msra.mxu1 %v3597_v7  ;;  %v3541_v7 = vld [vmem:[#allocation38 + $0x18] sm:$0xff] }
 0x580   : > { %6203 = vmatpush3.msra.mxu0 %v3450_v48  ;;  %6235 = vmatprep.subr.mxu1 %v8144_v4  ;;  %v3574_v48 = vld [vmem:[#allocation41 + $0x20] sm:$0xff] }
 0x581   : > { %6204 = vmatprep.subr.mxu0 %v8144_v4  ;;  %6236 = vmatpush3.msra.mxu1 %v3596_v49  ;;  %v3573_v49 = vld [vmem:[#allocation41 + $0x18] sm:$0xff] }
 0x582   : > { %6205 = vmatpush3.msra.mxu0 %v3449_v50  ;;  %6237 = vmatprep.subr.mxu1 %v8144_v4  ;;  %v3540_v50 = vld [vmem:[#allocation38 + $0x10] sm:$0xff] }
 0x583   : > { %6206 = vmatprep.subr.mxu0 %v8144_v4  ;;  %6238 = vmatpush3.msra.mxu1 %v3595_v51  ;;  %v3572_v51 = vld [vmem:[#allocation41 + $0x10] sm:$0xff] }
 0x584   : > { %6207 = vmatpush3.msra.mxu0 %v3448_v52  ;;  %6239 = vmatprep.subr.mxu1 %v8144_v4  ;;  %v3539_v52 = vld [vmem:[#allocation38 + $0x8] sm:$0xff] }
 0x585   : > { %6208 = vmatprep.subr.mxu0 %v8144_v4  ;;  %6240 = vmatpush3.msra.mxu1 %v3594_v53  ;;  %v3571_v53 = vld [vmem:[#allocation41 + $0x8] sm:$0xff] }
 0x586   : > { %6209 = vmatpush3.msra.mxu0 %v3447_v54  ;;  %6241 = vmatprep.subr.mxu1 %v8144_v4  ;;  %v3538_v54 = vld [vmem:[#allocation38] sm:$0xff] }
 0x587   : > { %6210 = vmatprep.subr.mxu0 %v8144_v4  ;;  %6242 = vmatpush3.msra.mxu1 %v3593_v55  ;;  %v3570_v55 = vld [vmem:[#allocation41] sm:$0xff] }
 0x588   : > { %6211 = vmatpush3.msra.mxu0 %v3446_v56  ;;  %6243 = vmatprep.subr.mxu1 %v8144_v4  ;;  %v5264_v56 = vld [vmem:[%s9756_s1] ss:$0 sm:$0xff]  ;;  %s9762_s1 = sld [smem:[#allocation121_spill]] }
 0x589   : > { %6212 = vmatprep.subr.mxu0 %v8144_v4  ;;  %6244 = vmatpush3.msra.mxu1 %v3592_v57  ;;  %v5265_v57 = vld [vmem:[%s9757_s16] ss:$0 sm:$0xff]  ;;  %s9763_s16 = sld [smem:[#allocation124_spill]] }
 0x58a   : > { %6213 = vmatpush3.msra.mxu0 %v3445_v58  ;;  %6245 = vmatprep.subr.mxu1 %v8144_v4 }
 0x58b   : > { %6214 = vmatprep.subr.mxu0 %v8144_v4  ;;  %6246 = vmatpush3.msra.mxu1 %v3591_v59 }
 0x58c   : > { %6215 = vmatpush3.msra.mxu0 %v3444_v60  ;;  %6247 = vmatprep.subr.mxu1 %v8144_v4 }
 0x58d   : > { %6216 = vmatprep.subr.mxu0 %v8144_v4  ;;  %6248 = vmatpush3.msra.mxu1 %v3590_v61 }
 0x58e   : > { %6217 = vmatpush3.msra.mxu0 %v3443_v62  ;;  %6249 = vmatprep.subr.mxu1 %v8144_v4 }
 0x58f   : > { %6218 = vmatprep.subr.mxu0 %v8144_v4  ;;  %6250 = vmatpush3.msra.mxu1 %v3589_v63 }
 0x590   : > { %6219 = vmatpush3.msra.mxu0 %v3442_v0  ;;  %6251 = vmatprep.subr.mxu1 %v8144_v4 }
 0x591   : > { %6220 = vmatprep.subr.mxu0 %v8144_v4  ;;  %6257 = vmatprep.mubr.msk.f32.mxu1 %vm8145_vm0, %v8144_v4 }
 0x592   : > { %6221 = vmatpush3.msra.mxu0 %v3441_v1  ;;  %6252 = vmatpush3.msra.mxu1 %v3588_v5 }
 0x593   : > { %6223 = vmatmul.mubr.f32.vlgmr.msra.gmra.mxu0 %v6973_v3  ;;  %6260 = vmatprep.subr.mxu0 %v8144_v4 }
 0x594   : > { %6292 = vmatprep.mubr.msk.f32.mxu0 %vm8145_vm0, %v8144_v4  ;;  %6253 = vmatprep.subr.mxu1 %v8144_v4 }
 0x595   : > { %6254 = vmatpush3.msra.mxu1 %v3587_v6  ;;  %6261 = vmatpush3.msra.mxu0 %v3553_v27 }
 0x596   : > { %6255 = vmatprep.subr.mxu1 %v8144_v4  ;;  %6262 = vmatprep.subr.mxu0 %v8144_v4 }
 0x597   : > { %6256 = vmatpush3.msra.mxu1 %v3586_v8  ;;  %6263 = vmatpush3.msra.mxu0 %v3552_v2  ;;  %v3569_v2 = vld [vmem:[#allocation39 + $0x78] sm:$0xff] }
 0x598   : > { %6295 = vmatprep.subr.mxu1 %v8144_v4  ;;  %6258 = vmatmul.mubr.f32.vlgmr.msra.gmra.mxu1 %v9218_v9 }
 0x599   : > { %6296 = vmatpush3.msra.mxu1 %v3617_v10  ;;  %6327 = vmatprep.mubr.msk.f32.mxu1 %vm8145_vm0, %v8144_v4 }
 0x59a   : > { %6297 = vmatprep.subr.mxu1 %v8144_v4  ;;  %6264 = vmatprep.subr.mxu0 %v8144_v4 }
 0x59b   : > { %6298 = vmatpush3.msra.mxu1 %v3616_v11  ;;  %6265 = vmatpush3.msra.mxu0 %v3551_v30 }
 0x59c   : > { %6299 = vmatprep.subr.mxu1 %v8144_v4  ;;  %6266 = vmatprep.subr.mxu0 %v8144_v4 }
 0x59d   : > { %6300 = vmatpush3.msra.mxu1 %v3615_v12  ;;  %6267 = vmatpush3.msra.mxu0 %v3550_v32 }
 0x59e   : > { %6301 = vmatprep.subr.mxu1 %v8144_v4  ;;  %6268 = vmatprep.subr.mxu0 %v8144_v4 }
 0x59f   : > { %6302 = vmatpush3.msra.mxu1 %v3614_v13  ;;  %6269 = vmatpush3.msra.mxu0 %v3549_v33  ;;  %v3566_v33 = vld [vmem:[#allocation39 + $0x60] sm:$0xff] }
 0x5a0   : > { %6303 = vmatprep.subr.mxu1 %v8144_v4  ;;  %6270 = vmatprep.subr.mxu0 %v8144_v4 }
 0x5a1   : > { %6304 = vmatpush3.msra.mxu1 %v3613_v14  ;;  %6271 = vmatpush3.msra.mxu0 %v3548_v35  ;;  %v3564_v35 = vld [vmem:[#allocation39 + $0x50] sm:$0xff] }
 0x5a2   : > { %6305 = vmatprep.subr.mxu1 %v8144_v4  ;;  %6272 = vmatprep.subr.mxu0 %v8144_v4 }
 0x5a3   : > { %6306 = vmatpush3.msra.mxu1 %v3612_v15  ;;  %6273 = vmatpush3.msra.mxu0 %v3547_v25  ;;  %v3562_v25 = vld [vmem:[#allocation39 + $0x40] sm:$0xff] }
 0x5a4   : > { %6307 = vmatprep.subr.mxu1 %v8144_v4  ;;  %6274 = vmatprep.subr.mxu0 %v8144_v4 }
 0x5a5   : > { %6308 = vmatpush3.msra.mxu1 %v3611_v16  ;;  %6275 = vmatpush3.msra.mxu0 %v3546_v38  ;;  %v3560_v38 = vld [vmem:[#allocation39 + $0x30] sm:$0xff] }
 0x5a6   : > { %6309 = vmatprep.subr.mxu1 %v8144_v4  ;;  %6276 = vmatprep.subr.mxu0 %v8144_v4 }
 0x5a7   : > { %6310 = vmatpush3.msra.mxu1 %v3610_v17  ;;  %6277 = vmatpush3.msra.mxu0 %v3545_v40  ;;  %v3260_v17 = vld [vmem:[%s1838_s17] sm:$0xff]  ;;  %s9759_s17 = sld [smem:[#allocation119_spill]] }
 0x5a8   : > { %6311 = vmatprep.subr.mxu1 %v8144_v4  ;;  %6278 = vmatprep.subr.mxu0 %v8144_v4  ;;  %v3558_v40 = vld [vmem:[#allocation39 + $0x20] sm:$0xff] }
 0x5a9   : > { %6312 = vmatpush3.msra.mxu1 %v3609_v18  ;;  %6279 = vmatpush3.msra.mxu0 %v3544_v42  ;;  %v3556_v42 = vld [vmem:[#allocation39 + $0x10] sm:$0xff] }
 0x5aa   : > { %6313 = vmatprep.subr.mxu1 %v8144_v4  ;;  %6280 = vmatprep.subr.mxu0 %v8144_v4 }
 0x5ab   : > { %6314 = vmatpush3.msra.mxu1 %v3608_v19  ;;  %6281 = vmatpush3.msra.mxu0 %v3543_v44  ;;  %v3554_v44 = vld [vmem:[#allocation39] sm:$0xff] }
 0x5ac   : > { %6315 = vmatprep.subr.mxu1 %v8144_v4  ;;  %6282 = vmatprep.subr.mxu0 %v8144_v4 }
 0x5ad   : > { %6316 = vmatpush3.msra.mxu1 %v3607_v20  ;;  %6283 = vmatpush3.msra.mxu0 %v3542_v46  ;;  %v3632_v46 = vld [vmem:[#allocation45 + $0x70] sm:$0xff] }
 0x5ae   : > { %6317 = vmatprep.subr.mxu1 %v8144_v4  ;;  %6284 = vmatprep.subr.mxu0 %v8144_v4 }
 0x5af   : > { %6318 = vmatpush3.msra.mxu1 %v3606_v21  ;;  %6285 = vmatpush3.msra.mxu0 %v3541_v7 }
 0x5b0   : > { %6319 = vmatprep.subr.mxu1 %v8144_v4  ;;  %6286 = vmatprep.subr.mxu0 %v8144_v4 }
 0x5b1   : > { %6320 = vmatpush3.msra.mxu1 %v3605_v22  ;;  %6287 = vmatpush3.msra.mxu0 %v3540_v50  ;;  %v3629_v50 = vld [vmem:[#allocation45 + $0x58] sm:$0xff] }
 0x5b2   : > { %6321 = vmatprep.subr.mxu1 %v8144_v4  ;;  %6288 = vmatprep.subr.mxu0 %v8144_v4 }
 0x5b3   : > { %6322 = vmatpush3.msra.mxu1 %v3604_v23  ;;  %6289 = vmatpush3.msra.mxu0 %v3539_v52  ;;  %v5266_v23 = vld [vmem:[%s9758_s15] ss:$0 sm:$0xff]  ;;  %v3627_v52 = vld [vmem:[#allocation45 + $0x48] sm:$0xff]  ;;  %s9764_s15 = sld [smem:[#allocation130_spill]] }
 0x5b4   : > { %6323 = vmatprep.subr.mxu1 %v8144_v4  ;;  %6290 = vmatprep.subr.mxu0 %v8144_v4 }
 0x5b5   : > { %6324 = vmatpush3.msra.mxu1 %v3603_v24  ;;  %6291 = vmatpush3.msra.mxu0 %v3538_v54  ;;  %v3625_v54 = vld [vmem:[#allocation45 + $0x38] sm:$0xff] }
 0x5b6   : > { %6325 = vmatprep.subr.mxu1 %v8144_v4  ;;  %6330 = vmatprep.subr.mxu0 %v8144_v4 }
 0x5b7   : > { %6326 = vmatpush3.msra.mxu1 %v3602_v26 }
 0x5b8   : > { %6365 = vmatprep.subr.mxu1 %v8144_v4  ;;  %6328 = vmatmul.mubr.f32.vlgmr.msra.gmra.mxu1 %v9218_v9 }
 0x5b9   : > { %6366 = vmatpush3.msra.mxu1 %v3585_v28  ;;  %6397 = vmatprep.mubr.msk.f32.mxu1 %vm8145_vm0, %v8144_v4 }
 0x5ba   : > { %6367 = vmatprep.subr.mxu1 %v8144_v4 }
 0x5bb   : > { %6368 = vmatpush3.msra.mxu1 %v3584_v29  ;;  %v3568_v29 = vld [vmem:[#allocation39 + $0x70] sm:$0xff] }
 0x5bc   : > { %6369 = vmatprep.subr.mxu1 %v8144_v4 }
 0x5bd   : > { %6370 = vmatpush3.msra.mxu1 %v3583_v31  ;;  %v3567_v31 = vld [vmem:[#allocation39 + $0x68] sm:$0xff] }
 0x5be   : > { %6371 = vmatprep.subr.mxu1 %v8144_v4 }
 0x5bf   : > { %6372 = vmatpush3.msra.mxu1 %v3582_v34  ;;  %v3565_v34 = vld [vmem:[#allocation39 + $0x58] sm:$0xff] }
 0x5c0   : > { %6373 = vmatprep.subr.mxu1 %v8144_v4 }
 0x5c1   : > { %6374 = vmatpush3.msra.mxu1 %v3581_v36  ;;  %v3563_v36 = vld [vmem:[#allocation39 + $0x48] sm:$0xff] }
 0x5c2   : > { %6375 = vmatprep.subr.mxu1 %v8144_v4 }
 0x5c3   : > { %6376 = vmatpush3.msra.mxu1 %v3580_v37  ;;  %v3561_v37 = vld [vmem:[#allocation39 + $0x38] sm:$0xff] }
 0x5c4   : > { %6377 = vmatprep.subr.mxu1 %v8144_v4 }
 0x5c5   : > { %6378 = vmatpush3.msra.mxu1 %v3579_v39  ;;  %v3559_v39 = vld [vmem:[#allocation39 + $0x28] sm:$0xff] }
 0x5c6   : > { %6379 = vmatprep.subr.mxu1 %v8144_v4 }
 0x5c7   : > { %6380 = vmatpush3.msra.mxu1 %v3578_v41  ;;  %v3557_v41 = vld [vmem:[#allocation39 + $0x18] sm:$0xff] }
 0x5c8   : > { %6381 = vmatprep.subr.mxu1 %v8144_v4 }
 0x5c9   : > { %6382 = vmatpush3.msra.mxu1 %v3577_v43  ;;  %v3555_v43 = vld [vmem:[#allocation39 + $0x8] sm:$0xff] }
 0x5ca   : > { %6383 = vmatprep.subr.mxu1 %v8144_v4 }
 0x5cb   : > { %6384 = vmatpush3.msra.mxu1 %v3576_v45  ;;  %v3633_v45 = vld [vmem:[#allocation45 + $0x78] sm:$0xff] }
 0x5cc   : > { %6385 = vmatprep.subr.mxu1 %v8144_v4 }
 0x5cd   : > { %6386 = vmatpush3.msra.mxu1 %v3575_v47  ;;  %v3631_v47 = vld [vmem:[#allocation45 + $0x68] sm:$0xff] }
 0x5ce   : > { %6387 = vmatprep.subr.mxu1 %v8144_v4 }
 0x5cf   : > { %6388 = vmatpush3.msra.mxu1 %v3574_v48  ;;  %v3630_v48 = vld [vmem:[#allocation45 + $0x60] sm:$0xff] }
 0x5d0   : > { %6389 = vmatprep.subr.mxu1 %v8144_v4 }
 0x5d1   : > { %6390 = vmatpush3.msra.mxu1 %v3573_v49 }
 0x5d2   : > { %6391 = vmatprep.subr.mxu1 %v8144_v4 }
 0x5d3   : > { %6392 = vmatpush3.msra.mxu1 %v3572_v51  ;;  %v3628_v51 = vld [vmem:[#allocation45 + $0x50] sm:$0xff] }
 0x5d4   : > { %6393 = vmatprep.subr.mxu1 %v8144_v4 }
 0x5d5   : > { %6394 = vmatpush3.msra.mxu1 %v3571_v53  ;;  %v3626_v53 = vld [vmem:[#allocation45 + $0x40] sm:$0xff] }
 0x5d6   : > { %6395 = vmatprep.subr.mxu1 %v8144_v4 }
 0x5d7   : > { %6396 = vmatpush3.msra.mxu1 %v3570_v55  ;;  %v3624_v55 = vld [vmem:[#allocation45 + $0x30] sm:$0xff] }
 0x5d8   : > { %6435 = vmatprep.subr.mxu1 %v8144_v4 }
 0x612   : > { %v3153_v58 = vpop.f32.mrf.mxu0  ;;  %v3246_v59 = vpop.f32.mrf.mxu1 }
 0x613   : > { %v3154_v60 = vadd.f32 %v5264_v56, %v3153_v58  ;;  %v3247_v61 = vadd.f32 %v5265_v57, %v3246_v59  ;;  %v3623_v56 = vld [vmem:[#allocation45 + $0x28] sm:$0xff]  ;;  %v3622_v57 = vld [vmem:[#allocation45 + $0x20] sm:$0xff]  ;;  %v3621_v58 = vld [vmem:[#allocation45 + $0x18] sm:$0xff] }
 0x614   : > { %v6084_v62 = vpop.f32.mrf.mxu0  ;;  %v6119_v63 = vpop.f32.mrf.mxu1  ;;  %v3620_v59 = vld [vmem:[#allocation45 + $0x10] sm:$0xff] }
 0x615   : > { %3265 = vst [vmem:[%s9619_s5] sm:$0xff] %v3154_v60  ;;  %v3251_v0 = vand.u32 2147483647, %v3247_v61  ;;  %v3250_v14 = vmax.f32 %v3247_v61, 0.0  ;;  %v3618_v61 = vld [vmem:[#allocation45] sm:$0xff]  ;;  %v4119_v62 = vld [vmem:[#allocation47 + $0x78] sm:$0xff]  ;;  %v4118_v63 = vld [vmem:[#allocation47 + $0x70] sm:$0xff] }
 0x617   : > { %v3252_v1 = vsub.f32 0.0, %v3251_v0  ;;  %v4117_v0 = vld [vmem:[#allocation47 + $0x68] sm:$0xff] }
 0x619   : > { %v3253_v3 = vmul.f32 1.442695, %v3252_v1  ;;  %v4116_v1 = vld [vmem:[#allocation47 + $0x60] sm:$0xff] }
 0x61b   : > { %6954 = vpow2.f32 %v3253_v3  ;;  %v4115_v3 = vld [vmem:[#allocation47 + $0x58] sm:$0xff] }
 0x628   : > { %v6955_v5 = vpop.eup %6954 }
 0x629   : > { %v3255_v6 = vadd.f32 1.0, %v6955_v5  ;;  %v4114_v5 = vld [vmem:[#allocation47 + $0x50] sm:$0xff] }
 0x62b   : > { %6956 = vlog2.f32 %v3255_v6  ;;  %v4113_v6 = vld [vmem:[#allocation47 + $0x48] sm:$0xff] }
 0x632   : > { %v3367_v8 = vpop.f32.mrf.mxu0 }
 0x634   : > { %v3437_v10 = vpop.f32.mrf.mxu1  ;;  %v6154_v11 = vpop.f32.mrf.mxu0 }
 0x635   : > { %v3438_v21 = vadd.f32 %v3437_v10, %v3367_v8  ;;  %v4112_v8 = vld [vmem:[#allocation47 + $0x40] sm:$0xff]  ;;  %v4111_v10 = vld [vmem:[#allocation47 + $0x38] sm:$0xff]  ;;  %v4110_v11 = vld [vmem:[#allocation47 + $0x30] sm:$0xff] }
 0x636   : > { %v6189_v12 = vpop.f32.mrf.mxu1 }
 0x637   : > { %v4109_v12 = vld [vmem:[#allocation47 + $0x28] sm:$0xff] }
 0x638   : > { %v6957_v13 = vpop.eup %6956 }
 0x639   : > { %v3257_v15 = vmul.f32 0.6931472, %v6957_v13  ;;  %v4108_v13 = vld [vmem:[#allocation47 + $0x20] sm:$0xff] }
 0x63b   : > { %v3258_v16 = vadd.f32 %v3257_v15, %v3250_v14  ;;  %v4107_v14 = vld [vmem:[#allocation47 + $0x18] sm:$0xff]  ;;  %v4106_v15 = vld [vmem:[#allocation47 + $0x10] sm:$0xff] }
 0x63d   : > { %v3259_v18 = vadd.f32 0.1, %v3258_v16  ;;  %v4105_v16 = vld [vmem:[#allocation47 + $0x8] sm:$0xff] }
 0x63f   : > { %v3261_v19 = vmul.f32 %v3260_v17, %v3259_v18  ;;  %3266 = vst [vmem:[%s9618_s22] sm:$0xff] %v3259_v18  ;;  %v4104_v17 = vld [vmem:[#allocation47] sm:$0xff]  ;;  %v4213_v18 = vld [vmem:[#allocation48 + $0x78] sm:$0xff] }
 0x641   : > { %v3262_v20 = vadd.f32 %v3261_v19, %v3154_v60  ;;  %v3619_v60 = vld [vmem:[#allocation45 + $0x8] sm:$0xff]  ;;  %v4212_v19 = vld [vmem:[#allocation48 + $0x70] sm:$0xff] }
 0x643   : > { %3263 = vst [vmem:[#allocation2] sm:$0xff] %v3262_v20  ;;  %3267 = vst [vmem:[%s2105_s28] sm:$0xff] %v3262_v20  ;;  %v4211_v20 = vld [vmem:[#allocation48 + $0x68] sm:$0xff] }
 0x653   : > { %v3523_v22 = vpop.f32.mrf.mxu0 }
 0x654   : > { %v3527_v24 = vadd.f32 %v3523_v22, %v3438_v21  ;;  %v4210_v21 = vld [vmem:[#allocation48 + $0x60] sm:$0xff]  ;;  %v4209_v22 = vld [vmem:[#allocation48 + $0x58] sm:$0xff] }
 0x655   : > { %v6224_v26 = vpop.f32.mrf.mxu0 }
 0x656   : > { %v3535_v27 = vadd.f32 %v5266_v23, %v3527_v24  ;;  %v4208_v23 = vld [vmem:[#allocation48 + $0x50] sm:$0xff]  ;;  %v4207_v24 = vld [vmem:[#allocation48 + $0x48] sm:$0xff]  ;;  %v4206_v26 = vld [vmem:[#allocation48 + $0x40] sm:$0xff] }
 0x658   : > { %v3536_v28 = vmax.f32 %v3535_v27, 0.0  ;;  %v9287_v30 = vpop.f32.mrf.mxu1  ;;  %v4205_v27 = vld [vmem:[#allocation48 + $0x38] sm:$0xff] }
 0x65a   : > { %6293 = vmatmul.mubr.f32.vlgmr.msra.gmra.mxu0 %v3536_v28  ;;  %6398 = vmatmul.mubr.f32.vlgmr.msra.gmra.mxu1 %v3536_v28  ;;  %v6259_v32 = vpop.f32.mrf.mxu1 }
 0x65b   : > { %6331 = vmatpush3.msra.mxu0 %v3569_v2  ;;  %6362 = vmatprep.mubr.msk.f32.mxu0 %vm8145_vm0, %v8144_v4  ;;  %v4203_v2 = vld [vmem:[#allocation48 + $0x28] sm:$0xff] }
 0x65c   : > { %6332 = vmatprep.subr.mxu0 %v8144_v4  ;;  %6467 = vmatprep.mubr.msk.f32.mxu1 %vm8145_vm0, %v8144_v4 }
 0x65d   : > { %6333 = vmatpush3.msra.mxu0 %v3568_v29  ;;  %6436 = vmatpush3.msra.mxu1 %v4119_v62  ;;  %v4202_v29 = vld [vmem:[#allocation48 + $0x20] sm:$0xff] }
 0x65e   : > { %6334 = vmatprep.subr.mxu0 %v8144_v4  ;;  %6437 = vmatprep.subr.mxu1 %v8144_v4 }
 0x65f   : > { %6335 = vmatpush3.msra.mxu0 %v3567_v31  ;;  %6438 = vmatpush3.msra.mxu1 %v4118_v63  ;;  %v4201_v31 = vld [vmem:[#allocation48 + $0x18] sm:$0xff] }
 0x660   : > { %6336 = vmatprep.subr.mxu0 %v8144_v4  ;;  %6439 = vmatprep.subr.mxu1 %v8144_v4 }
 0x661   : > { %6337 = vmatpush3.msra.mxu0 %v3566_v33  ;;  %6440 = vmatpush3.msra.mxu1 %v4117_v0  ;;  %v4306_v0 = vld [vmem:[#allocation50 + $0x78] sm:$0xff] }
 0x662   : > { %6338 = vmatprep.subr.mxu0 %v8144_v4  ;;  %6441 = vmatprep.subr.mxu1 %v8144_v4 }
 0x663   : > { %6339 = vmatpush3.msra.mxu0 %v3565_v34  ;;  %6442 = vmatpush3.msra.mxu1 %v4116_v1  ;;  %v4305_v1 = vld [vmem:[#allocation50 + $0x70] sm:$0xff] }
 0x664   : > { %6340 = vmatprep.subr.mxu0 %v8144_v4  ;;  %6443 = vmatprep.subr.mxu1 %v8144_v4 }
 0x665   : > { %6341 = vmatpush3.msra.mxu0 %v3564_v35  ;;  %6444 = vmatpush3.msra.mxu1 %v4115_v3  ;;  %v4304_v3 = vld [vmem:[#allocation50 + $0x68] sm:$0xff] }
 0x666   : > { %6342 = vmatprep.subr.mxu0 %v8144_v4  ;;  %6445 = vmatprep.subr.mxu1 %v8144_v4 }
 0x667   : > { %6343 = vmatpush3.msra.mxu0 %v3563_v36  ;;  %6446 = vmatpush3.msra.mxu1 %v4114_v5  ;;  %v4303_v5 = vld [vmem:[#allocation50 + $0x60] sm:$0xff] }
 0x668   : > { %6344 = vmatprep.subr.mxu0 %v8144_v4  ;;  %6447 = vmatprep.subr.mxu1 %v8144_v4 }
 0x669   : > { %6345 = vmatpush3.msra.mxu0 %v3562_v25  ;;  %6448 = vmatpush3.msra.mxu1 %v4113_v6  ;;  %v5267_v25 = vld [vmem:[%s9759_s17] ss:$0 sm:$0xff]  ;;  %v4301_v6 = vld [vmem:[#allocation50 + $0x50] sm:$0xff]  ;;  %s9389_s17 = sshll.u32 %s8450_s18, 7 }
 0x66a   : > { %6346 = vmatprep.subr.mxu0 %v8144_v4  ;;  %6449 = vmatprep.subr.mxu1 %v8144_v4 }
 0x66b   : > { %6347 = vmatpush3.msra.mxu0 %v3561_v37  ;;  %6450 = vmatpush3.msra.mxu1 %v4112_v8  ;;  %v4300_v8 = vld [vmem:[#allocation50 + $0x48] sm:$0xff] }
 0x66c   : > { %6348 = vmatprep.subr.mxu0 %v8144_v4  ;;  %6451 = vmatprep.subr.mxu1 %v8144_v4 }
 0x66d   : > { %6349 = vmatpush3.msra.mxu0 %v3560_v38  ;;  %6452 = vmatpush3.msra.mxu1 %v4111_v10  ;;  %v4299_v10 = vld [vmem:[#allocation50 + $0x40] sm:$0xff] }
 0x66e   : > { %6350 = vmatprep.subr.mxu0 %v8144_v4  ;;  %6453 = vmatprep.subr.mxu1 %v8144_v4 }
 0x66f   : > { %6351 = vmatpush3.msra.mxu0 %v3559_v39  ;;  %6454 = vmatpush3.msra.mxu1 %v4110_v11  ;;  %v4298_v11 = vld [vmem:[#allocation50 + $0x38] sm:$0xff] }
 0x670   : > { %6352 = vmatprep.subr.mxu0 %v8144_v4  ;;  %6455 = vmatprep.subr.mxu1 %v8144_v4 }
 0x671   : > { %6353 = vmatpush3.msra.mxu0 %v3558_v40  ;;  %6456 = vmatpush3.msra.mxu1 %v4109_v12  ;;  %v5268_v40 = vld [vmem:[%s9760_s8] ss:$0 sm:$0xff]  ;;  %v4297_v12 = vld [vmem:[#allocation50 + $0x30] sm:$0xff]  ;;  %s4462_s8 = scalar_lea.hbm %s9764_s15, %s9389_s17 }
 0x672   : > { %6354 = vmatprep.subr.mxu0 %v8144_v4  ;;  %6457 = vmatprep.subr.mxu1 %v8144_v4 }
 0x673   : > { %6355 = vmatpush3.msra.mxu0 %v3557_v41  ;;  %6458 = vmatpush3.msra.mxu1 %v4108_v13  ;;  %v4296_v13 = vld [vmem:[#allocation50 + $0x28] sm:$0xff] }
 0x674   : > { %6356 = vmatprep.subr.mxu0 %v8144_v4  ;;  %6459 = vmatprep.subr.mxu1 %v8144_v4 }
 0x675   : > { %6357 = vmatpush3.msra.mxu0 %v3556_v42  ;;  %6460 = vmatpush3.msra.mxu1 %v4107_v14  ;;  %v4295_v14 = vld [vmem:[#allocation50 + $0x20] sm:$0xff] }
 0x676   : > { %6358 = vmatprep.subr.mxu0 %v8144_v4  ;;  %6461 = vmatprep.subr.mxu1 %v8144_v4 }
 0x677   : > { %6359 = vmatpush3.msra.mxu0 %v3555_v43  ;;  %6462 = vmatpush3.msra.mxu1 %v4106_v15  ;;  %v4294_v15 = vld [vmem:[#allocation50 + $0x18] sm:$0xff] }
 0x678   : > { %6360 = vmatprep.subr.mxu0 %v8144_v4  ;;  %v9310_v7 = vpop.f32.mrf.mxu1  ;;  %6463 = vmatprep.subr.mxu1 %v8144_v4 }
 0x679   : > { %6361 = vmatpush3.msra.mxu0 %v3554_v44  ;;  %6464 = vmatpush3.msra.mxu1 %v4105_v16  ;;  %v4200_v16 = vld [vmem:[#allocation48 + $0x10] sm:$0xff] }
 0x67a   : > { %6363 = vmatmul.mubr.f32.vlgmr.msra.gmra.mxu0 %v3536_v28  ;;  %6400 = vmatprep.subr.mxu0 %v8144_v4  ;;  %v6329_v49 = vpop.f32.mrf.mxu1  ;;  %v4204_v28 = vld [vmem:[#allocation48 + $0x30] sm:$0xff] }
 0x67b   : > { %6401 = vmatpush3.msra.mxu0 %v3633_v45  ;;  %6432 = vmatprep.mubr.msk.f32.mxu0 %vm8145_vm0, %v8144_v4  ;;  %v5270_v49 = vld [vmem:[%s9761_s12] ss:$0 sm:$0xff]  ;;  %s4464_s12 = sshll.u32 %s2077_s24, 4  ;;  %s4465_s12 = int_to_ptr.vmem [resolvable:$true] %s4464_s12 }
 0x67c   : > { %6402 = vmatprep.subr.mxu0 %v8144_v4  ;;  %6465 = vmatprep.subr.mxu1 %v8144_v4  ;;  %s7736_s29 = scalar_lea.vmem %s4465_s12, 128 }
 0x67d   : > { %6403 = vmatpush3.msra.mxu0 %v3632_v46  ;;  %6466 = vmatpush3.msra.mxu1 %v4104_v17  ;;  %v4293_v17 = vld [vmem:[#allocation50 + $0x10] sm:$0xff]  ;;  %p7737_p4 = scmp.ne.s32.totalorder %s4465_s12, %s7736_s29 }
 0x67e   : > { %6404 = vmatprep.subr.mxu0 %v8144_v4  ;;  %6505 = vmatprep.subr.mxu1 %v8144_v4 }
 0x67f   : > { %6405 = vmatpush3.msra.mxu0 %v3631_v47  ;;  %p7738_p7 = pnand %p7737_p4, %p9765_p0 }
 0x680   : > { %6406 = vmatprep.subr.mxu0 %v8144_v4 }
 0x681   : > { %6407 = vmatpush3.msra.mxu0 %v3630_v48  ;;  %p7739_p8 = pneg %p7738_p7 }
 0x682   : > { %6408 = vmatprep.subr.mxu0 %v8144_v4 }
 0x683   : > { %6409 = vmatpush3.msra.mxu0 %v3629_v50 }
 0x684   : > { %6410 = vmatprep.subr.mxu0 %v8144_v4 }
 0x685   : > { %6411 = vmatpush3.msra.mxu0 %v3628_v51  ;;  %v5269_v51 = vld [vmem:[%s9762_s1] ss:$0 sm:$0xff]  ;;  %s9620_s1 = scalar_lea.sflag [#allocation53], %s8824_s4 }
 0x686   : > { %6412 = vmatprep.subr.mxu0 %v8144_v4 }
 0x687   : > { %6413 = vmatpush3.msra.mxu0 %v3627_v52 }
 0x688   : > { %6414 = vmatprep.subr.mxu0 %v8144_v4 }
 0x689   : > { %6415 = vmatpush3.msra.mxu0 %v3626_v53 }
 0x68a   : > { %6416 = vmatprep.subr.mxu0 %v8144_v4 }
 0x68b   : > { %6417 = vmatpush3.msra.mxu0 %v3625_v54 }
 0x68c   : > { %6418 = vmatprep.subr.mxu0 %v8144_v4 }
 0x68d   : > { %6419 = vmatpush3.msra.mxu0 %v3624_v55 }
 0x68e   : > { %6420 = vmatprep.subr.mxu0 %v8144_v4 }
 0x68f   : > { %6421 = vmatpush3.msra.mxu0 %v3623_v56 }
 0x690   : > { %6422 = vmatprep.subr.mxu0 %v8144_v4 }
 0x691   : > { %6423 = vmatpush3.msra.mxu0 %v3622_v57 }
 0x692   : > { %6424 = vmatprep.subr.mxu0 %v8144_v4 }
 0x693   : > { %6425 = vmatpush3.msra.mxu0 %v3621_v58 }
 0x694   : > { %6426 = vmatprep.subr.mxu0 %v8144_v4 }
 0x695   : > { %6427 = vmatpush3.msra.mxu0 %v3620_v59 }
 0x696   : > { %6428 = vmatprep.subr.mxu0 %v8144_v4 }
 0x697   : > { %6429 = vmatpush3.msra.mxu0 %v3619_v60 }
 0x698   : > { %6430 = vmatprep.subr.mxu0 %v8144_v4 }
 0x699   : > { %6431 = vmatpush3.msra.mxu0 %v3618_v61 }
 0x69a   : > { %6433 = vmatmul.mubr.f32.vlgmr.msra.gmra.mxu0 %v9218_v9  ;;  %6470 = vmatprep.subr.mxu0 %v8144_v4 }
 0x69b   : > { %6502 = vmatprep.mubr.msk.f32.mxu0 %vm8145_vm0, %v8144_v4  ;;  %6471 = vmatpush3.msra.mxu0 %v4213_v18  ;;  %v4199_v18 = vld [vmem:[#allocation48 + $0x8] sm:$0xff] }
 0x69c   : > { %6472 = vmatprep.subr.mxu0 %v8144_v4 }
 0x69d   : > { %6473 = vmatpush3.msra.mxu0 %v4212_v19  ;;  %v4292_v19 = vld [vmem:[#allocation50 + $0x8] sm:$0xff] }
 0x69e   : > { %6474 = vmatprep.subr.mxu0 %v8144_v4 }
 0x69f   : > { %6475 = vmatpush3.msra.mxu0 %v4211_v20  ;;  %v4198_v20 = vld [vmem:[#allocation48] sm:$0xff] }
 0x6a0   : > { %6476 = vmatprep.subr.mxu0 %v8144_v4 }
 0x6a1   : > { %6477 = vmatpush3.msra.mxu0 %v4210_v21  ;;  %v4291_v21 = vld [vmem:[#allocation50] sm:$0xff] }
 0x6a2   : > { %6478 = vmatprep.subr.mxu0 %v8144_v4 }
 0x6a3   : > { %6479 = vmatpush3.msra.mxu0 %v4209_v22  ;;  %v5271_v22 = vld [vmem:[%s9763_s16] ss:$0 sm:$0xff]  ;;  %s8146_s16 = smov [#allocation52]  }
 0x6a4   : > { %6480 = vmatprep.subr.mxu0 %v8144_v4  ;;  %s7740_s21 = sshll.u32 %s8146_s16, 4  ;;  %s7741_s21 = int_to_ptr.vmem [resolvable:$false] %s7740_s21 }
 0x6a5   : > { %6481 = vmatpush3.msra.mxu0 %v4208_v23  ;;  %s7742_s22 = scalar_lea.vmem %s7741_s21, 256  ;;  %p7743_p2 = scmp.lt.s32.totalorder %s4465_s12, %s7741_s21 }
 0x6a6   : > { %6482 = vmatprep.subr.mxu0 %v8144_v4  ;;  %p7744_p10 = scmp.lt.s32.totalorder %s7742_s22, %s7736_s29 }
 0x6a7   : > { %6483 = vmatpush3.msra.mxu0 %v4207_v24 }
 0x6a8   : > { %6484 = vmatprep.subr.mxu0 %v8144_v4  ;;  %p7745_p1 = por %p7744_p10, %p7743_p2 }
 0x6a9   : > { %6485 = vmatpush3.msra.mxu0 %v4206_v26 }
 0x6aa   : > { %6486 = vmatprep.subr.mxu0 %v8144_v4  ;;  %p7746_p3 = pnand %p7745_p1, %p7739_p8 }
 0x6ab   : > { %6487 = vmatpush3.msra.mxu0 %v4205_v27 }
 0x6ac   : > { %6488 = vmatprep.subr.mxu0 %v8144_v4 }
 0x6ad   : > { %6489 = vmatpush3.msra.mxu0 %v4204_v28 }
 0x6ae   : > { %6490 = vmatprep.subr.mxu0 %v8144_v4 }
 0x6af   : > { %6491 = vmatpush3.msra.mxu0 %v4203_v2 }
 0x6b0   : > { %6492 = vmatprep.subr.mxu0 %v8144_v4 }
 0x6b1   : > { %6493 = vmatpush3.msra.mxu0 %v4202_v29 }
 0x6b2   : > { %6494 = vmatprep.subr.mxu0 %v8144_v4 }
 0x6b3   : > { %6495 = vmatpush3.msra.mxu0 %v4201_v31 }
 0x6b4   : > { %6496 = vmatprep.subr.mxu0 %v8144_v4 }
 0x6b5   : > { %6497 = vmatpush3.msra.mxu0 %v4200_v16 }
 0x6b6   : > { %6498 = vmatprep.subr.mxu0 %v8144_v4 }
 0x6b7   : > { %6499 = vmatpush3.msra.mxu0 %v4199_v18 }
 0x6b8   : > { %6500 = vmatprep.subr.mxu0 %v8144_v4 }
 0x6b9   : > { %6501 = vmatpush3.msra.mxu0 %v4198_v20 }
 0x71a   : > { %v3774_v32 = vpop.f32.mrf.mxu0  ;;  %v4016_v33 = vpop.f32.mrf.mxu1 }
 0x71b   : > { %v3775_v36 = vadd.f32 %v3774_v32, %v9287_v30  ;;  %v4017_v56 = vadd.f32 %v5269_v51, %v4016_v33 }
 0x71c   : > { %v6294_v34 = vpop.f32.mrf.mxu0  ;;  %v6399_v35 = vpop.f32.mrf.mxu1 }
 0x71d   : > { %v3784_v37 = vadd.f32 %v5267_v25, %v3775_v36 }
 0x71f   : > { %v3785_v38 = vsub.f32 0.0, %v3784_v37 }
 0x721   : > { %v3786_v39 = vmul.f32 1.442695, %v3785_v38 }
 0x723   : > { %6958 = vpow2.f32 %v3786_v39 }
 0x730   : > { %v6959_v47 = vpop.eup %6958 }
 0x731   : > { %v3788_v48 = vadd.f32 1.0, %v6959_v47 }
 0x73a   : > { %v3927_v41 = vpop.f32.mrf.mxu0 }
 0x73b   : > { %v3928_v42 = vadd.f32 %v3927_v41, %v9310_v7 }
 0x73c   : > { %v6364_v43 = vpop.f32.mrf.mxu0 }
 0x73d   : > { %v3937_v44 = vadd.f32 %v5268_v40, %v3928_v42 }
 0x73f   : > { %v3938_v45 = vsub.f32 0.0, %v3937_v44 }
 0x741   : > { %v3939_v46 = vmul.f32 1.442695, %v3938_v45 }
 0x743   : > { %6960 = vpow2.f32 %v3939_v46 }
 0x744   : > { %6962 = vrcp.f32 %v3788_v48 }
 0x750   : > { %v6961_v30 = vpop.eup %6960 }
 0x751   : > { %v3941_v50 = vadd.f32 1.0, %v6961_v30  ;;  %v6963_v54 = vpop.eup %6962 }
 0x753   : > { %6964 = vrcp.f32 %v3941_v50 }
 0x75a   : > { %v4092_v52 = vpop.f32.mrf.mxu0 }
 0x75b   : > { %v4093_v53 = vadd.f32 %v5270_v49, %v4092_v52 }
 0x75c   : > { %v6434_v55 = vpop.f32.mrf.mxu0 }
 0x75d   : > { %v4096_v7 = vmul.f32 %v6963_v54, %v4093_v53 }
 0x75f   : > { %v4097_v57 = vadd.f32 %v4096_v7, %v4017_v56 }
 0x760   : > { %v6965_v58 = vpop.eup %6964 }
 0x761   : > { %6966 = vtanh.f32 %v4097_v57  ;;  %v4099_v59 = vsub.f32 1.0, %v6965_v58  ;;  %v4101_v62 = vmul.f32 %v6965_v58, %v9218_v9  ;;  %v4302_v9 = vld [vmem:[#allocation50 + $0x58] sm:$0xff] }
 0x76e   : > { %v6967_v60 = vpop.eup %6966 }
 0x76f   : > { %v4100_v61 = vmul.f32 %v6967_v60, %v4099_v59 }
 0x771   : > { %v4102_v63 = vadd.f32 %v4101_v62, %v4100_v61 }
 0x773   : > { %4103 = vst [vmem:[#allocation5] sm:$0xff] %v4102_v63  ;;  %6468 = vmatmul.mubr.f32.vlgmr.msra.gmra.mxu1 %v4102_v63  ;;  %4398 = vst [vmem:[%s2077_s24] sm:$0xff] %v4102_v63 }
 0x774   : > { %6506 = vmatpush3.msra.mxu1 %v4306_v0  ;;  %6537 = vmatprep.mubr.msk.f32.mxu1 %vm8145_vm0, %v8144_v4 }
 0x775   : > { %6507 = vmatprep.subr.mxu1 %v8144_v4 }
 0x776   : > { %6508 = vmatpush3.msra.mxu1 %v4305_v1 }
 0x777   : > { %6509 = vmatprep.subr.mxu1 %v8144_v4 }
 0x778   : > { %6510 = vmatpush3.msra.mxu1 %v4304_v3 }
 0x779   : > { %6511 = vmatprep.subr.mxu1 %v8144_v4 }
 0x77a   : > { %6512 = vmatpush3.msra.mxu1 %v4303_v5 }
 0x77b   : > { %6513 = vmatprep.subr.mxu1 %v8144_v4 }
 0x77c   : > { %6514 = vmatpush3.msra.mxu1 %v4302_v9 }
 0x77d   : > { %6515 = vmatprep.subr.mxu1 %v8144_v4 }
 0x77e   : > { %6516 = vmatpush3.msra.mxu1 %v4301_v6 }
 0x77f   : > { %6517 = vmatprep.subr.mxu1 %v8144_v4 }
 0x780   : > { %6518 = vmatpush3.msra.mxu1 %v4300_v8 }
 0x781   : > { %6519 = vmatprep.subr.mxu1 %v8144_v4 }
 0x782   : > { %6520 = vmatpush3.msra.mxu1 %v4299_v10 }
 0x783   : > { %6521 = vmatprep.subr.mxu1 %v8144_v4 }
 0x784   : > { %6522 = vmatpush3.msra.mxu1 %v4298_v11 }
 0x785   : > { %6523 = vmatprep.subr.mxu1 %v8144_v4 }
 0x786   : > { %6524 = vmatpush3.msra.mxu1 %v4297_v12 }
 0x787   : > { %6525 = vmatprep.subr.mxu1 %v8144_v4 }
 0x788   : > { %6526 = vmatpush3.msra.mxu1 %v4296_v13 }
 0x789   : > { %6527 = vmatprep.subr.mxu1 %v8144_v4 }
 0x78a   : > { %6528 = vmatpush3.msra.mxu1 %v4295_v14 }
 0x78b   : > { %6529 = vmatprep.subr.mxu1 %v8144_v4 }
 0x78c   : > { %6530 = vmatpush3.msra.mxu1 %v4294_v15 }
 0x78d   : > { %6531 = vmatprep.subr.mxu1 %v8144_v4 }
 0x78e   : > { %6532 = vmatpush3.msra.mxu1 %v4293_v17 }
 0x78f   : > { %6533 = vmatprep.subr.mxu1 %v8144_v4 }
 0x790   : > { %6534 = vmatpush3.msra.mxu1 %v4292_v19 }
 0x791   : > { %6535 = vmatprep.subr.mxu1 %v8144_v4 }
 0x792   : > { %6536 = vmatpush3.msra.mxu1 %v4291_v21 }
 0x833   : > { %v4193_v23 = vpop.f32.mrf.mxu1 }
 0x834   : > { %v4194_v24 = vadd.f32 %v5271_v22, %v4193_v23 }
 0x835   : > { %v6469_v26 = vpop.f32.mrf.mxu1 }
 0x836   : > { %v4197_v27 = vmax.f32 %v4194_v24, 0.0 }
 0x838   : > { %6503 = vmatmul.mubr.f32.vlgmr.msra.gmra.mxu0 %v4197_v27  ;;  %6538 = vmatmul.mubr.f32.vlgmr.msra.gmra.mxu1 %v4197_v27 }
 0x839   : > { %7749 = shalt.err (!%p7746_p3)
}
 0x83a   : > { %s7750_s18 = scalar_lea.hbm %s4462_s8, 128  ;;  %s7754_s24 = scalar_lea.hbm %s9764_s15, 640 }
 0x83b   : > { %p7751_p5 = scmp.ne.s32.totalorder %s4462_s8, %s7750_s18  ;;  %p7755_p9 = scmp.lt.s32.totalorder %s4462_s8, %s9764_s15 }
 0x83c   : > { %p7756_p12 = scmp.lt.s32.totalorder %s7754_s24, %s7750_s18 }
 0x83d   : > { %p7752_p13 = pnand %p7751_p5, %p9765_p0 }
 0x83e   : > { %p7757_p11 = por %p7756_p12, %p7755_p9 }
 0x83f   : > { %p7753_p6 = pneg %p7752_p13 }
 0x841   : > { %p7758_p4 = pnand %p7757_p11, %p7753_p6 }
 0x843   : > { %7761 = shalt.err (!%p7758_p4)
}
 0x844   : > { %6649 = dma.vmem_to_hbm [thread:$0]  (%p9765_p0), %s4465_s12, 128, %s4462_s8, %s9620_s1  }
 0x845   : > { %s4514_s21 = scalar_lea.hbm %s8417_s19, %s9389_s17  ;;  %s4516_s29 = sshll.u32 %s2105_s28, 4  ;;  %s4517_s29 = int_to_ptr.vmem [resolvable:$true] %s4516_s29 }
 0x846   : > { %s9621_s22 = scalar_lea.sflag [#allocation59], %s8824_s4  ;;  %s7762_s16 = scalar_lea.vmem %s4517_s29, 128 }
 0x847   : > { %p7763_p7 = scmp.ne.s32.totalorder %s4517_s29, %s7762_s16  ;;  %s8147_s18 = smov [#allocation58]  }
 0x848   : > { %s7766_s24 = sshll.u32 %s8147_s18, 4  ;;  %s7767_s24 = int_to_ptr.vmem [resolvable:$false] %s7766_s24 }
 0x849   : > { %p7764_p8 = pnand %p7763_p7, %p9765_p0  ;;  %s7768_s5 = scalar_lea.vmem %s7767_s24, 256 }
 0x84a   : > { %p7769_p10 = scmp.lt.s32.totalorder %s4517_s29, %s7767_s24  ;;  %p7770_p1 = scmp.lt.s32.totalorder %s7768_s5, %s7762_s16 }
 0x84b   : > { %p7765_p2 = pneg %p7764_p8 }
 0x84c   : > { %p7771_p3 = por %p7770_p1, %p7769_p10 }
 0x84e   : > { %p7772_p5 = pnand %p7771_p3, %p7765_p2 }
 0x850   : > { %7775 = shalt.err (!%p7772_p5)
}
 0x851   : > { %s7776_s8 = scalar_lea.hbm %s4514_s21, 128  ;;  %s7780_s28 = scalar_lea.hbm %s8417_s19, 640 }
 0x852   : > { %p7777_p13 = scmp.ne.s32.totalorder %s4514_s21, %s7776_s8  ;;  %p7781_p12 = scmp.lt.s32.totalorder %s4514_s21, %s8417_s19 }
 0x853   : > { %p7782_p11 = scmp.lt.s32.totalorder %s7780_s28, %s7776_s8 }
 0x854   : > { %p7778_p6 = pnand %p7777_p13, %p9765_p0 }
 0x855   : > { %p7783_p4 = por %p7782_p11, %p7781_p12 }
 0x856   : > { %p7779_p9 = pneg %p7778_p6 }
 0x858   : > { %p7784_p7 = pnand %p7783_p4, %p7779_p9 }
 0x85a   : > { %7787 = shalt.err (!%p7784_p7)
}
 0x85b   : > { %s9766_s5 = sld [smem:[#allocation129_spill]]  ;;  %s4451_s16 = sshll.u32 %s2070_s30, 4  ;;  %s4452_s16 = int_to_ptr.vmem [resolvable:$true] %s4451_s16 }
 0x85c   : > { %6653 = dma.vmem_to_hbm [thread:$0]  (%p9765_p0), %s4517_s29, 128, %s4514_s21, %s9621_s22  }
 0x85d   : > { %s4403_s18 = scalar_lea.sflag [#allocation8], %s8812_s13  ;;  %s7788_s24 = scalar_lea.vmem %s4452_s16, 128 }
 0x85e   : > { %p7789_p8 = scmp.ne.s32.totalorder %s4452_s16, %s7788_s24  ;;  %s8148_s8 = smov [#allocation51]  }
 0x85f   : > { %s7792_s28 = sshll.u32 %s8148_s8, 4  ;;  %s7793_s28 = int_to_ptr.vmem [resolvable:$false] %s7792_s28 }
 0x860   : > { %p7790_p2 = pnand %p7789_p8, %p9765_p0  ;;  %s7794_s1 = scalar_lea.vmem %s7793_s28, 256 }
 0x861   : > { %s4449_s12 = scalar_lea.hbm %s9766_s5, %s9389_s17  ;;  %p7795_p1 = scmp.lt.s32.totalorder %s4452_s16, %s7793_s28 }
 0x862   : > { %p7791_p10 = pneg %p7790_p2  ;;  %p7796_p3 = scmp.lt.s32.totalorder %s7794_s1, %s7788_s24 }
 0x864   : > { %p7797_p5 = por %p7796_p3, %p7795_p1 }
 0x866   : > { %p7798_p13 = pnand %p7797_p5, %p7791_p10 }
 0x868   : > { %7801 = shalt.err (!%p7798_p13)
}
 0x869   : > { %s7802_s21 = scalar_lea.hbm %s4449_s12, 128  ;;  %s7806_s30 = scalar_lea.hbm %s9766_s5, 640 }
 0x86a   : > { %p7803_p6 = scmp.ne.s32.totalorder %s4449_s12, %s7802_s21  ;;  %p7807_p11 = scmp.lt.s32.totalorder %s4449_s12, %s9766_s5 }
 0x86b   : > { %p7808_p4 = scmp.lt.s32.totalorder %s7806_s30, %s7802_s21 }
 0x86c   : > { %p7804_p9 = pnand %p7803_p6, %p9765_p0 }
 0x86d   : > { %p7809_p7 = por %p7808_p4, %p7807_p11 }
 0x86e   : > { %p7805_p12 = pneg %p7804_p9 }
 0x870   : > { %p7810_p8 = pnand %p7809_p7, %p7805_p12 }
 0x872   : > { %7813 = shalt.err (!%p7810_p8)
}
 0x873   : > { %s9767_s1 = sld [smem:[#allocation134_spill]]  ;;  %s4527_s29 = scalar_lea.hbm %s8422_s27, %s9389_s17 }
 0x874   : > { %6648 = dma.vmem_to_hbm [thread:$0]  (%p9765_p0), %s4452_s16, 128, %s4449_s12, %s4403_s18  }
 0x875   : > { %s9768_s24 = scalar_lea.vmem [#allocation60], %s8815_s9  ;;  %s8149_s21 = smov [#allocation60]  }
 0x876   : > { %s4529_s8 = sshll.u32 %s9768_s24, 4  ;;  %s7818_s30 = sshll.u32 %s8149_s21, 4  ;;  %s4530_s8 = int_to_ptr.vmem [resolvable:$true] %s4529_s8  ;;  %s7819_s30 = int_to_ptr.vmem [resolvable:$false] %s7818_s30 }
 0x877   : > { %s7814_s22 = scalar_lea.vmem %s4530_s8, 128  ;;  %s7820_s5 = scalar_lea.vmem %s7819_s30, 256 }
 0x878   : > { %p7815_p2 = scmp.ne.s32.totalorder %s4530_s8, %s7814_s22  ;;  %p7821_p3 = scmp.lt.s32.totalorder %s4530_s8, %s7819_s30 }
 0x879   : > { %s9440_s28 = scalar_lea.hbm %s9767_s1, %s9389_s17  ;;  %p7822_p5 = scmp.lt.s32.totalorder %s7820_s5, %s7814_s22 }
 0x87a   : > { %p7816_p10 = pnand %p7815_p2, %p9765_p0 }
 0x87b   : > { %p7823_p13 = por %p7822_p5, %p7821_p3 }
 0x87c   : > { %p7817_p1 = pneg %p7816_p10 }
 0x87e   : > { %p7824_p6 = pnand %p7823_p13, %p7817_p1 }
 0x880   : > { %7827 = shalt.err (!%p7824_p6)
}
 0x881   : > { %s7828_s12 = scalar_lea.hbm %s4527_s29, 128  ;;  %s7832_s16 = scalar_lea.hbm %s8422_s27, 640 }
 0x882   : > { %p7829_p9 = scmp.ne.s32.totalorder %s4527_s29, %s7828_s12  ;;  %p7833_p4 = scmp.lt.s32.totalorder %s4527_s29, %s8422_s27 }
 0x883   : > { %p7834_p7 = scmp.lt.s32.totalorder %s7832_s16, %s7828_s12 }
 0x884   : > { %p7830_p12 = pnand %p7829_p9, %p9765_p0 }
 0x885   : > { %p7835_p8 = por %p7834_p7, %p7833_p4 }
 0x886   : > { %p7831_p11 = pneg %p7830_p12 }
 0x888   : > { %p7836_p2 = pnand %p7835_p8, %p7831_p11 }
 0x88a   : > { %7839 = shalt.err (!%p7836_p2)
}
 0x88b   : > { %s9769_s22 = scalar_lea.sflag [#allocation59], %s8824_s4  ;;  %s9770_s5 = scalar_lea.vmem [#allocation61], %s8815_s9 }
 0x88c   : > { %6654 = dma.vmem_to_hbm [thread:$0]  (%p9765_p0), %s4530_s8, 128, %s4527_s29, %s9769_s22  }
 0x88d   : > { %s4542_s18 = sshll.u32 %s9770_s5, 4  ;;  %s4438_s24 = scalar_lea.sflag [#allocation62], %s8812_s13  ;;  %s4543_s18 = int_to_ptr.vmem [resolvable:$true] %s4542_s18 }
 0x88e   : > { %s7840_s21 = scalar_lea.vmem %s4543_s18, 128  ;;  %s8150_s30 = smov [#allocation61]  }
 0x88f   : > { %p7841_p10 = scmp.ne.s32.totalorder %s4543_s18, %s7840_s21  ;;  %s7844_s12 = sshll.u32 %s8150_s30, 4  ;;  %s7845_s12 = int_to_ptr.vmem [resolvable:$false] %s7844_s12 }
 0x890   : > { %s7846_s16 = scalar_lea.vmem %s7845_s12, 256  ;;  %p7847_p5 = scmp.lt.s32.totalorder %s4543_s18, %s7845_s12 }
 0x891   : > { %p7842_p1 = pnand %p7841_p10, %p9765_p0  ;;  %p7848_p13 = scmp.lt.s32.totalorder %s7846_s16, %s7840_s21 }
 0x893   : > { %p7843_p3 = pneg %p7842_p1  ;;  %p7849_p6 = por %p7848_p13, %p7847_p5 }
 0x895   : > { %p7850_p9 = pnand %p7849_p6, %p7843_p3 }
 0x897   : > { %7853 = shalt.err (!%p7850_p9)
}
 0x898   : > { %s7854_s13 = scalar_lea.hbm %s9440_s28, 128  ;;  %s7858_s29 = scalar_lea.hbm %s9767_s1, 640 }
 0x899   : > { %p7855_p12 = scmp.ne.s32.totalorder %s9440_s28, %s7854_s13  ;;  %p7859_p7 = scmp.lt.s32.totalorder %s9440_s28, %s9767_s1 }
 0x89a   : > { %p7860_p8 = scmp.lt.s32.totalorder %s7858_s29, %s7854_s13 }
 0x89b   : > { %p7856_p11 = pnand %p7855_p12, %p9765_p0 }
 0x89c   : > { %p7861_p2 = por %p7860_p8, %p7859_p7 }
 0x89d   : > { %p7857_p4 = pneg %p7856_p11 }
 0x89f   : > { %p7862_p10 = pnand %p7861_p2, %p7857_p4 }
 0x8a1   : > { %7865 = shalt.err (!%p7862_p10)
}
 0x8a2   : > { %s9771_s8 = sld [smem:[#allocation126_spill]]  ;;  %s9774_s21 = scalar_lea.vmem [#allocation55], %s8815_s9 }
 0x8a3   : > { %s9772_s22 = sld [smem:[#allocation128_spill]]  ;;  %s4490_s30 = sshll.u32 %s9774_s21, 4  ;;  %s9477_s30 = int_to_ptr.vmem [resolvable:$true] %s4490_s30 }
 0x8a4   : > { %s9773_s5 = sld [smem:[#allocation132_spill]]  ;;  %s8151_s16 = smov [#allocation55]  }
 0x8a5   : > { %6655 = dma.vmem_to_hbm [thread:$0]  (%p9765_p0), %s4543_s18, 128, %s9440_s28, %s4438_s24  }
 0x8a6   : > { %s9775_s28 = smov %s9774_s21  ;;  %s9623_s18 = scalar_lea.sflag [#allocation56], %s8824_s4 }
 0x8a7   : > { %s7866_s24 = scalar_lea.vmem %s9477_s30, 128  ;;  %s7870_s13 = sshll.u32 %s8151_s16, 4  ;;  %s7871_s13 = int_to_ptr.vmem [resolvable:$false] %s7870_s13 }
 0x8a8   : > { %v5272_v4 = vld [vmem:[%s9771_s8] ss:$0 sm:$0xff]  ;;  %p7867_p1 = scmp.ne.s32.totalorder %s9477_s30, %s7866_s24  ;;  %s7872_s29 = scalar_lea.vmem %s7871_s13, 256 }
 0x8a9   : > { %v5273_v28 = vld [vmem:[%s9772_s22] ss:$0 sm:$0xff]  ;;  %p7873_p13 = scmp.lt.s32.totalorder %s9477_s30, %s7871_s13  ;;  %p7874_p6 = scmp.lt.s32.totalorder %s7872_s29, %s7866_s24 }
 0x8aa   : > { %s9475_s12 = scalar_lea.hbm %s9773_s5, %s9389_s17  ;;  %p7868_p3 = pnand %p7867_p1, %p9765_p0 }
 0x8ab   : > { %p7875_p9 = por %p7874_p6, %p7873_p13 }
 0x8ac   : > { %p7869_p5 = pneg %p7868_p3 }
 0x8ae   : > { %p7876_p12 = pnand %p7875_p9, %p7869_p5 }
 0x8f8   : > { %v4287_v2 = vpop.f32.mrf.mxu0  ;;  %v4380_v29 = vpop.f32.mrf.mxu1 }
 0x8f9   : > { %v9471_v31 = vadd.f32 %v5272_v4, %v4287_v2  ;;  %v4381_v32 = vadd.f32 %v5273_v28, %v4380_v29 }
 0x8fa   : > { %v6504_v33 = vpop.f32.mrf.mxu0  ;;  %v6539_v34 = vpop.f32.mrf.mxu1 }
 0x8fb   : > { %4399 = vst [vmem:[%s9775_s28] sm:$0xff] %v9471_v31  ;;  %v4385_v35 = vand.u32 2147483647, %v4381_v32 }
 0x8fc   : > { %7879 = shalt.err (!%p7876_p12)
}
 0x8fd   : > { %s7880_s8 = scalar_lea.hbm %s9475_s12, 128  ;;  %s7884_s22 = scalar_lea.hbm %s9773_s5, 640 }
 0x8fe   : > { %p7881_p11 = scmp.ne.s32.totalorder %s9475_s12, %s7880_s8  ;;  %p7885_p8 = scmp.lt.s32.totalorder %s9475_s12, %s9773_s5 }
 0x8ff   : > { %p7886_p2 = scmp.lt.s32.totalorder %s7884_s22, %s7880_s8 }
 0x900   : > { %p7882_p4 = pnand %p7881_p11, %p9765_p0 }
 0x901   : > { %p7887_p10 = por %p7886_p2, %p7885_p8 }
 0x902   : > { %p7883_p7 = pneg %p7882_p4 }
 0x904   : > { %p7888_p1 = pnand %p7887_p10, %p7883_p7 }
 0x906   : > { %7891 = shalt.err (!%p7888_p1)
}
 0x907   : > { %s9776_s21 = sld [smem:[#allocation133_spill]]  ;;  %v4386_v36 = vsub.f32 0.0, %v4385_v35  ;;  %v4384_v40 = vmax.f32 %v4381_v32, 0.0  ;;  %s9777_s28 = scalar_lea.vmem [#allocation57], %s8815_s9 }
 0x908   : > { %6651 = dma.vmem_to_hbm [thread:$0]  (%p9765_p0), %s9477_s30, 128, %s9475_s12, %s9623_s18  }
 0x909   : > { %v4387_v25 = vmul.f32 1.442695, %v4386_v36  ;;  %s4503_s24 = sshll.u32 %s9777_s28, 4  ;;  %s9778_s16 = scalar_lea.vmem [#allocation12], %s8815_s9  ;;  %s4504_s24 = int_to_ptr.vmem [resolvable:$true] %s4503_s24 }
 0x90a   : > { %v4394_v43 = vld [vmem:[%s9778_s16] sm:$0xff]  ;;  %s9779_s30 = scalar_lea.vmem [#allocation54], %s8815_s9  ;;  %s9780_s29 = smov %s9777_s28 }
 0x90b   : > { %6968 = vpow2.f32 %v4387_v25  ;;  %s9511_s12 = sshll.u32 %s9779_s30, 4  ;;  %s7892_s8 = scalar_lea.vmem %s4504_s24, 128  ;;  %s4478_s12 = int_to_ptr.vmem [resolvable:$true] %s9511_s12 }
 0x90c   : > { %p7893_p3 = scmp.ne.s32.totalorder %s4504_s24, %s7892_s8  ;;  %s8152_s22 = smov [#allocation57]  }
 0x90d   : > { %s9507_s13 = scalar_lea.hbm %s9776_s21, %s9389_s17  ;;  %s7896_s28 = sshll.u32 %s8152_s22, 4  ;;  %s7897_s28 = int_to_ptr.vmem [resolvable:$false] %s7896_s28 }
 0x90e   : > { %p7894_p5 = pnand %p7893_p3, %p9765_p0  ;;  %s7898_s18 = scalar_lea.vmem %s7897_s28, 256 }
 0x90f   : > { %p7899_p6 = scmp.lt.s32.totalorder %s4504_s24, %s7897_s28  ;;  %p7900_p9 = scmp.lt.s32.totalorder %s7898_s18, %s7892_s8 }
 0x910   : > { %p7895_p13 = pneg %p7894_p5 }
 0x911   : > { %p7901_p12 = por %p7900_p9, %p7899_p6 }
 0x913   : > { %p7902_p11 = pnand %p7901_p12, %p7895_p13 }
 0x918   : > { %v6969_v37 = vpop.eup %6968 }
 0x919   : > { %v4389_v38 = vadd.f32 1.0, %v6969_v37 }
 0x91b   : > { %6970 = vlog2.f32 %v4389_v38 }
 0x928   : > { %v6971_v39 = vpop.eup %6970 }
 0x929   : > { %v4391_v41 = vmul.f32 0.6931472, %v6971_v39 }
 0x92b   : > { %v4392_v42 = vadd.f32 %v4391_v41, %v4384_v40 }
 0x92d   : > { %v4393_v44 = vadd.f32 0.1, %v4392_v42 }
 0x92f   : > { %v4395_v45 = vmul.f32 %v4394_v43, %v4393_v44  ;;  %4400 = vst [vmem:[%s9780_s29] sm:$0xff] %v4393_v44 }
 0x930   : > { %7905 = shalt.err (!%p7902_p11)
}
 0x931   : > { %s7906_s16 = scalar_lea.hbm %s9507_s13, 128  ;;  %s7910_s30 = scalar_lea.hbm %s9776_s21, 640 }
 0x932   : > { %p7907_p4 = scmp.ne.s32.totalorder %s9507_s13, %s7906_s16  ;;  %p7911_p2 = scmp.lt.s32.totalorder %s9507_s13, %s9776_s21 }
 0x933   : > { %p7912_p10 = scmp.lt.s32.totalorder %s7910_s30, %s7906_s16 }
 0x934   : > { %p7908_p7 = pnand %p7907_p4, %p9765_p0 }
 0x935   : > { %p7913_p1 = por %p7912_p10, %p7911_p2 }
 0x936   : > { %p7909_p8 = pneg %p7908_p7 }
 0x938   : > { %p7914_p3 = pnand %p7913_p1, %p7909_p8 }
 0x93a   : > { %7917 = shalt.err (!%p7914_p3)
}
 0x93b   : > { %s9781_s18 = scalar_lea.sflag [#allocation56], %s8824_s4  ;;  %s9782_s29 = sld [smem:[#allocation131_spill]]  ;;  %v4396_v46 = vadd.f32 %v4395_v45, %v9471_v31 }
 0x93c   : > { %6652 = dma.vmem_to_hbm [thread:$0]  (%p9765_p0), %s4504_s24, 128, %s9507_s13, %s9781_s18  }
 0x93d   : > { %4397 = vst [vmem:[#allocation3] sm:$0xff] %v4396_v46  ;;  %s9783_s22 = scalar_lea.vmem [#allocation54], %s8815_s9  ;;  %s7918_s28 = scalar_lea.vmem %s4478_s12, 128 }
 0x93e   : > { %4401 = vst [vmem:[%s9783_s22] sm:$0xff] %v4396_v46  ;;  %p7919_p5 = scmp.ne.s32.totalorder %s4478_s12, %s7918_s28  ;;  %s8153_s16 = smov [#allocation54]  }
 0x93f   : > { %s7922_s30 = sshll.u32 %s8153_s16, 4  ;;  %s7923_s30 = int_to_ptr.vmem [resolvable:$false] %s7922_s30 }
 0x940   : > { %p7920_p13 = pnand %p7919_p5, %p9765_p0  ;;  %s7924_s1 = scalar_lea.vmem %s7923_s30, 256 }
 0x941   : > { %s4475_s8 = scalar_lea.hbm %s9782_s29, %s9389_s17  ;;  %p7925_p9 = scmp.lt.s32.totalorder %s4478_s12, %s7923_s30 }
 0x942   : > { %p7921_p6 = pneg %p7920_p13  ;;  %p7926_p12 = scmp.lt.s32.totalorder %s7924_s1, %s7918_s28 }
 0x944   : > { %p7927_p11 = por %p7926_p12, %p7925_p9 }
 0x946   : > { %p7928_p4 = pnand %p7927_p11, %p7921_p6 }
 0x948   : > { %7931 = shalt.err (!%p7928_p4)
}
 0x949   : > { %s7932_s24 = scalar_lea.hbm %s4475_s8, 128  ;;  %s7936_s9 = scalar_lea.hbm %s9782_s29, 640 }
 0x94a   : > { %p7933_p7 = scmp.ne.s32.totalorder %s4475_s8, %s7932_s24  ;;  %p7937_p10 = scmp.lt.s32.totalorder %s4475_s8, %s9782_s29 }
 0x94b   : > { %p7938_p1 = scmp.lt.s32.totalorder %s7936_s9, %s7932_s24 }
 0x94c   : > { %p7934_p8 = pnand %p7933_p7, %p9765_p0 }
 0x94d   : > { %p7939_p3 = por %p7938_p1, %p7937_p10 }
 0x94e   : > { %p7935_p2 = pneg %p7934_p8 }
 0x950   : > { %p7940_p5 = pnand %p7939_p3, %p7935_p2 }
 0x952   : > { %7943 = shalt.err (!%p7940_p5)
}
 0x953   : > { %s9784_s17 = scalar_lea.sflag [#allocation53], %s8824_s4 }
 0x954   : > { %6650 = dma.vmem_to_hbm [thread:$0]  (%p9765_p0), %s4478_s12, 128, %s4475_s8, %s9784_s17  }
 0x955 PF: > { %p6829_p13 = scmp.ge.s32.totalorder %s8058_s11, 2  ;;  %s4554_s1 = sand.u32 1, %s8046_s0  }
 0x956   : > { %p9785_p6 = scmp.ne.s32.totalorder %s9695_s3, 0  ;;  %s4555_s18 = scalar_lea.sflag [#allocation8], %s4554_s1 }
 0x958   : > { %p6754_p9 = pnand %p6829_p13, %p9785_p6 }
 0x95a   : > { %p9549_p12 = pneg %p6754_p9 }
 0x95c   : > { %8025 = dma.done.wait (%p9549_p12), %s4555_s18, 128  }
 0x95d   : > { %8027 = vsyncadd (%p9549_p12), %s4555_s18, 4294967168  ;;  %s9787_s2 = sadd.s32 4294967294, %s8058_s11  }
 0x95e   : > { %s4563_s4 = sand.u32 1, %s9787_s2  }
 0x95f   : > { %s4564_s12 = scalar_lea.sflag [#allocation53], %s4563_s4 }
 0x960   : > { %8029 = dma.done.wait (%p9549_p12), %s4564_s12, 256  }
 0x961   : > { %8031 = vsyncadd (%p9549_p12), %s4564_s12, 4294967040  ;;  %s4582_s0 = scalar_lea.sflag [#allocation56], %s4563_s4 }
 0x962   : > { %8033 = dma.done.wait (%p9549_p12), %s4582_s0, 256  }
 0x963   : > { %8035 = vsyncadd (%p9549_p12), %s4582_s0, 4294967040  ;;  %s4600_s3 = scalar_lea.sflag [#allocation59], %s4563_s4 }
 0x964   : > { %8037 = dma.done.wait (%p9549_p12), %s4600_s3, 256  }
 0x965   : > { %8039 = vsyncadd (%p9549_p12), %s4600_s3, 4294967040  ;;  %s4618_s11 = scalar_lea.sflag [#allocation62], %s4554_s1 }
 0x966   : > { %8041 = dma.done.wait (%p9549_p12), %s4618_s11, 128  }
 0x967   : > { %8043 = vsyncadd (%p9549_p12), %s4618_s11, 4294967168  ;;  %p151_p0 = scmp.ge.s32.totalorder %s8591_s26, 7   ;;  %s9788_s0 = smov %s8050_s7 }
 0x968   : > { %s9789_s7 = smov %s8054_s10  ;;  %s9790_s10 = smov %s8603_s23 }
 0x969   : > { %s9791_s11 = smov %s8591_s26  ;;  %153 = sbr.rel (!%p151_p0) target bundleno = 140 (0x8c), region = 556 }
 0x96e   :  { %4623 = vsyncpa [#allocation7], 1 }
 0x96f   :  { %4625 = vsyncpa [#allocation7 + $0x1], 1 }
 0x970   :  { %4626 = vsyncpa [#allocation10], 1 }
 0x971   :  { %4628 = vsyncpa [#allocation10 + $0x1], 1 }
 0x972   :  { %4629 = vsyncpa [#allocation13], 1 }
 0x973   :  { %4631 = vsyncpa [#allocation13 + $0x1], 1 }
 0x974   :  { %4632 = vsyncpa [#allocation16], 1 }
 0x975   :  { %4633 = vsyncpa [#allocation19], 1 }
 0x976   :  { %4634 = vsyncpa [#allocation22], 1 }
 0x977   :  { %4635 = vsyncpa [#allocation25], 1 }
 0x978   :  { %4636 = vsyncpa [#allocation28], 1 }
 0x979   :  { %4637 = vsyncpa [#allocation31], 1 }
 0x97a   :  { %4638 = vsyncpa [#allocation34], 1 }
 0x97b   :  { %4639 = vsyncpa [#allocation37], 1 }
 0x97c   :  { %4640 = vsyncpa [#allocation40], 1 }
 0x97d   :  { %4641 = vsyncpa [#allocation43], 1 }
 0x97e   :  { %4642 = vsyncpa [#allocation46], 1 }
 0x97f   :  { %4643 = vsyncpa [#allocation49], 1 }
 0x980   :  { %4644 = vsyncpa [#allocation8], 1 }
 0x981   :  { %4646 = vsyncpa [#allocation8 + $0x1], 1 }
 0x982   :  { %4647 = vsyncpa [#allocation53], 1 }
 0x983   :  { %4649 = vsyncpa [#allocation53 + $0x1], 1 }
 0x984   :  { %4650 = vsyncpa [#allocation56], 1 }
 0x985   :  { %4652 = vsyncpa [#allocation56 + $0x1], 1 }
 0x986   :  { %4653 = vsyncpa [#allocation59], 1 }
 0x987   :  { %4655 = vsyncpa [#allocation59 + $0x1], 1 }
 0x988   :  { %4656 = vsyncpa [#allocation62], 1 }
 0x989   :  { %4658 = vsyncpa [#allocation62 + $0x1], 1 }

</bundles_post_ra>
